<compile_context>
chip_gen: v7x
topology: tpu7x:2x2x1
jax: 0.10.0
libtpu: 0.0.40
codegen_flags: <defaults>
</compile_context>

<pallas_src>
import jax
import jax.numpy as jnp
from jax.experimental import pallas as pl
from jax.experimental.pallas import tpu as pltpu


def _conv1x1_kernel(w_ref, x_ref, o_ref):
    # w_ref: (TCO, C_in) bf16, x_ref: (C_in, HW) f32, o_ref: (TCO, HW) f32
    w = w_ref[...].astype(jnp.bfloat16)          # no-op if already bf16
    x = x_ref[...].astype(jnp.bfloat16)          # VPU cast, hidden under DMA
    o_ref[...] = jnp.dot(
        w, x, preferred_element_type=jnp.float32
    ).astype(o_ref.dtype)


def _pick_cout_tile(c_out: int) -> int:
    # Largest divisor of c_out that is a multiple of 8 and <= c_out // 2.
    # Two balanced tiles keep both v7x TensorCores busy and give single-TC
    # chips at least one pipelined grid step; fall back to a single tile.
    for d in range(c_out // 2, 7, -1):
        if c_out % d == 0 and d % 8 == 0:
            return d
    return c_out


def prepare_weight(weight_oihw: jax.Array,
                   compute_dtype=jnp.bfloat16) -> jax.Array:
    """One-time (amortized) weight prep: OIHW f32 -> (n_tiles, tile_co, C_in) bf16."""
    c_out, c_in = weight_oihw.shape[0], weight_oihw.shape[1]
    assert weight_oihw.shape[2:] == (1, 1)
    tile_co = _pick_cout_tile(c_out)
    w = weight_oihw.reshape(c_out, c_in).astype(compute_dtype)
    return w.reshape(c_out // tile_co, tile_co, c_in)


def conv1x1(x_nchw: jax.Array, w_tiled: jax.Array) -> jax.Array:
    """1x1 conv, stride 1, no bias. x: (N, C_in, H, W); w_tiled from prepare_weight."""
    n, c_in, h, w = x_nchw.shape
    n_tiles, tile_co, wc_in = w_tiled.shape
    assert wc_in == c_in
    c_out = n_tiles * tile_co

    hw = h * w
    x3 = x_nchw.reshape(n, c_in, hw)             # zero-copy view of NCHW
    grid = (n, n_tiles)

    cost = pl.CostEstimate(
        flops=2 * n * hw * c_in * c_out,
        transcendentals=0,
        bytes_accessed=(
            x3.size * jnp.dtype(x_nchw.dtype).itemsize
            + w_tiled.size * jnp.dtype(w_tiled.dtype).itemsize
            + n * c_out * hw * jnp.dtype(x_nchw.dtype).itemsize
        ),
    )

    out3 = pl.pallas_call(
        _conv1x1_kernel,
        out_shape=jax.ShapeDtypeStruct((n, c_out, hw), x_nchw.dtype),
        grid=grid,
        in_specs=[
            # Weight tile i: full (tile_co, C_in) slab, offset 0 in trailing dims.
            pl.BlockSpec((None, tile_co, c_in), lambda b, i: (i, 0, 0)),
            # Activation slab for batch b: (C_in, HW), full last two dims.
            pl.BlockSpec((None, c_in, hw), lambda b, i: (b, 0, 0)),
        ],
        out_specs=pl.BlockSpec((None, tile_co, hw), lambda b, i: (b, i, 0)),
        compiler_params=pltpu.CompilerParams(
            dimension_semantics=("parallel", "parallel"),
        ),
        cost_estimate=cost,
    )(w_tiled, x3)

    return out3.reshape(n, c_out, h, w)          # zero-copy back to NCHW


if __name__ == "__main__":
    key = jax.random.PRNGKey(0)
    kx, kw = jax.random.split(key)

    # Shapes implied by the module's forward: x (1, 448, 28, 28), weight (1232, 448, 1, 1).
    N, C_IN, H, W = 1, 448, 28, 28
    C_OUT = 1232

    x = jax.random.normal(kx, (N, C_IN, H, W), dtype=jnp.float32)
    # Deterministic weight init (Kaiming-uniform-ish scale; exact values not checkpointed).
    bound = (1.0 / C_IN) ** 0.5
    weight = jax.random.uniform(
        kw, (C_OUT, C_IN, 1, 1), dtype=jnp.float32, minval=-bound, maxval=bound
    )

    # One-time weight prep (amortized across calls at inference).
    w_tiled = jax.block_until_ready(prepare_weight(weight))

    conv = jax.jit(conv1x1)
    out = jax.block_until_ready(conv(x, w_tiled))

    assert out.shape == (N, C_OUT, H, W)
    assert out.dtype == jnp.float32

    # Reference with matching numerics: bf16 operands, f32 accumulate.
    ref = jnp.einsum(
        "nchw,oc->nohw",
        x.astype(jnp.bfloat16),
        weight.reshape(C_OUT, C_IN).astype(jnp.bfloat16),
        preferred_element_type=jnp.float32,
    )
    assert jnp.allclose(out, ref, atol=1e-2, rtol=1e-2)
    # Looser sanity check against the exact f32 conv.
    ref_f32 = jnp.einsum("nchw,oc->nohw", x, weight.reshape(C_OUT, C_IN))
    assert jnp.allclose(out, ref_f32, atol=5e-2, rtol=5e-2)

    print("KERNEL_OK")
</pallas_src>

<mosaic_0001>
module attributes {stable_mosaic.version = 11 : i64} {
  func.func @_conv1x1_kernel(%arg0: i32, %arg1: i32, %arg2: memref<1x616x448xbf16, #tpu.memory_space<vmem>>, %arg3: memref<1x448x784xf32, #tpu.memory_space<vmem>>, %arg4: memref<1x616x784xf32, #tpu.memory_space<vmem>>) attributes {dimension_semantics = [#tpu.dimension_semantics<parallel>, #tpu.dimension_semantics<parallel>], iteration_bounds = array<i64: 1, 2>, scalar_prefetch = 0 : i64, scratch_operands = 0 : i64, tpu.core_type = #tpu.core_type<tc>, window_params = [{transform_indices = @transform_0, window_bounds = array<i64: 1, 616, 448>}, {transform_indices = @transform_1, window_bounds = array<i64: 1, 448, 784>}, {transform_indices = @transform_2, window_bounds = array<i64: 1, 616, 784>}]} {
    %c0 = arith.constant 0 : index
    %c0_0 = arith.constant 0 : index
    %c0_1 = arith.constant 0 : index
    %0 = vector.load %arg2[%c0, %c0_0, %c0_1] : memref<1x616x448xbf16, #tpu.memory_space<vmem>>, vector<1x616x448xbf16>
    %1 = vector.shape_cast %0 : vector<1x616x448xbf16> to vector<616x448xbf16>
    %c0_2 = arith.constant 0 : index
    %c0_3 = arith.constant 0 : index
    %c0_4 = arith.constant 0 : index
    %2 = vector.load %arg3[%c0_2, %c0_3, %c0_4] : memref<1x448x784xf32, #tpu.memory_space<vmem>>, vector<1x448x784xf32>
    %3 = vector.shape_cast %2 : vector<1x448x784xf32> to vector<448x784xf32>
    %4 = arith.truncf %3 : vector<448x784xf32> to vector<448x784xbf16>
    %cst = arith.constant dense<0.000000e+00> : vector<616x784xf32>
    %5 = tpu.matmul %1, %4, %cst {dimension_numbers = #tpu.dot_dimension_numbers<[1], [0], [0], [1], [0, 0, 1, 1], [], []>} : vector<616x448xbf16>, vector<448x784xbf16>, vector<616x784xf32> -> vector<616x784xf32>
    %c0_5 = arith.constant 0 : index
    %c0_6 = arith.constant 0 : index
    %c0_7 = arith.constant 0 : index
    %6 = vector.load %arg4[%c0_5, %c0_6, %c0_7] : memref<1x616x784xf32, #tpu.memory_space<vmem>>, vector<1x616x784xf32>
    %7 = vector.shape_cast %6 : vector<1x616x784xf32> to vector<616x784xf32>
    %8 = vector.shape_cast %5 : vector<616x784xf32> to vector<1x616x784xf32>
    tpu.vector_store %arg4[%c0_5, %c0_6, %c0_7], %8 {strides = array<i32>} : memref<1x616x784xf32, #tpu.memory_space<vmem>>, vector<1x616x784xf32>,
    return
  }
  func.func @transform_0(%arg0: i32, %arg1: i32) -> (i32, i32, i32) {
    %c0_i32 = arith.constant 0 : i32
    %c0_i32_0 = arith.constant 0 : i32
    %c0_i32_1 = arith.constant 0 : i32
    return %arg1, %c0_i32, %c0_i32_0 : i32, i32, i32
  }
  func.func @transform_1(%arg0: i32, %arg1: i32) -> (i32, i32, i32) {
    %c0_i32 = arith.constant 0 : i32
    %c0_i32_0 = arith.constant 0 : i32
    %c0_i32_1 = arith.constant 0 : i32
    return %arg0, %c0_i32, %c0_i32_0 : i32, i32, i32
  }
  func.func @transform_2(%arg0: i32, %arg1: i32) -> (i32, i32, i32) {
    %c0_i32 = arith.constant 0 : i32
    %c0_i32_0 = arith.constant 0 : i32
    return %arg0, %arg1, %c0_i32 : i32, i32, i32
  }
}

</mosaic_0001>

<bundles_post_ra>
// kernel: conv1x1.1
= control target key start
LH: loop header
LB: loop body
LE: loop exit
PB: predicated region body
PF: predicated region fallthrough
CT: control target
= control target key end

     0   :  { %s7038_s9 = smov 0   ;;  %s7040_s10 = smov 0   ;;  %s9391_s0 = inlined_call_operand.vmem [shape: bf16[2,616,448], index: 0, kind: input, shape index: {}]   ;;  %s9392_s1 = inlined_call_operand.vmem [shape: f32[1,448,784], index: 1, kind: input, shape index: {}]   ;;  %s9393_s2 = inlined_call_operand.vmem [shape: f32[1,1232,784], index: 2, kind: output, shape index: {}]  }
   0x1   :  { %s7042_s11 = smov 0  }
   0x2 LB: > { %s21_s12 = sadd.s32 1, %s7016_s10  ;;  %p5646_p0 = scmp.ge.s32.totalorder %s7020_s11, 1  ;;  %s7020_s11 = sphi %s7042_s11, %s12_s11   ;;  %s7016_s10 = sphi %s7040_s10, %s9395_s10   ;;  %s7012_s9 = sphi %s7038_s9, %s9394_s9  }
   0x3   : > { %p22_p1 = scmp.ge.s32.totalorder %s21_s12, 2  ;;  %p136_p2 = scmp.lt.s32.totalorder %s7020_s11, 3 }
   0x5   : > { %s9397_s12 = smov (%p22_p1, %s21_s12), 0  ;;  %p137_p3 = pnand %p5646_p0, %p136_p2 }
   0x6   : > { %v345_v0 = vld [vmem:[%s9392_s1 + $0x8] sm:$0xff] (!%p137_p3)  ;;  %v352_v1 = vld [vmem:[%s9392_s1 + $0x40] sm:$0xff] (!%p137_p3)  ;;  %v347_v2 = vld [vmem:[%s9392_s1 + $0x18] sm:$0xff] (!%p137_p3)  ;;  %p168_p4 = scmp.lt.s32.totalorder (!%p137_p3), %s7012_s9, 1  ;;  %vm1667_vm0 = vcmask (!%p137_p3), 523264   ;;  %s178_s5 = smul.u32 (!%p137_p3), 77, %s7012_s9 }
   0x7   : > { %140 = sbr.rel (%p137_p3) target bundleno = 1529 (0x5f9), region = 28  ;;  %v737_v3 = vpack.c.bf16 (!%p137_p3), %v352_v1, %v345_v0  ;;  %v354_v4 = vld [vmem:[%s9392_s1 + $0x50] sm:$0xff] (!%p137_p3)  ;;  %v344_v5 = vld [vmem:[%s9392_s1] sm:$0xff] (!%p137_p3)  ;;  %v351_v6 = vld [vmem:[%s9392_s1 + $0x38] sm:$0xff] (!%p137_p3)  ;;  %vm5005_vm1 = vcmask (!%p137_p3), 130048  }
   0x8   : > { %v739_v7 = vpack.c.bf16 (!%p137_p3), %v354_v4, %v347_v2  ;;  %v736_v8 = vpack.c.bf16 (!%p137_p3), %v351_v6, %v344_v5  ;;  %v346_v9 = vld [vmem:[%s9392_s1 + $0x10] sm:$0xff] (!%p137_p3)  ;;  %v353_v10 = vld [vmem:[%s9392_s1 + $0x48] sm:$0xff] (!%p137_p3)  ;;  %v359_v11 = vld [vmem:[%s9392_s1 + $0x78] sm:$0xff] (!%p137_p3)  ;;  %p181_p5 = scmp.lt.s32.totalorder (!%p137_p3), %s178_s5, 153 }
   0x9   : > { %1785 = vmatprep.subr.bf16.mxu0 (!%p137_p3), %v737_v3  ;;  %v738_v12 = vpack.c.bf16 (!%p137_p3), %v353_v10, %v346_v9  ;;  %v366_v13 = vld [vmem:[%s9392_s1 + $0xb0] sm:$0xff] (!%p137_p3)  ;;  %v361_v14 = vld [vmem:[%s9392_s1 + $0x88] sm:$0xff] (!%p137_p3)  ;;  %v368_v15 = vld [vmem:[%s9392_s1 + $0xc0] sm:$0xff] (!%p137_p3) }
   0xa   : > { %2627 = vmatprep.subr.bf16.mxu1 (!%p137_p3), %v739_v7  ;;  %1786 = vmatpush1.bf16.msra.mxu0 (!%p137_p3), %v736_v8  ;;  %v744_v16 = vpack.c.bf16 (!%p137_p3), %v366_v13, %v359_v11  ;;  %v746_v17 = vpack.c.bf16 (!%p137_p3), %v368_v15, %v361_v14  ;;  %v358_v18 = vld [vmem:[%s9392_s1 + $0x70] sm:$0xff] (!%p137_p3)  ;;  %v365_v19 = vld [vmem:[%s9392_s1 + $0xa8] sm:$0xff] (!%p137_p3)  ;;  %v360_v20 = vld [vmem:[%s9392_s1 + $0x80] sm:$0xff] (!%p137_p3) }
   0xb   : > { %2628 = vmatpush1.bf16.msra.mxu1 (!%p137_p3), %v738_v12  ;;  %v743_v21 = vpack.c.bf16 (!%p137_p3), %v365_v19, %v358_v18  ;;  %v367_v22 = vld [vmem:[%s9392_s1 + $0xb8] sm:$0xff] (!%p137_p3)  ;;  %v373_v23 = vld [vmem:[%s9392_s1 + $0xe8] sm:$0xff] (!%p137_p3)  ;;  %v380_v24 = vld [vmem:[%s9392_s1 + $0x120] sm:$0xff] (!%p137_p3) }
   0xc   : > { %1787 = vmatprep.subr.bf16.mxu0 (!%p137_p3), %v744_v16  ;;  %2629 = vmatprep.subr.bf16.mxu1 (!%p137_p3), %v746_v17  ;;  %v745_v25 = vpack.c.bf16 (!%p137_p3), %v367_v22, %v360_v20  ;;  %v751_v26 = vpack.c.bf16 (!%p137_p3), %v380_v24, %v373_v23  ;;  %v375_v27 = vld [vmem:[%s9392_s1 + $0xf8] sm:$0xff] (!%p137_p3)  ;;  %v382_v28 = vld [vmem:[%s9392_s1 + $0x130] sm:$0xff] (!%p137_p3)  ;;  %v372_v29 = vld [vmem:[%s9392_s1 + $0xe0] sm:$0xff] (!%p137_p3) }
   0xd   : > { %v753_v30 = vpack.c.bf16 (!%p137_p3), %v382_v28, %v375_v27  ;;  %v379_v31 = vld [vmem:[%s9392_s1 + $0x118] sm:$0xff] (!%p137_p3)  ;;  %v374_v32 = vld [vmem:[%s9392_s1 + $0xf0] sm:$0xff] (!%p137_p3)  ;;  %v381_v33 = vld [vmem:[%s9392_s1 + $0x128] sm:$0xff] (!%p137_p3) }
   0xe   : > { %1788 = vmatpush1.bf16.msra.mxu0 %v743_v21  ;;  %v750_v34 = vpack.c.bf16 %v379_v31, %v372_v29  ;;  %v387_v35 = vld [vmem:[%s9392_s1 + $0x158] sm:$0xff]  ;;  %v394_v36 = vld [vmem:[%s9392_s1 + $0x190] sm:$0xff]  ;;  %v389_v37 = vld [vmem:[%s9392_s1 + $0x168] sm:$0xff]  ;;  %v752_v38 = vpack.c.bf16 %v381_v33, %v374_v32  ;;  %s7290_s21 = scalar_select %p168_p4, %s7012_s9, 1 }
   0xf   : > { %2630 = vmatpush1.bf16.msra.mxu1 %v745_v25  ;;  %1789 = vmatprep.subr.bf16.mxu0 %v751_v26  ;;  %v758_v39 = vpack.c.bf16 %v394_v36, %v387_v35  ;;  %v396_v40 = vld [vmem:[%s9392_s1 + $0x1a0] sm:$0xff]  ;;  %v386_v41 = vld [vmem:[%s9392_s1 + $0x150] sm:$0xff]  ;;  %v393_v42 = vld [vmem:[%s9392_s1 + $0x188] sm:$0xff]  ;;  %s9399_s5 = smov (!%p181_p5, %s178_s5), 153 }
  0x10   : > { %2631 = vmatprep.subr.bf16.mxu1 %v753_v30  ;;  %v760_v43 = vpack.c.bf16 %v396_v40, %v389_v37  ;;  %v388_v44 = vld [vmem:[%s9392_s1 + $0x160] sm:$0xff]  ;;  %v395_v45 = vld [vmem:[%s9392_s1 + $0x198] sm:$0xff]  ;;  %v401_v46 = vld [vmem:[%s9392_s1 + $0x1c8] sm:$0xff]  ;;  %v757_v50 = vpack.c.bf16 %v393_v42, %v386_v41  ;;  %s6587_s14 = smul.u32 1232, %s7290_s21 }
  0x11   : > { %v408_v47 = vld [vmem:[%s9392_s1 + $0x200] sm:$0xff]  ;;  %v403_v48 = vld [vmem:[%s9392_s1 + $0x1d8] sm:$0xff]  ;;  %v410_v49 = vld [vmem:[%s9392_s1 + $0x210] sm:$0xff]  ;;  %v759_v51 = vpack.c.bf16 %v395_v45, %v388_v44  ;;  %s6588_s6 = smul.u32 56, %s9399_s5 }
  0x12   : > { %1790 = vmatpush1.bf16.msra.mxu0 %v750_v34  ;;  %v765_v52 = vpack.c.bf16 %v408_v47, %v401_v46  ;;  %v400_v53 = vld [vmem:[%s9392_s1 + $0x1c0] sm:$0xff]  ;;  %v407_v54 = vld [vmem:[%s9392_s1 + $0x1f8] sm:$0xff]  ;;  %v402_v55 = vld [vmem:[%s9392_s1 + $0x1d0] sm:$0xff]  ;;  %v767_v56 = vpack.c.bf16 %v410_v49, %v403_v48  ;;  %s7350_s13 = scalar_lea.vmem %s9391_s0, %s6587_s14 }
  0x13   : > { %2632 = vmatpush1.bf16.msra.mxu1 %v752_v38  ;;  %1791 = vmatprep.subr.bf16.mxu0 %v758_v39  ;;  %v409_v57 = vld [vmem:[%s9392_s1 + $0x208] sm:$0xff]  ;;  %v415_v58 = vld [vmem:[%s9392_s1 + $0x238] sm:$0xff]  ;;  %v422_v59 = vld [vmem:[%s9392_s1 + $0x270] sm:$0xff]  ;;  %v764_v62 = vpack.c.bf16 %v407_v54, %v400_v53  ;;  %s8251_s8 = scalar_lea.vmem %s9393_s2, %s6588_s6 }
  0x14   : > { %2633 = vmatprep.subr.bf16.mxu1 %v760_v43  ;;  %v417_v60 = vld [vmem:[%s9392_s1 + $0x248] sm:$0xff]  ;;  %v424_v61 = vld [vmem:[%s9392_s1 + $0x280] sm:$0xff]  ;;  %v766_v63 = vpack.c.bf16 %v409_v57, %v402_v55  ;;  %v772_v0 = vpack.c.bf16 %v422_v59, %v415_v58  ;;  %v414_v1 = vld [vmem:[%s9392_s1 + $0x230] sm:$0xff] }
  0x15   : > { %v421_v2 = vld [vmem:[%s9392_s1 + $0x268] sm:$0xff]  ;;  %v416_v3 = vld [vmem:[%s9392_s1 + $0x240] sm:$0xff]  ;;  %v774_v4 = vpack.c.bf16 %v424_v61, %v417_v60  ;;  %v423_v5 = vld [vmem:[%s9392_s1 + $0x278] sm:$0xff] }
  0x16   : > { %1792 = vmatpush1.bf16.msra.mxu0 %v757_v50  ;;  %v429_v6 = vld [vmem:[%s9392_s1 + $0x2a8] sm:$0xff]  ;;  %v436_v7 = vld [vmem:[%s9392_s1 + $0x2e0] sm:$0xff]  ;;  %v431_v8 = vld [vmem:[%s9392_s1 + $0x2b8] sm:$0xff]  ;;  %v771_v10 = vpack.c.bf16 %v421_v2, %v414_v1  ;;  %v773_v11 = vpack.c.bf16 %v423_v5, %v416_v3 }
  0x17   : > { %2634 = vmatpush1.bf16.msra.mxu1 %v759_v51  ;;  %1793 = vmatprep.subr.bf16.mxu0 %v765_v52  ;;  %v438_v9 = vld [vmem:[%s9392_s1 + $0x2f0] sm:$0xff]  ;;  %v779_v12 = vpack.c.bf16 %v436_v7, %v429_v6  ;;  %v428_v13 = vld [vmem:[%s9392_s1 + $0x2a0] sm:$0xff]  ;;  %v435_v14 = vld [vmem:[%s9392_s1 + $0x2d8] sm:$0xff] }
  0x18   : > { %2635 = vmatprep.subr.bf16.mxu1 %v767_v56  ;;  %v430_v15 = vld [vmem:[%s9392_s1 + $0x2b0] sm:$0xff]  ;;  %v781_v16 = vpack.c.bf16 %v438_v9, %v431_v8  ;;  %v437_v17 = vld [vmem:[%s9392_s1 + $0x2e8] sm:$0xff]  ;;  %v443_v18 = vld [vmem:[%s9392_s1 + $0x318] sm:$0xff]  ;;  %v778_v22 = vpack.c.bf16 %v435_v14, %v428_v13 }
  0x19   : > { %v450_v19 = vld [vmem:[%s9392_s1 + $0x350] sm:$0xff]  ;;  %v445_v20 = vld [vmem:[%s9392_s1 + $0x328] sm:$0xff]  ;;  %v452_v21 = vld [vmem:[%s9392_s1 + $0x360] sm:$0xff]  ;;  %v780_v23 = vpack.c.bf16 %v437_v17, %v430_v15 }
  0x1a   : > { %1794 = vmatpush1.bf16.msra.mxu0 %v764_v62  ;;  %v786_v24 = vpack.c.bf16 %v450_v19, %v443_v18  ;;  %v442_v25 = vld [vmem:[%s9392_s1 + $0x310] sm:$0xff]  ;;  %v449_v26 = vld [vmem:[%s9392_s1 + $0x348] sm:$0xff]  ;;  %v444_v27 = vld [vmem:[%s9392_s1 + $0x320] sm:$0xff]  ;;  %v788_v28 = vpack.c.bf16 %v452_v21, %v445_v20 }
  0x1b   : > { %2636 = vmatpush1.bf16.msra.mxu1 %v766_v63  ;;  %1795 = vmatprep.subr.bf16.mxu0 %v772_v0  ;;  %v451_v29 = vld [vmem:[%s9392_s1 + $0x358] sm:$0xff]  ;;  %v457_v30 = vld [vmem:[%s9392_s1 + $0x388] sm:$0xff]  ;;  %v464_v31 = vld [vmem:[%s9392_s1 + $0x3c0] sm:$0xff]  ;;  %v785_v34 = vpack.c.bf16 %v449_v26, %v442_v25 }
  0x1c   : > { %2637 = vmatprep.subr.bf16.mxu1 %v774_v4  ;;  %v459_v32 = vld [vmem:[%s9392_s1 + $0x398] sm:$0xff]  ;;  %v466_v33 = vld [vmem:[%s9392_s1 + $0x3d0] sm:$0xff]  ;;  %v787_v35 = vpack.c.bf16 %v451_v29, %v444_v27  ;;  %v793_v36 = vpack.c.bf16 %v464_v31, %v457_v30  ;;  %v456_v37 = vld [vmem:[%s9392_s1 + $0x380] sm:$0xff] }
  0x1d   : > { %v463_v38 = vld [vmem:[%s9392_s1 + $0x3b8] sm:$0xff]  ;;  %v458_v39 = vld [vmem:[%s9392_s1 + $0x390] sm:$0xff]  ;;  %v795_v40 = vpack.c.bf16 %v466_v33, %v459_v32  ;;  %v465_v41 = vld [vmem:[%s9392_s1 + $0x3c8] sm:$0xff] }
  0x1e   : > { %1796 = vmatpush1.bf16.msra.mxu0 %v771_v10  ;;  %v471_v42 = vld [vmem:[%s9392_s1 + $0x3f8] sm:$0xff]  ;;  %v478_v43 = vld [vmem:[%s9392_s1 + $0x430] sm:$0xff]  ;;  %v473_v44 = vld [vmem:[%s9392_s1 + $0x408] sm:$0xff]  ;;  %v792_v46 = vpack.c.bf16 %v463_v38, %v456_v37  ;;  %v794_v47 = vpack.c.bf16 %v465_v41, %v458_v39 }
  0x1f   : > { %2638 = vmatpush1.bf16.msra.mxu1 %v773_v11  ;;  %1797 = vmatprep.subr.bf16.mxu0 %v779_v12  ;;  %v480_v45 = vld [vmem:[%s9392_s1 + $0x440] sm:$0xff]  ;;  %v800_v48 = vpack.c.bf16 %v478_v43, %v471_v42  ;;  %v470_v49 = vld [vmem:[%s9392_s1 + $0x3f0] sm:$0xff]  ;;  %v477_v50 = vld [vmem:[%s9392_s1 + $0x428] sm:$0xff] }
  0x20   : > { %2639 = vmatprep.subr.bf16.mxu1 %v781_v16  ;;  %v472_v51 = vld [vmem:[%s9392_s1 + $0x400] sm:$0xff]  ;;  %v802_v52 = vpack.c.bf16 %v480_v45, %v473_v44  ;;  %v479_v53 = vld [vmem:[%s9392_s1 + $0x438] sm:$0xff]  ;;  %v485_v54 = vld [vmem:[%s9392_s1 + $0x468] sm:$0xff]  ;;  %v799_v58 = vpack.c.bf16 %v477_v50, %v470_v49 }
  0x21   : > { %v492_v55 = vld [vmem:[%s9392_s1 + $0x4a0] sm:$0xff]  ;;  %v487_v56 = vld [vmem:[%s9392_s1 + $0x478] sm:$0xff]  ;;  %v494_v57 = vld [vmem:[%s9392_s1 + $0x4b0] sm:$0xff]  ;;  %v801_v59 = vpack.c.bf16 %v479_v53, %v472_v51 }
  0x22   : > { %1798 = vmatpush1.bf16.msra.mxu0 %v778_v22  ;;  %v807_v60 = vpack.c.bf16 %v492_v55, %v485_v54  ;;  %v484_v61 = vld [vmem:[%s9392_s1 + $0x460] sm:$0xff]  ;;  %v491_v62 = vld [vmem:[%s9392_s1 + $0x498] sm:$0xff]  ;;  %v486_v63 = vld [vmem:[%s9392_s1 + $0x470] sm:$0xff]  ;;  %v809_v0 = vpack.c.bf16 %v494_v57, %v487_v56 }
  0x23   : > { %2640 = vmatpush1.bf16.msra.mxu1 %v780_v23  ;;  %1799 = vmatprep.subr.bf16.mxu0 %v786_v24  ;;  %v493_v1 = vld [vmem:[%s9392_s1 + $0x4a8] sm:$0xff]  ;;  %v499_v2 = vld [vmem:[%s9392_s1 + $0x4d8] sm:$0xff]  ;;  %v506_v3 = vld [vmem:[%s9392_s1 + $0x510] sm:$0xff]  ;;  %v806_v6 = vpack.c.bf16 %v491_v62, %v484_v61 }
  0x24   : > { %2641 = vmatprep.subr.bf16.mxu1 %v788_v28  ;;  %v501_v4 = vld [vmem:[%s9392_s1 + $0x4e8] sm:$0xff]  ;;  %v508_v5 = vld [vmem:[%s9392_s1 + $0x520] sm:$0xff]  ;;  %v498_v7 = vld [vmem:[%s9392_s1 + $0x4d0] sm:$0xff]  ;;  %v808_v9 = vpack.c.bf16 %v493_v1, %v486_v63  ;;  %v814_v10 = vpack.c.bf16 %v506_v3, %v499_v2 }
  0x25   : > { %v505_v8 = vld [vmem:[%s9392_s1 + $0x508] sm:$0xff]  ;;  %v500_v11 = vld [vmem:[%s9392_s1 + $0x4e0] sm:$0xff]  ;;  %v507_v12 = vld [vmem:[%s9392_s1 + $0x518] sm:$0xff]  ;;  %v816_v14 = vpack.c.bf16 %v508_v5, %v501_v4 }
  0x26   : > { %1800 = vmatpush1.bf16.msra.mxu0 %v785_v34  ;;  %v513_v13 = vld [vmem:[%s9392_s1 + $0x548] sm:$0xff]  ;;  %v520_v15 = vld [vmem:[%s9392_s1 + $0x580] sm:$0xff]  ;;  %v515_v16 = vld [vmem:[%s9392_s1 + $0x558] sm:$0xff]  ;;  %v813_v19 = vpack.c.bf16 %v505_v8, %v498_v7  ;;  %v815_v22 = vpack.c.bf16 %v507_v12, %v500_v11 }
  0x27   : > { %2642 = vmatpush1.bf16.msra.mxu1 %v787_v35  ;;  %1801 = vmatprep.subr.bf16.mxu0 %v793_v36  ;;  %v522_v17 = vld [vmem:[%s9392_s1 + $0x590] sm:$0xff]  ;;  %v512_v20 = vld [vmem:[%s9392_s1 + $0x540] sm:$0xff]  ;;  %v519_v21 = vld [vmem:[%s9392_s1 + $0x578] sm:$0xff]  ;;  %v821_v23 = vpack.c.bf16 %v520_v15, %v513_v13 }
  0x28   : > { %2643 = vmatprep.subr.bf16.mxu1 %v795_v40  ;;  %v6614_v18 = vld [vmem:[%s7350_s13 + $0x4] ss:$16 sps:$4 sm:$0xff]   ;;  %v521_v25 = vld [vmem:[%s9392_s1 + $0x588] sm:$0xff]  ;;  %v527_v26 = vld [vmem:[%s9392_s1 + $0x5b8] sm:$0xff]  ;;  %v823_v27 = vpack.c.bf16 %v522_v17, %v515_v16  ;;  %v820_v32 = vpack.c.bf16 %v519_v21, %v512_v20 }
  0x29   : > { %v514_v24 = vld [vmem:[%s9392_s1 + $0x550] sm:$0xff]  ;;  %v529_v29 = vld [vmem:[%s9392_s1 + $0x5c8] sm:$0xff]  ;;  %1817 = vmatprep.mubr.bf16.mxu0 %v6614_v18  ;;  %v536_v30 = vld [vmem:[%s9392_s1 + $0x600] sm:$0xff]  ;;  %2659 = vmatprep.mubr.bf16.mxu1 %v6614_v18 }
  0x2a   : > { %1802 = vmatpush1.bf16.msra.mxu0 %v792_v46  ;;  %v534_v28 = vld [vmem:[%s9392_s1 + $0x5f0] sm:$0xff]  ;;  %v533_v33 = vld [vmem:[%s9392_s1 + $0x5e8] sm:$0xff]  ;;  %v822_v34 = vpack.c.bf16 %v521_v25, %v514_v24  ;;  %v528_v36 = vld [vmem:[%s9392_s1 + $0x5c0] sm:$0xff]  ;;  %v830_v37 = vpack.c.bf16 %v536_v30, %v529_v29 }
  0x2b   : > { %2644 = vmatpush1.bf16.msra.mxu1 %v794_v47  ;;  %1803 = vmatprep.subr.bf16.mxu0 %v800_v48  ;;  %v526_v31 = vld [vmem:[%s9392_s1 + $0x5b0] sm:$0xff]  ;;  %v828_v35 = vpack.c.bf16 %v534_v28, %v527_v26  ;;  %v535_v38 = vld [vmem:[%s9392_s1 + $0x5f8] sm:$0xff]  ;;  %v541_v39 = vld [vmem:[%s9392_s1 + $0x628] sm:$0xff] }
  0x2c   : > { %2645 = vmatprep.subr.bf16.mxu1 %v802_v52  ;;  %v548_v40 = vld [vmem:[%s9392_s1 + $0x660] sm:$0xff]  ;;  %v543_v41 = vld [vmem:[%s9392_s1 + $0x638] sm:$0xff]  ;;  %v550_v42 = vld [vmem:[%s9392_s1 + $0x670] sm:$0xff]  ;;  %v827_v43 = vpack.c.bf16 %v533_v33, %v526_v31  ;;  %v829_v47 = vpack.c.bf16 %v535_v38, %v528_v36 }
  0x2d   : > { %v540_v44 = vld [vmem:[%s9392_s1 + $0x620] sm:$0xff]  ;;  %v547_v45 = vld [vmem:[%s9392_s1 + $0x658] sm:$0xff]  ;;  %v542_v46 = vld [vmem:[%s9392_s1 + $0x630] sm:$0xff]  ;;  %v835_v48 = vpack.c.bf16 %v548_v40, %v541_v39  ;;  %v837_v50 = vpack.c.bf16 %v550_v42, %v543_v41 }
  0x2e   : > { %1804 = vmatpush1.bf16.msra.mxu0 %v799_v58  ;;  %v549_v49 = vld [vmem:[%s9392_s1 + $0x668] sm:$0xff]  ;;  %v555_v51 = vld [vmem:[%s9392_s1 + $0x698] sm:$0xff]  ;;  %v562_v52 = vld [vmem:[%s9392_s1 + $0x6d0] sm:$0xff]  ;;  %v834_v55 = vpack.c.bf16 %v547_v45, %v540_v44 }
  0x2f   : > { %2646 = vmatpush1.bf16.msra.mxu1 %v801_v59  ;;  %1805 = vmatprep.subr.bf16.mxu0 %v807_v60  ;;  %v557_v53 = vld [vmem:[%s9392_s1 + $0x6a8] sm:$0xff]  ;;  %v564_v54 = vld [vmem:[%s9392_s1 + $0x6e0] sm:$0xff]  ;;  %v836_v56 = vpack.c.bf16 %v549_v49, %v542_v46  ;;  %v842_v57 = vpack.c.bf16 %v562_v52, %v555_v51  ;;  %v554_v58 = vld [vmem:[%s9392_s1 + $0x690] sm:$0xff] }
  0x30   : > { %2647 = vmatprep.subr.bf16.mxu1 %v809_v0  ;;  %v561_v59 = vld [vmem:[%s9392_s1 + $0x6c8] sm:$0xff]  ;;  %v556_v60 = vld [vmem:[%s9392_s1 + $0x6a0] sm:$0xff]  ;;  %v844_v61 = vpack.c.bf16 %v564_v54, %v557_v53  ;;  %v563_v62 = vld [vmem:[%s9392_s1 + $0x6d8] sm:$0xff] }
  0x31   : > { %v569_v63 = vld [vmem:[%s9392_s1 + $0x708] sm:$0xff]  ;;  %v576_v0 = vld [vmem:[%s9392_s1 + $0x740] sm:$0xff]  ;;  %v571_v1 = vld [vmem:[%s9392_s1 + $0x718] sm:$0xff]  ;;  %v841_v4 = vpack.c.bf16 %v561_v59, %v554_v58 }
  0x32   : > { %1806 = vmatpush1.bf16.msra.mxu0 %v806_v6  ;;  %v578_v2 = vld [vmem:[%s9392_s1 + $0x750] sm:$0xff]  ;;  %v568_v3 = vld [vmem:[%s9392_s1 + $0x700] sm:$0xff]  ;;  %v575_v5 = vld [vmem:[%s9392_s1 + $0x738] sm:$0xff]  ;;  %v843_v6 = vpack.c.bf16 %v563_v62, %v556_v60  ;;  %v849_v8 = vpack.c.bf16 %v576_v0, %v569_v63 }
  0x33   : > { %2648 = vmatpush1.bf16.msra.mxu1 %v808_v9  ;;  %1807 = vmatprep.subr.bf16.mxu0 %v814_v10  ;;  %v6616_v7 = vld [vmem:[%s7350_s13] ss:$16 sps:$4 sm:$0xff]   ;;  %v851_v10 = vpack.c.bf16 %v578_v2, %v571_v1  ;;  %v577_v11 = vld [vmem:[%s9392_s1 + $0x748] sm:$0xff]  ;;  %v583_v12 = vld [vmem:[%s9392_s1 + $0x778] sm:$0xff]  ;;  %v848_v16 = vpack.c.bf16 %v575_v5, %v568_v3 }
  0x34   : > { %2649 = vmatprep.subr.bf16.mxu1 %v816_v14  ;;  %v570_v9 = vld [vmem:[%s9392_s1 + $0x710] sm:$0xff]  ;;  %v585_v15 = vld [vmem:[%s9392_s1 + $0x788] sm:$0xff]  ;;  %v592_v17 = vld [vmem:[%s9392_s1 + $0x7c0] sm:$0xff] }
  0x35   : > { %v6617_v13 = vld [vmem:[%s7350_s13 + $0x24] ss:$16 sps:$4 sm:$0xff]   ;;  %v850_v20 = vpack.c.bf16 %v577_v11, %v570_v9  ;;  %v597_v24 = vld [vmem:[%s9392_s1 + $0x7e8] sm:$0xff]  ;;  %v858_v26 = vpack.c.bf16 %v592_v17, %v585_v15  ;;  %v6619_v31 = vld [vmem:[%s7350_s13 + $0x20] ss:$16 sps:$4 sm:$0xff]  }
  0x36   : > { %1808 = vmatpush1.bf16.msra.mxu0 %v813_v19  ;;  %v590_v14 = vld [vmem:[%s9392_s1 + $0x7b0] sm:$0xff]  ;;  %v589_v19 = vld [vmem:[%s9392_s1 + $0x7a8] sm:$0xff]  ;;  %v584_v21 = vld [vmem:[%s9392_s1 + $0x780] sm:$0xff] }
  0x37   : > { %2650 = vmatpush1.bf16.msra.mxu1 %v815_v22  ;;  %1809 = vmatprep.subr.bf16.mxu0 %v821_v23  ;;  %v582_v18 = vld [vmem:[%s9392_s1 + $0x770] sm:$0xff]  ;;  %v856_v22 = vpack.c.bf16 %v590_v14, %v583_v12  ;;  %v591_v23 = vld [vmem:[%s9392_s1 + $0x7b8] sm:$0xff]  ;;  %v604_v25 = vld [vmem:[%s9392_s1 + $0x820] sm:$0xff] }
  0x38   : > { %2651 = vmatprep.subr.bf16.mxu1 %v823_v27  ;;  %v599_v27 = vld [vmem:[%s9392_s1 + $0x7f8] sm:$0xff]  ;;  %v606_v28 = vld [vmem:[%s9392_s1 + $0x830] sm:$0xff]  ;;  %v855_v29 = vpack.c.bf16 %v589_v19, %v582_v18  ;;  %v596_v30 = vld [vmem:[%s9392_s1 + $0x7e0] sm:$0xff]  ;;  %v863_v33 = vpack.c.bf16 %v604_v25, %v597_v24 }
  0x39   : > { %v598_v36 = vld [vmem:[%s9392_s1 + $0x7f0] sm:$0xff]  ;;  %v611_v38 = vld [vmem:[%s9392_s1 + $0x858] sm:$0xff]  ;;  %v613_v41 = vld [vmem:[%s9392_s1 + $0x868] sm:$0xff] }
  0x3a   : > { %1810 = vmatpush1.bf16.msra.mxu0 %v820_v32  ;;  %v857_v32 = vpack.c.bf16 %v591_v23, %v584_v21  ;;  %v618_v39 = vld [vmem:[%s9392_s1 + $0x890] sm:$0xff]  ;;  %v620_v42 = vld [vmem:[%s9392_s1 + $0x8a0] sm:$0xff]  ;;  %v617_v45 = vld [vmem:[%s9392_s1 + $0x888] sm:$0xff] }
  0x3b   : > { %2652 = vmatpush1.bf16.msra.mxu1 %v822_v34  ;;  %1811 = vmatprep.subr.bf16.mxu0 %v828_v35  ;;  %v603_v34 = vld [vmem:[%s9392_s1 + $0x818] sm:$0xff]  ;;  %v865_v35 = vpack.c.bf16 %v606_v28, %v599_v27  ;;  %v6620_v40 = vld [vmem:[%s7350_s13 + $0x44] ss:$16 sps:$4 sm:$0xff]   ;;  %v872_v51 = vpack.c.bf16 %v620_v42, %v613_v41  ;;  %v633_v63 = vld [vmem:[%s9392_s1 + $0x908] sm:$0xff] }
  0x3c   : > { %2653 = vmatprep.subr.bf16.mxu1 %v830_v37  ;;  %v605_v37 = vld [vmem:[%s9392_s1 + $0x828] sm:$0xff]  ;;  %v610_v44 = vld [vmem:[%s9392_s1 + $0x850] sm:$0xff]  ;;  %v612_v46 = vld [vmem:[%s9392_s1 + $0x860] sm:$0xff] }
  0x3d   : > { %v619_v49 = vld [vmem:[%s9392_s1 + $0x898] sm:$0xff]  ;;  %v632_v52 = vld [vmem:[%s9392_s1 + $0x900] sm:$0xff]  ;;  %v634_v54 = vld [vmem:[%s9392_s1 + $0x910] sm:$0xff] }
  0x3e   : > { %1812 = vmatpush1.bf16.msra.mxu0 %v827_v43  ;;  %v862_v43 = vpack.c.bf16 %v603_v34, %v596_v30  ;;  %v627_v53 = vld [vmem:[%s9392_s1 + $0x8d8] sm:$0xff]  ;;  %v624_v59 = vld [vmem:[%s9392_s1 + $0x8c0] sm:$0xff]  ;;  %v646_v1 = vld [vmem:[%s9392_s1 + $0x970] sm:$0xff] }
  0x3f   : > { %2654 = vmatpush1.bf16.msra.mxu1 %v829_v47  ;;  %1813 = vmatprep.subr.bf16.mxu0 %v835_v48  ;;  %v864_v47 = vpack.c.bf16 %v605_v37, %v598_v36  ;;  %v870_v48 = vpack.c.bf16 %v618_v39, %v611_v38  ;;  %v631_v60 = vld [vmem:[%s9392_s1 + $0x8f8] sm:$0xff]  ;;  %v879_v62 = vpack.c.bf16 %v634_v54, %v627_v53  ;;  %v6623_v2 = vld [vmem:[%s7350_s13 + $0x64] ss:$16 sps:$4 sm:$0xff]   ;;  %v641_v3 = vld [vmem:[%s9392_s1 + $0x948] sm:$0xff] }
  0x40   : > { %2655 = vmatprep.subr.bf16.mxu1 %v837_v50  ;;  %v625_v50 = vld [vmem:[%s9392_s1 + $0x8c8] sm:$0xff]  ;;  %v639_v0 = vld [vmem:[%s9392_s1 + $0x938] sm:$0xff]  ;;  %v876_v5 = vpack.c.bf16 %v631_v60, %v624_v59  ;;  %v640_v11 = vld [vmem:[%s9392_s1 + $0x940] sm:$0xff] }
  0x41   : > { %v877_v58 = vpack.c.bf16 %v632_v52, %v625_v50  ;;  %v645_v9 = vld [vmem:[%s9392_s1 + $0x968] sm:$0xff]  ;;  %v647_v12 = vld [vmem:[%s9392_s1 + $0x978] sm:$0xff]  ;;  %v6626_v15 = vld [vmem:[%s7350_s13 + $0x84] ss:$16 sps:$4 sm:$0xff]  }
  0x42   : > { %1814 = vmatpush1.bf16.msra.mxu0 %v834_v55  ;;  %v6622_v55 = vld [vmem:[%s7350_s13 + $0x40] ss:$16 sps:$4 sm:$0xff]   ;;  %v653_v17 = vld [vmem:[%s9392_s1 + $0x9a8] sm:$0xff]  ;;  %v655_v19 = vld [vmem:[%s9392_s1 + $0x9b8] sm:$0xff] }
  0x43   : > { %2656 = vmatpush1.bf16.msra.mxu1 %v836_v56  ;;  %1815 = vmatprep.subr.bf16.mxu0 %v842_v57  ;;  %v869_v56 = vpack.c.bf16 %v617_v45, %v610_v44  ;;  %v871_v57 = vpack.c.bf16 %v619_v49, %v612_v46  ;;  %v660_v18 = vld [vmem:[%s9392_s1 + $0x9e0] sm:$0xff]  ;;  %v662_v21 = vld [vmem:[%s9392_s1 + $0x9f0] sm:$0xff]  ;;  %v659_v23 = vld [vmem:[%s9392_s1 + $0x9d8] sm:$0xff] }
  0x44   : > { %2657 = vmatprep.subr.bf16.mxu1 %v844_v61  ;;  %v626_v61 = vld [vmem:[%s9392_s1 + $0x8d0] sm:$0xff]  ;;  %v893_v25 = vpack.c.bf16 %v662_v21, %v655_v19  ;;  %v661_v28 = vld [vmem:[%s9392_s1 + $0x9e8] sm:$0xff]  ;;  %v668_v44 = vld [vmem:[%s9392_s1 + $0xa20] sm:$0xff] }
  0x45   : > { %v6628_v24 = vld [vmem:[%s7350_s13 + $0x80] ss:$16 sps:$4 sm:$0xff]   ;;  %v6635_v34 = vld [vmem:[%s7350_s13 + $0xe4] ss:$16 sps:$4 sm:$0xff]   ;;  %v669_v37 = vld [vmem:[%s9392_s1 + $0xa28] sm:$0xff] }
  0x46   : > { %1816 = vmatpush1.bf16.msra.mxu0 %v841_v4  ;;  %v648_v4 = vld [vmem:[%s9392_s1 + $0x980] sm:$0xff]  ;;  %v654_v27 = vld [vmem:[%s9392_s1 + $0x9b0] sm:$0xff]  ;;  %v675_v45 = vld [vmem:[%s9392_s1 + $0xa58] sm:$0xff] }
  0x47   : > { %2658 = vmatpush1.bf16.msra.mxu1 %v843_v6  ;;  %2206 = vmatprep.subr.bf16.mxu0 %v849_v8  ;;  %v878_v6 = vpack.c.bf16 %v633_v63, %v626_v61  ;;  %v638_v8 = vld [vmem:[%s9392_s1 + $0x930] sm:$0xff]  ;;  %v892_v30 = vpack.c.bf16 %v661_v28, %v654_v27  ;;  %v680_v60 = vld [vmem:[%s9392_s1 + $0xa80] sm:$0xff]  ;;  %v703_v19 = vld [vmem:[%s9392_s1 + $0xb38] sm:$0xff] }
  0x48   : > { %3048 = vmatprep.subr.bf16.mxu1 %v851_v10  ;;  %v886_v10 = vpack.c.bf16 %v648_v4, %v641_v3  ;;  %v883_v14 = vpack.c.bf16 %v645_v9, %v638_v8  ;;  %v674_v36 = vld [vmem:[%s9392_s1 + $0xa50] sm:$0xff]  ;;  %v695_v9 = vld [vmem:[%s9392_s1 + $0xaf8] sm:$0xff]  ;;  %v709_v27 = vld [vmem:[%s9392_s1 + $0xb68] sm:$0xff] }
  0x49   : > { %1818 = vmatmul.mubr.bf16.vlgmr.msra.gmra.mrb[0].mxu0 %v6616_v7  ;;  %v6637_v38 = vld [vmem:[%s7350_s13 + $0xe0] ss:$16 sps:$4 sm:$0xff]   ;;  %v6638_v46 = vld [vmem:[%s7350_s13 + $0x104] ss:$16 sps:$4 sm:$0xff]  }
  0x4a   : > { %2660 = vmatmul.mubr.bf16.vlgmr.msra.gmra.mrb[0].mxu1 %v6616_v7  ;;  %2207 = vmatpush1.bf16.msra.mxu0 %v848_v16  ;;  %v884_v7 = vpack.c.bf16 %v646_v1, %v639_v0  ;;  %v885_v16 = vpack.c.bf16 %v647_v12, %v640_v11  ;;  %v666_v41 = vld [vmem:[%s9392_s1 + $0xa10] sm:$0xff]  ;;  %v689_v0 = vld [vmem:[%s9392_s1 + $0xac8] sm:$0xff]  ;;  %v716_v28 = vld [vmem:[%s9392_s1 + $0xba0] sm:$0xff] }
  0x4b   : > { %3049 = vmatpush1.bf16.msra.mxu1 %v850_v20  ;;  %1827 = vmatprep.mubr.bf16.mxu0 %v6617_v13  ;;  %v891_v20 = vpack.c.bf16 %v660_v18, %v653_v17  ;;  %v6640_v49 = vld [vmem:[%s7350_s13 + $0x100] ss:$16 sps:$4 sm:$0xff]   ;;  %v6641_v50 = vld [vmem:[%s7350_s13 + $0x124] ss:$16 sps:$4 sm:$0xff]   ;;  %v697_v11 = vld [vmem:[%s9392_s1 + $0xb08] sm:$0xff] }
  0x4c   : > { %2669 = vmatprep.mubr.bf16.mxu1 %v6617_v13  ;;  %2208 = vmatprep.subr.bf16.mxu0 %v856_v22  ;;  %v6625_v13 = vld [vmem:[%s7350_s13 + $0x60] ss:$16 sps:$4 sm:$0xff]   ;;  %v6644_v52 = vld [vmem:[%s7350_s13 + $0x144] ss:$16 sps:$4 sm:$0xff]  }
  0x4d   : > { %3050 = vmatprep.subr.bf16.mxu1 %v858_v26  ;;  %v652_v22 = vld [vmem:[%s9392_s1 + $0x9a0] sm:$0xff]  ;;  %v690_v59 = vld [vmem:[%s9392_s1 + $0xad0] sm:$0xff] }
  0x4e   : > { %2209 = vmatpush1.bf16.msra.mxu0 %v855_v29  ;;  %v890_v26 = vpack.c.bf16 %v659_v23, %v652_v22  ;;  %v6629_v29 = vld [vmem:[%s7350_s13 + $0xa4] ss:$16 sps:$4 sm:$0xff]   ;;  %v6646_v53 = vld [vmem:[%s7350_s13 + $0x140] ss:$16 sps:$4 sm:$0xff]  }
  0x4f   : > { %3051 = vmatpush1.bf16.msra.mxu1 %v857_v32  ;;  %2210 = vmatprep.subr.bf16.mxu0 %v863_v33  ;;  %v6632_v32 = vld [vmem:[%s7350_s13 + $0xc4] ss:$16 sps:$4 sm:$0xff]   ;;  %v6634_v33 = vld [vmem:[%s7350_s13 + $0xc0] ss:$16 sps:$4 sm:$0xff]  }
  0x50   : > { %3052 = vmatprep.subr.bf16.mxu1 %v865_v35  ;;  %v667_v35 = vld [vmem:[%s9392_s1 + $0xa18] sm:$0xff]  ;;  %v6647_v54 = vld [vmem:[%s7350_s13 + $0x164] ss:$16 sps:$4 sm:$0xff]   ;;  %v6649_v3 = vld [vmem:[%s7350_s13 + $0x160] ss:$16 sps:$4 sm:$0xff]  }
  0x51   : > { %1828 = vmatmul.mubr.bf16.gmra.mrb[4].mxu0 %v6619_v31  ;;  %v898_v39 = vpack.c.bf16 %v674_v36, %v667_v35  ;;  %v682_v63 = vld [vmem:[%s9392_s1 + $0xa90] sm:$0xff]  ;;  %v696_v18 = vld [vmem:[%s9392_s1 + $0xb00] sm:$0xff] }
  0x52   : > { %2670 = vmatmul.mubr.bf16.gmra.mrb[4].mxu1 %v6619_v31  ;;  %1837 = vmatprep.mubr.bf16.mxu0 %v6620_v40  ;;  %v6631_v31 = vld [vmem:[%s7350_s13 + $0xa0] ss:$16 sps:$4 sm:$0xff]   ;;  %v6650_v4 = vld [vmem:[%s7350_s13 + $0x184] ss:$16 sps:$4 sm:$0xff]   ;;  %v913_v21 = vpack.c.bf16 %v703_v19, %v696_v18 }
  0x53   : > { %2679 = vmatprep.mubr.bf16.mxu1 %v6620_v40  ;;  %2211 = vmatpush1.bf16.msra.mxu0 %v862_v43  ;;  %v676_v40 = vld [vmem:[%s9392_s1 + $0xa60] sm:$0xff]  ;;  %v673_v43 = vld [vmem:[%s9392_s1 + $0xa48] sm:$0xff]  ;;  %v710_v36 = vld [vmem:[%s9392_s1 + $0xb70] sm:$0xff] }
  0x54   : > { %3053 = vmatpush1.bf16.msra.mxu1 %v864_v47  ;;  %2212 = vmatprep.subr.bf16.mxu0 %v870_v48  ;;  %v900_v42 = vpack.c.bf16 %v676_v40, %v669_v37  ;;  %v897_v47 = vpack.c.bf16 %v673_v43, %v666_v41  ;;  %v899_v48 = vpack.c.bf16 %v675_v45, %v668_v44  ;;  %v6656_v8 = vld [vmem:[%s7350_s13 + $0x1c4] ss:$16 sps:$4 sm:$0xff]   ;;  %v6661_v23 = vld [vmem:[%s7350_s13 + $0x1e0] ss:$16 sps:$4 sm:$0xff]   ;;  %v717_v37 = vld [vmem:[%s9392_s1 + $0xba8] sm:$0xff] }
  0x55   : > { %3054 = vmatprep.subr.bf16.mxu1 %v872_v51  ;;  %v6643_v51 = vld [vmem:[%s7350_s13 + $0x120] ss:$16 sps:$4 sm:$0xff]   ;;  %v6659_v22 = vld [vmem:[%s7350_s13 + $0x1e4] ss:$16 sps:$4 sm:$0xff]   ;;  %v723_v45 = vld [vmem:[%s9392_s1 + $0xbd8] sm:$0xff] }
  0x56   : > { %v6668_v40 = vld [vmem:[%s7350_s13 + $0x244] ss:$16 sps:$4 sm:$0xff]   ;;  %v6670_v41 = vld [vmem:[%s7350_s13 + $0x240] ss:$16 sps:$4 sm:$0xff]  }
  0x57   : > { %2213 = vmatpush1.bf16.msra.mxu0 %v869_v56  ;;  %v688_v56 = vld [vmem:[%s9392_s1 + $0xac0] sm:$0xff] }
  0x58   : > { %3055 = vmatpush1.bf16.msra.mxu1 %v871_v57  ;;  %2214 = vmatprep.subr.bf16.mxu0 %v877_v58  ;;  %v683_v58 = vld [vmem:[%s9392_s1 + $0xa98] sm:$0xff]  ;;  %v6673_v43 = vld [vmem:[%s7350_s13 + $0x260] ss:$16 sps:$4 sm:$0xff]   ;;  %v6674_v44 = vld [vmem:[%s7350_s13 + $0x284] ss:$16 sps:$4 sm:$0xff]  }
  0x59   : > { %1838 = vmatmul.mubr.bf16.gmra.mrb[8].mxu0 %v6622_v55  ;;  %3056 = vmatprep.subr.bf16.mxu1 %v879_v62  ;;  %v907_v61 = vpack.c.bf16 %v690_v59, %v683_v58  ;;  %v687_v62 = vld [vmem:[%s9392_s1 + $0xab8] sm:$0xff]  ;;  %v6677_v58 = vld [vmem:[%s7350_s13 + $0x2a4] ss:$16 sps:$4 sm:$0xff]   ;;  %v6679_v59 = vld [vmem:[%s7350_s13 + $0x2a0] ss:$16 sps:$4 sm:$0xff]  }
  0x5a   : > { %2680 = vmatmul.mubr.bf16.gmra.mrb[8].mxu1 %v6622_v55  ;;  %1847 = vmatprep.mubr.bf16.mxu0 %v6623_v2  ;;  %v681_v55 = vld [vmem:[%s9392_s1 + $0xa88] sm:$0xff]  ;;  %v904_v1 = vpack.c.bf16 %v687_v62, %v680_v60  ;;  %v6680_v60 = vld [vmem:[%s7350_s13 + $0x2c4] ss:$16 sps:$4 sm:$0xff]   ;;  %v6709_v19 = vld [vmem:[%s7350_s13 + $0x3e0] ss:$16 sps:$4 sm:$0xff]  }
  0x5b   : > { %2689 = vmatprep.mubr.bf16.mxu1 %v6623_v2  ;;  %2215 = vmatpush1.bf16.msra.mxu0 %v876_v5  ;;  %v905_v57 = vpack.c.bf16 %v688_v56, %v681_v55  ;;  %v906_v2 = vpack.c.bf16 %v689_v0, %v682_v63  ;;  %v6652_v5 = vld [vmem:[%s7350_s13 + $0x180] ss:$16 sps:$4 sm:$0xff]   ;;  %v6683_v62 = vld [vmem:[%s7350_s13 + $0x2e4] ss:$16 sps:$4 sm:$0xff]  }
  0x5c   : > { %3057 = vmatpush1.bf16.msra.mxu1 %v878_v6  ;;  %2216 = vmatprep.subr.bf16.mxu0 %v884_v7  ;;  %v6653_v6 = vld [vmem:[%s7350_s13 + $0x1a4] ss:$16 sps:$4 sm:$0xff]   ;;  %v6655_v7 = vld [vmem:[%s7350_s13 + $0x1a0] ss:$16 sps:$4 sm:$0xff]  }
  0x5d   : > { %3058 = vmatprep.subr.bf16.mxu1 %v886_v10  ;;  %v702_v10 = vld [vmem:[%s9392_s1 + $0xb30] sm:$0xff] }
  0x5e   : > { %v912_v12 = vpack.c.bf16 %v702_v10, %v695_v9  ;;  %v6676_v55 = vld [vmem:[%s7350_s13 + $0x280] ss:$16 sps:$4 sm:$0xff]   ;;  %v6686_v0 = vld [vmem:[%s7350_s13 + $0x304] ss:$16 sps:$4 sm:$0xff]  }
  0x5f   : > { %2217 = vmatpush1.bf16.msra.mxu0 %v883_v14  ;;  %v694_v14 = vld [vmem:[%s9392_s1 + $0xaf0] sm:$0xff] }
  0x60   : > { %3059 = vmatpush1.bf16.msra.mxu1 %v885_v16  ;;  %2218 = vmatprep.subr.bf16.mxu0 %v891_v20  ;;  %v6658_v20 = vld [vmem:[%s7350_s13 + $0x1c0] ss:$16 sps:$4 sm:$0xff]   ;;  %v6695_v10 = vld [vmem:[%s7350_s13 + $0x364] ss:$16 sps:$4 sm:$0xff]  }
  0x61   : > { %1848 = vmatmul.mubr.bf16.gmra.mrb[12].mxu0 %v6625_v13  ;;  %3060 = vmatprep.subr.bf16.mxu1 %v893_v25  ;;  %v6664_v25 = vld [vmem:[%s7350_s13 + $0x200] ss:$16 sps:$4 sm:$0xff]   ;;  %v6707_v18 = vld [vmem:[%s7350_s13 + $0x3e4] ss:$16 sps:$4 sm:$0xff]  }
  0x62   : > { %2690 = vmatmul.mubr.bf16.gmra.mrb[12].mxu1 %v6625_v13  ;;  %1857 = vmatprep.mubr.bf16.mxu0 %v6626_v15  ;;  %v704_v13 = vld [vmem:[%s9392_s1 + $0xb40] sm:$0xff] }
  0x63   : > { %2699 = vmatprep.mubr.bf16.mxu1 %v6626_v15  ;;  %2219 = vmatpush1.bf16.msra.mxu0 %v890_v26  ;;  %v701_v15 = vld [vmem:[%s9392_s1 + $0xb28] sm:$0xff]  ;;  %v914_v16 = vpack.c.bf16 %v704_v13, %v697_v11  ;;  %v6665_v26 = vld [vmem:[%s7350_s13 + $0x224] ss:$16 sps:$4 sm:$0xff]   ;;  %v6685_v63 = vld [vmem:[%s7350_s13 + $0x2e0] ss:$16 sps:$4 sm:$0xff]  }
  0x64   : > { %3061 = vmatpush1.bf16.msra.mxu1 %v892_v30  ;;  %2220 = vmatprep.subr.bf16.mxu0 %v898_v39  ;;  %v911_v17 = vpack.c.bf16 %v701_v15, %v694_v14  ;;  %v919_v30 = vpack.c.bf16 %v716_v28, %v709_v27  ;;  %v920_v39 = vpack.c.bf16 %v717_v37, %v710_v36  ;;  %v6694_v9 = vld [vmem:[%s7350_s13 + $0x340] ss:$16 sps:$4 sm:$0xff]   ;;  %v6701_v14 = vld [vmem:[%s7350_s13 + $0x3a4] ss:$16 sps:$4 sm:$0xff]   ;;  %v355_v37 = vld [vmem:[%s9392_s1 + $0x58] sm:$0xff] }
  0x65   : > { %3062 = vmatprep.subr.bf16.mxu1 %v900_v42  ;;  %v6671_v42 = vld [vmem:[%s7350_s13 + $0x264] ss:$16 sps:$4 sm:$0xff]   ;;  %v6697_v11 = vld [vmem:[%s7350_s13 + $0x360] ss:$16 sps:$4 sm:$0xff]  }
  0x66   : > { %v6700_v13 = vld [vmem:[%s7350_s13 + $0x380] ss:$16 sps:$4 sm:$0xff]   ;;  %v6722_v28 = vld [vmem:[%s7350_s13 + $0x484] ss:$16 sps:$4 sm:$0xff]  }
  0x67   : > { %2221 = vmatpush1.bf16.msra.mxu0 %v897_v47  ;;  %v725_v47 = vld [vmem:[%s9392_s1 + $0xbe8] sm:$0xff]  ;;  %v6703_v15 = vld [vmem:[%s7350_s13 + $0x3a0] ss:$16 sps:$4 sm:$0xff]  }
  0x68   : > { %3063 = vmatpush1.bf16.msra.mxu1 %v899_v48  ;;  %2222 = vmatprep.subr.bf16.mxu0 %v905_v57  ;;  %v6721_v27 = vld [vmem:[%s7350_s13 + $0x460] ss:$16 sps:$4 sm:$0xff]  }
  0x69   : > { %1858 = vmatmul.mubr.bf16.gmra.mrb[16].mxu0 %v6628_v24  ;;  %3064 = vmatprep.subr.bf16.mxu1 %v907_v61  ;;  %v6682_v61 = vld [vmem:[%s7350_s13 + $0x2c0] ss:$16 sps:$4 sm:$0xff]  }
  0x6a   : > { %2700 = vmatmul.mubr.bf16.gmra.mrb[16].mxu1 %v6628_v24  ;;  %1867 = vmatprep.mubr.bf16.mxu0 %v6629_v29  ;;  %v6662_v24 = vld [vmem:[%s7350_s13 + $0x204] ss:$16 sps:$4 sm:$0xff]  }
  0x6b   : > { %2709 = vmatprep.mubr.bf16.mxu1 %v6629_v29  ;;  %2223 = vmatpush1.bf16.msra.mxu0 %v904_v1  ;;  %v711_v29 = vld [vmem:[%s9392_s1 + $0xb78] sm:$0xff]  ;;  %v349_v1 = vld [vmem:[%s9392_s1 + $0x28] sm:$0xff]  ;;  %v348_v36 = vld [vmem:[%s9392_s1 + $0x20] sm:$0xff] }
  0x6c   : > { %3065 = vmatpush1.bf16.msra.mxu1 %v906_v2  ;;  %2224 = vmatprep.subr.bf16.mxu0 %v912_v12  ;;  %v356_v2 = vld [vmem:[%s9392_s1 + $0x60] sm:$0xff] }
  0x6d   : > { %3066 = vmatprep.subr.bf16.mxu1 %v914_v16  ;;  %v6698_v12 = vld [vmem:[%s7350_s13 + $0x384] ss:$16 sps:$4 sm:$0xff]  }
  0x6e   : > { %v6704_v16 = vld [vmem:[%s7350_s13 + $0x3c4] ss:$16 sps:$4 sm:$0xff]  }
  0x6f   : > { %2225 = vmatpush1.bf16.msra.mxu0 %v911_v17  ;;  %v6706_v17 = vld [vmem:[%s7350_s13 + $0x3c0] ss:$16 sps:$4 sm:$0xff]  }
  0x70   : > { %3067 = vmatpush1.bf16.msra.mxu1 %v913_v21  ;;  %2226 = vmatprep.subr.bf16.mxu0 %v919_v30  ;;  %v6712_v21 = vld [vmem:[%s7350_s13 + $0x400] ss:$16 sps:$4 sm:$0xff]   ;;  %v6725_v30 = vld [vmem:[%s7350_s13 + $0x4a4] ss:$16 sps:$4 sm:$0xff]  }
  0x71   : > { %1868 = vmatmul.mubr.bf16.gmra.mrb[20].mxu0 %v6631_v31 }
  0x72   : > { %2710 = vmatmul.mubr.bf16.gmra.mrb[20].mxu1 %v6631_v31  ;;  %1877 = vmatprep.mubr.bf16.mxu0 %v6632_v32  ;;  %v718_v31 = vld [vmem:[%s9392_s1 + $0xbb0] sm:$0xff] }
  0x73   : > { %2719 = vmatprep.mubr.bf16.mxu1 %v6632_v32  ;;  %v708_v32 = vld [vmem:[%s9392_s1 + $0xb60] sm:$0xff] }
  0x79   : > { %1878 = vmatmul.mubr.bf16.gmra.mrb[24].mxu0 %v6634_v33 }
  0x7a   : > { %2720 = vmatmul.mubr.bf16.gmra.mrb[24].mxu1 %v6634_v33  ;;  %1887 = vmatprep.mubr.bf16.mxu0 %v6635_v34  ;;  %v715_v33 = vld [vmem:[%s9392_s1 + $0xb98] sm:$0xff] }
  0x7b   : > { %2729 = vmatprep.mubr.bf16.mxu1 %v6635_v34  ;;  %v921_v34 = vpack.c.bf16 %v718_v31, %v711_v29  ;;  %v918_v35 = vpack.c.bf16 %v715_v33, %v708_v32  ;;  %v6724_v29 = vld [vmem:[%s7350_s13 + $0x480] ss:$16 sps:$4 sm:$0xff]  }
  0x7c   : > { %v342_v31 = vld [vmem:[%s7350_s13 + $0x4c0] sm:$0xff] }
  0x7d   : > { %3068 = vmatprep.subr.bf16.mxu1 %v921_v34  ;;  %2227 = vmatpush1.bf16.msra.mxu0 %v918_v35  ;;  %v6727_v32 = vld [vmem:[%s7350_s13 + $0x4a0] ss:$16 sps:$4 sm:$0xff]   ;;  %v7826_v33 = vcombine.high %v342_v31, %v342_v31  ;;  %v7830_v34 = vcombine.low %v342_v31, %v342_v31  ;;  %v6732_v35 = vld [vmem:[%s7350_s13 + $0xc] ss:$16 sps:$4 sm:$0xff]  }
  0x7e   : > { %3069 = vmatpush1.bf16.msra.mxu1 %v920_v39  ;;  %v357_v39 = vld [vmem:[%s9392_s1 + $0x68] sm:$0xff] }
  0x81   : > { %1888 = vmatmul.mubr.bf16.gmra.mrb[28].mxu0 %v6637_v38 }
  0x82   : > { %2730 = vmatmul.mubr.bf16.gmra.mrb[28].mxu1 %v6637_v38  ;;  %1897 = vmatprep.mubr.bf16.mxu0 %v6638_v46  ;;  %v6667_v38 = vld [vmem:[%s7350_s13 + $0x220] ss:$16 sps:$4 sm:$0xff]  }
  0x83   : > { %2739 = vmatprep.mubr.bf16.mxu1 %v6638_v46  ;;  %v730_v46 = vld [vmem:[%s9392_s1 + $0xc10] sm:$0xff] }
  0x84   : > { %v926_v48 = vpack.c.bf16 %v730_v46, %v723_v45  ;;  %v362_v46 = vld [vmem:[%s9392_s1 + $0x90] sm:$0xff] }
  0x86   : > { %2228 = vmatprep.subr.bf16.mxu0 %v926_v48  ;;  %v364_v48 = vld [vmem:[%s9392_s1 + $0xa0] sm:$0xff] }
  0x89   : > { %1898 = vmatmul.mubr.bf16.gmra.mrb[32].mxu0 %v6640_v49 }
  0x8a   : > { %2740 = vmatmul.mubr.bf16.gmra.mrb[32].mxu1 %v6640_v49  ;;  %1907 = vmatprep.mubr.bf16.mxu0 %v6641_v50  ;;  %v732_v49 = vld [vmem:[%s9392_s1 + $0xc20] sm:$0xff] }
  0x8b   : > { %2749 = vmatprep.mubr.bf16.mxu1 %v6641_v50  ;;  %v722_v50 = vld [vmem:[%s9392_s1 + $0xbd0] sm:$0xff] }
  0x91   : > { %1908 = vmatmul.mubr.bf16.gmra.mrb[36].mxu0 %v6643_v51 }
  0x92   : > { %2750 = vmatmul.mubr.bf16.gmra.mrb[36].mxu1 %v6643_v51  ;;  %1917 = vmatprep.mubr.bf16.mxu0 %v6644_v52  ;;  %v928_v51 = vpack.c.bf16 %v732_v49, %v725_v47  ;;  %v369_v47 = vld [vmem:[%s9392_s1 + $0xc8] sm:$0xff] }
  0x93   : > { %2759 = vmatprep.mubr.bf16.mxu1 %v6644_v52  ;;  %v729_v52 = vld [vmem:[%s9392_s1 + $0xc08] sm:$0xff] }
  0x94   : > { %v925_v56 = vpack.c.bf16 %v729_v52, %v722_v50  ;;  %3070 = vmatprep.subr.bf16.mxu1 %v928_v51  ;;  %v371_v50 = vld [vmem:[%s9392_s1 + $0xd8] sm:$0xff]  ;;  %v377_v51 = vld [vmem:[%s9392_s1 + $0x108] sm:$0xff]  ;;  %v384_v52 = vld [vmem:[%s9392_s1 + $0x140] sm:$0xff] }
  0x96   : > { %2229 = vmatpush1.bf16.msra.mxu0 %v925_v56  ;;  %v755_v56 = vpack.c.bf16 %v384_v52, %v377_v51  ;;  %v468_v51 = vld [vmem:[%s9392_s1 + $0x3e0] sm:$0xff] }
  0x99   : > { %1918 = vmatmul.mubr.bf16.gmra.mrb[40].mxu0 %v6646_v53 }
  0x9a   : > { %2760 = vmatmul.mubr.bf16.gmra.mrb[40].mxu1 %v6646_v53  ;;  %1927 = vmatprep.mubr.bf16.mxu0 %v6647_v54  ;;  %v724_v53 = vld [vmem:[%s9392_s1 + $0xbe0] sm:$0xff] }
  0x9b   : > { %2769 = vmatprep.mubr.bf16.mxu1 %v6647_v54  ;;  %v731_v54 = vld [vmem:[%s9392_s1 + $0xc18] sm:$0xff] }
  0x9c   : > { %v927_v57 = vpack.c.bf16 %v731_v54, %v724_v53  ;;  %v747_v53 = vpack.c.bf16 %v369_v47, %v362_v46  ;;  %v6735_v54 = vld [vmem:[%s7350_s13 + $0x28] ss:$16 sps:$4 sm:$0xff]   ;;  %v446_v46 = vld [vmem:[%s9392_s1 + $0x330] sm:$0xff] }
  0x9d   : > { %v453_v47 = vld [vmem:[%s9392_s1 + $0x368] sm:$0xff] }
  0x9e   : > { %3071 = vmatpush1.bf16.msra.mxu1 %v927_v57  ;;  %v376_v57 = vld [vmem:[%s9392_s1 + $0x100] sm:$0xff]  ;;  %v789_v52 = vpack.c.bf16 %v453_v47, %v446_v46  ;;  %v6772_v46 = vld [vmem:[%s7350_s13 + $0x1cc] ss:$16 sps:$4 sm:$0xff]  }
  0x9f   : > { %v517_v47 = vld [vmem:[%s9392_s1 + $0x568] sm:$0xff] }
  0xa1   : > { %1928 = vmatmul.mubr.bf16.gmra.mrb[44].mxu0 %v6649_v3 }
  0xa2   : > { %2770 = vmatmul.mubr.bf16.gmra.mrb[44].mxu1 %v6649_v3  ;;  %1937 = vmatprep.mubr.bf16.mxu0 %v6650_v4  ;;  %v741_v3 = vpack.c.bf16 %v356_v2, %v349_v1 }
  0xa3   : > { %2779 = vmatprep.mubr.bf16.mxu1 %v6650_v4  ;;  %v7022_v4 = vmov 0  }
  0xa4   : > { %4311 = vmatprep.subr.bf16.mxu1 %v7022_v4  ;;  %3469 = vmatprep.subr.bf16.mxu0 %v741_v3  ;;  %v390_v3 = vld [vmem:[%s9392_s1 + $0x170] sm:$0xff] }
  0xa9   : > { %1938 = vmatmul.mubr.bf16.gmra.mrb[48].mxu0 %v6652_v5 }
  0xaa   : > { %2780 = vmatmul.mubr.bf16.gmra.mrb[48].mxu1 %v6652_v5  ;;  %1947 = vmatprep.mubr.bf16.mxu0 %v6653_v6  ;;  %v6688_v5 = vld [vmem:[%s7350_s13 + $0x300] ss:$16 sps:$4 sm:$0xff]  }
  0xab   : > { %2789 = vmatprep.mubr.bf16.mxu1 %v6653_v6  ;;  %v6689_v6 = vld [vmem:[%s7350_s13 + $0x324] ss:$16 sps:$4 sm:$0xff]  }
  0xb1   : > { %1948 = vmatmul.mubr.bf16.gmra.mrb[52].mxu0 %v6655_v7 }
  0xb2   : > { %2790 = vmatmul.mubr.bf16.gmra.mrb[52].mxu1 %v6655_v7  ;;  %1957 = vmatprep.mubr.bf16.mxu0 %v6656_v8  ;;  %v6691_v7 = vld [vmem:[%s7350_s13 + $0x320] ss:$16 sps:$4 sm:$0xff]  }
  0xb3   : > { %2799 = vmatprep.mubr.bf16.mxu1 %v6656_v8  ;;  %v6692_v8 = vld [vmem:[%s7350_s13 + $0x344] ss:$16 sps:$4 sm:$0xff]  }
  0xb9   : > { %1958 = vmatmul.mubr.bf16.gmra.mrb[56].mxu0 %v6658_v20 }
  0xba   : > { %2800 = vmatmul.mubr.bf16.gmra.mrb[56].mxu1 %v6658_v20  ;;  %1967 = vmatprep.mubr.bf16.mxu0 %v6659_v22  ;;  %v6710_v20 = vld [vmem:[%s7350_s13 + $0x404] ss:$16 sps:$4 sm:$0xff]  }
  0xbb   : > { %2809 = vmatprep.mubr.bf16.mxu1 %v6659_v22  ;;  %v6713_v22 = vld [vmem:[%s7350_s13 + $0x424] ss:$16 sps:$4 sm:$0xff]  }
  0xc1   : > { %1968 = vmatmul.mubr.bf16.gmra.mrb[60].mxu0 %v6661_v23 }
  0xc2   : > { %2810 = vmatmul.mubr.bf16.gmra.mrb[60].mxu1 %v6661_v23  ;;  %1977 = vmatprep.mubr.bf16.mxu0 %v6662_v24  ;;  %v6715_v23 = vld [vmem:[%s7350_s13 + $0x420] ss:$16 sps:$4 sm:$0xff]  }
  0xc3   : > { %2819 = vmatprep.mubr.bf16.mxu1 %v6662_v24  ;;  %v6716_v24 = vld [vmem:[%s7350_s13 + $0x444] ss:$16 sps:$4 sm:$0xff]  }
  0xc9   : > { %1978 = vmatmul.mubr.bf16.gmra.mrb[64].mxu0 %v6664_v25 }
  0xca   : > { %2820 = vmatmul.mubr.bf16.gmra.mrb[64].mxu1 %v6664_v25  ;;  %1987 = vmatprep.mubr.bf16.mxu0 %v6665_v26  ;;  %v6718_v25 = vld [vmem:[%s7350_s13 + $0x440] ss:$16 sps:$4 sm:$0xff]  }
  0xcb   : > { %2829 = vmatprep.mubr.bf16.mxu1 %v6665_v26  ;;  %v6719_v26 = vld [vmem:[%s7350_s13 + $0x464] ss:$16 sps:$4 sm:$0xff]  }
  0xd1   : > { %1988 = vmatmul.mubr.bf16.gmra.mrb[68].mxu0 %v6667_v38 }
  0xd2   : > { %2830 = vmatmul.mubr.bf16.gmra.mrb[68].mxu1 %v6667_v38  ;;  %1997 = vmatprep.mubr.bf16.mxu0 %v6668_v40  ;;  %v350_v38 = vld [vmem:[%s9392_s1 + $0x30] sm:$0xff] }
  0xd3   : > { %2839 = vmatprep.mubr.bf16.mxu1 %v6668_v40  ;;  %v6730_v40 = vld [vmem:[%s7350_s13 + $0x8] ss:$16 sps:$4 sm:$0xff]   ;;  %v742_v45 = vpack.c.bf16 %v357_v39, %v350_v38  ;;  %v434_v38 = vld [vmem:[%s9392_s1 + $0x2d0] sm:$0xff] }
  0xd4   : > { %v441_v39 = vld [vmem:[%s9392_s1 + $0x308] sm:$0xff] }
  0xd9   : > { %1998 = vmatmul.mubr.bf16.gmra.mrb[72].mxu0 %v6670_v41 }
  0xda   : > { %2840 = vmatmul.mubr.bf16.gmra.mrb[72].mxu1 %v6670_v41  ;;  %2007 = vmatprep.mubr.bf16.mxu0 %v6671_v42  ;;  %v363_v41 = vld [vmem:[%s9392_s1 + $0x98] sm:$0xff] }
  0xdb   : > { %2849 = vmatprep.mubr.bf16.mxu1 %v6671_v42  ;;  %v370_v42 = vld [vmem:[%s9392_s1 + $0xd0] sm:$0xff] }
  0xdc   : > { %v748_v49 = vpack.c.bf16 %v370_v42, %v363_v41  ;;  %v454_v41 = vld [vmem:[%s9392_s1 + $0x370] sm:$0xff]  ;;  %v6742_v42 = vld [vmem:[%s7350_s13 + $0x8c] ss:$16 sps:$4 sm:$0xff]  }
  0xe1   : > { %2008 = vmatmul.mubr.bf16.gmra.mrb[76].mxu0 %v6673_v43 }
  0xe2   : > { %2850 = vmatmul.mubr.bf16.gmra.mrb[76].mxu1 %v6673_v43  ;;  %2017 = vmatprep.mubr.bf16.mxu0 %v6674_v44  ;;  %v740_v43 = vpack.c.bf16 %v355_v37, %v348_v36  ;;  %v432_v36 = vld [vmem:[%s9392_s1 + $0x2c0] sm:$0xff]  ;;  %v439_v37 = vld [vmem:[%s9392_s1 + $0x2f8] sm:$0xff] }
  0xe3   : > { %2859 = vmatprep.mubr.bf16.mxu1 %v6674_v44  ;;  %v6733_v44 = vld [vmem:[%s7350_s13 + $0x2c] ss:$16 sps:$4 sm:$0xff]  }
  0xe9   : > { %2018 = vmatmul.mubr.bf16.gmra.mrb[80].mxu0 %v6676_v55 }
  0xea   : > { %2860 = vmatmul.mubr.bf16.gmra.mrb[80].mxu1 %v6676_v55  ;;  %2027 = vmatprep.mubr.bf16.mxu0 %v6677_v58  ;;  %v749_v55 = vpack.c.bf16 %v371_v50, %v364_v48  ;;  %v448_v48 = vld [vmem:[%s9392_s1 + $0x340] sm:$0xff]  ;;  %v461_v50 = vld [vmem:[%s9392_s1 + $0x3a8] sm:$0xff] }
  0xeb   : > { %2869 = vmatprep.mubr.bf16.mxu1 %v6677_v58  ;;  %v383_v58 = vld [vmem:[%s9392_s1 + $0x138] sm:$0xff] }
  0xf1   : > { %2028 = vmatmul.mubr.bf16.gmra.mrb[84].mxu0 %v6679_v59 }
  0xf2   : > { %2870 = vmatmul.mubr.bf16.gmra.mrb[84].mxu1 %v6679_v59  ;;  %2037 = vmatprep.mubr.bf16.mxu0 %v6680_v60  ;;  %v378_v59 = vld [vmem:[%s9392_s1 + $0x110] sm:$0xff] }
  0xf3   : > { %2879 = vmatprep.mubr.bf16.mxu1 %v6680_v60  ;;  %v385_v60 = vld [vmem:[%s9392_s1 + $0x148] sm:$0xff] }
  0xf4   : > { %v756_v1 = vpack.c.bf16 %v385_v60, %v378_v59  ;;  %v469_v59 = vld [vmem:[%s9392_s1 + $0x3e8] sm:$0xff] }
  0xf5   : > { %v6745_v60 = vld [vmem:[%s7350_s13 + $0xac] ss:$16 sps:$4 sm:$0xff]  }
  0xf9   : > { %2038 = vmatmul.mubr.bf16.gmra.mrb[88].mxu0 %v6682_v61 }
  0xfa   : > { %2880 = vmatmul.mubr.bf16.gmra.mrb[88].mxu1 %v6682_v61  ;;  %2047 = vmatprep.mubr.bf16.mxu0 %v6683_v62  ;;  %v391_v61 = vld [vmem:[%s9392_s1 + $0x178] sm:$0xff] }
  0xfb   : > { %2889 = vmatprep.mubr.bf16.mxu1 %v6683_v62  ;;  %v398_v62 = vld [vmem:[%s9392_s1 + $0x1b0] sm:$0xff] }
  0xfc   : > { %v762_v2 = vpack.c.bf16 %v398_v62, %v391_v61 }
 0x101   : > { %2048 = vmatmul.mubr.bf16.gmra.mrb[92].mxu0 %v6685_v63 }
 0x102   : > { %2890 = vmatmul.mubr.bf16.gmra.mrb[92].mxu1 %v6685_v63  ;;  %2057 = vmatprep.mubr.bf16.mxu0 %v6686_v0  ;;  %v6736_v63 = vld [vmem:[%s7350_s13 + $0x4c] ss:$16 sps:$4 sm:$0xff]  }
 0x103   : > { %2899 = vmatprep.mubr.bf16.mxu1 %v6686_v0  ;;  %v754_v0 = vpack.c.bf16 %v383_v58, %v376_v57  ;;  %v6744_v57 = vld [vmem:[%s7350_s13 + $0x88] ss:$16 sps:$4 sm:$0xff]   ;;  %v462_v58 = vld [vmem:[%s9392_s1 + $0x3b0] sm:$0xff] }
 0x104   : > { %v798_v62 = vpack.c.bf16 %v469_v59, %v462_v58  ;;  %v6777_v58 = vld [vmem:[%s7350_s13 + $0x1e8] ss:$16 sps:$4 sm:$0xff]   ;;  %v6778_v59 = vld [vmem:[%s7350_s13 + $0x20c] ss:$16 sps:$4 sm:$0xff]  }
 0x109   : > { %2058 = vmatmul.mubr.bf16.gmra.mrb[96].mxu0 %v6688_v5 }
 0x10a   : > { %2900 = vmatmul.mubr.bf16.gmra.mrb[96].mxu1 %v6688_v5  ;;  %2067 = vmatprep.mubr.bf16.mxu0 %v6689_v6  ;;  %v397_v5 = vld [vmem:[%s9392_s1 + $0x1a8] sm:$0xff] }
 0x10b   : > { %2909 = vmatprep.mubr.bf16.mxu1 %v6689_v6  ;;  %v392_v6 = vld [vmem:[%s9392_s1 + $0x180] sm:$0xff] }
 0x111   : > { %2068 = vmatmul.mubr.bf16.gmra.mrb[100].mxu0 %v6691_v7 }
 0x112   : > { %2910 = vmatmul.mubr.bf16.gmra.mrb[100].mxu1 %v6691_v7  ;;  %2077 = vmatprep.mubr.bf16.mxu0 %v6692_v8  ;;  %v399_v7 = vld [vmem:[%s9392_s1 + $0x1b8] sm:$0xff] }
 0x113   : > { %2919 = vmatprep.mubr.bf16.mxu1 %v6692_v8  ;;  %v405_v8 = vld [vmem:[%s9392_s1 + $0x1e8] sm:$0xff] }
 0x119   : > { %2078 = vmatmul.mubr.bf16.gmra.mrb[104].mxu0 %v6694_v9 }
 0x11a   : > { %2920 = vmatmul.mubr.bf16.gmra.mrb[104].mxu1 %v6694_v9  ;;  %2087 = vmatprep.mubr.bf16.mxu0 %v6695_v10  ;;  %v412_v9 = vld [vmem:[%s9392_s1 + $0x220] sm:$0xff] }
 0x11b   : > { %2929 = vmatprep.mubr.bf16.mxu1 %v6695_v10  ;;  %v6738_v10 = vld [vmem:[%s7350_s13 + $0x48] ss:$16 sps:$4 sm:$0xff]  }
 0x121   : > { %2088 = vmatmul.mubr.bf16.gmra.mrb[108].mxu0 %v6697_v11 }
 0x122   : > { %2930 = vmatmul.mubr.bf16.gmra.mrb[108].mxu1 %v6697_v11  ;;  %2097 = vmatprep.mubr.bf16.mxu0 %v6698_v12  ;;  %v761_v11 = vpack.c.bf16 %v397_v5, %v390_v3  ;;  %v475_v3 = vld [vmem:[%s9392_s1 + $0x418] sm:$0xff]  ;;  %v482_v5 = vld [vmem:[%s9392_s1 + $0x450] sm:$0xff] }
 0x123   : > { %2939 = vmatprep.mubr.bf16.mxu1 %v6698_v12  ;;  %v763_v12 = vpack.c.bf16 %v399_v7, %v392_v6  ;;  %v474_v6 = vld [vmem:[%s9392_s1 + $0x410] sm:$0xff]  ;;  %v804_v7 = vpack.c.bf16 %v482_v5, %v475_v3  ;;  %v532_v3 = vld [vmem:[%s9392_s1 + $0x5e0] sm:$0xff]  ;;  %v539_v5 = vld [vmem:[%s9392_s1 + $0x618] sm:$0xff] }
 0x129   : > { %2098 = vmatmul.mubr.bf16.gmra.mrb[112].mxu0 %v6700_v13 }
 0x12a   : > { %2940 = vmatmul.mubr.bf16.gmra.mrb[112].mxu1 %v6700_v13  ;;  %2107 = vmatprep.mubr.bf16.mxu0 %v6701_v14  ;;  %v769_v13 = vpack.c.bf16 %v412_v9, %v405_v8  ;;  %v481_v8 = vld [vmem:[%s9392_s1 + $0x448] sm:$0xff]  ;;  %v476_v9 = vld [vmem:[%s9392_s1 + $0x420] sm:$0xff] }
 0x12b   : > { %2949 = vmatprep.mubr.bf16.mxu1 %v6701_v14  ;;  %v404_v14 = vld [vmem:[%s9392_s1 + $0x1e0] sm:$0xff] }
 0x131   : > { %2108 = vmatmul.mubr.bf16.gmra.mrb[116].mxu0 %v6703_v15 }
 0x132   : > { %2950 = vmatmul.mubr.bf16.gmra.mrb[116].mxu1 %v6703_v15  ;;  %2117 = vmatprep.mubr.bf16.mxu0 %v6704_v16  ;;  %v411_v15 = vld [vmem:[%s9392_s1 + $0x218] sm:$0xff] }
 0x133   : > { %2959 = vmatprep.mubr.bf16.mxu1 %v6704_v16  ;;  %v406_v16 = vld [vmem:[%s9392_s1 + $0x1f0] sm:$0xff] }
 0x139   : > { %2118 = vmatmul.mubr.bf16.gmra.mrb[120].mxu0 %v6706_v17 }
 0x13a   : > { %2960 = vmatmul.mubr.bf16.gmra.mrb[120].mxu1 %v6706_v17  ;;  %2127 = vmatprep.mubr.bf16.mxu0 %v6707_v18  ;;  %v413_v17 = vld [vmem:[%s9392_s1 + $0x228] sm:$0xff] }
 0x13b   : > { %2969 = vmatprep.mubr.bf16.mxu1 %v6707_v18  ;;  %v419_v18 = vld [vmem:[%s9392_s1 + $0x258] sm:$0xff] }
 0x141   : > { %2128 = vmatmul.mubr.bf16.gmra.mrb[124].mxu0 %v6709_v19 }
 0x142   : > { %2970 = vmatmul.mubr.bf16.gmra.mrb[124].mxu1 %v6709_v19  ;;  %2137 = vmatprep.mubr.bf16.mxu0 %v6710_v20  ;;  %v426_v19 = vld [vmem:[%s9392_s1 + $0x290] sm:$0xff] }
 0x143   : > { %2979 = vmatprep.mubr.bf16.mxu1 %v6710_v20  ;;  %v6739_v20 = vld [vmem:[%s7350_s13 + $0x6c] ss:$16 sps:$4 sm:$0xff]  }
 0x149   : > { %2138 = vmatmul.mubr.bf16.gmra.mrb[128].mxu0 %v6712_v21 }
 0x14a   : > { %2980 = vmatmul.mubr.bf16.gmra.mrb[128].mxu1 %v6712_v21  ;;  %2147 = vmatprep.mubr.bf16.mxu0 %v6713_v22  ;;  %v768_v21 = vpack.c.bf16 %v411_v15, %v404_v14  ;;  %v6754_v14 = vld [vmem:[%s7350_s13 + $0x10c] ss:$16 sps:$4 sm:$0xff]   ;;  %v6756_v15 = vld [vmem:[%s7350_s13 + $0x108] ss:$16 sps:$4 sm:$0xff]  }
 0x14b   : > { %2989 = vmatprep.mubr.bf16.mxu1 %v6713_v22  ;;  %v770_v22 = vpack.c.bf16 %v413_v17, %v406_v16  ;;  %v6757_v16 = vld [vmem:[%s7350_s13 + $0x12c] ss:$16 sps:$4 sm:$0xff]  }
 0x14c   : > { %v489_v17 = vld [vmem:[%s9392_s1 + $0x488] sm:$0xff] }
 0x151   : > { %2148 = vmatmul.mubr.bf16.gmra.mrb[132].mxu0 %v6715_v23 }
 0x152   : > { %2990 = vmatmul.mubr.bf16.gmra.mrb[132].mxu1 %v6715_v23  ;;  %2157 = vmatprep.mubr.bf16.mxu0 %v6716_v24  ;;  %v776_v23 = vpack.c.bf16 %v426_v19, %v419_v18  ;;  %v496_v18 = vld [vmem:[%s9392_s1 + $0x4c0] sm:$0xff] }
 0x153   : > { %2999 = vmatprep.mubr.bf16.mxu1 %v6716_v24  ;;  %v418_v24 = vld [vmem:[%s9392_s1 + $0x250] sm:$0xff]  ;;  %v488_v19 = vld [vmem:[%s9392_s1 + $0x480] sm:$0xff] }
 0x159   : > { %2158 = vmatmul.mubr.bf16.gmra.mrb[136].mxu0 %v6718_v25 }
 0x15a   : > { %3000 = vmatmul.mubr.bf16.gmra.mrb[136].mxu1 %v6718_v25  ;;  %2167 = vmatprep.mubr.bf16.mxu0 %v6719_v26  ;;  %v425_v25 = vld [vmem:[%s9392_s1 + $0x288] sm:$0xff] }
 0x15b   : > { %3009 = vmatprep.mubr.bf16.mxu1 %v6719_v26  ;;  %v420_v26 = vld [vmem:[%s9392_s1 + $0x260] sm:$0xff]  ;;  %v775_v31 = vpack.c.bf16 %v425_v25, %v418_v24 }
 0x161   : > { %2168 = vmatmul.mubr.bf16.gmra.mrb[140].mxu0 %v6721_v27 }
 0x162   : > { %3010 = vmatmul.mubr.bf16.gmra.mrb[140].mxu1 %v6721_v27  ;;  %2177 = vmatprep.mubr.bf16.mxu0 %v6722_v28  ;;  %v427_v27 = vld [vmem:[%s9392_s1 + $0x298] sm:$0xff] }
 0x163   : > { %3019 = vmatprep.mubr.bf16.mxu1 %v6722_v28  ;;  %v433_v28 = vld [vmem:[%s9392_s1 + $0x2c8] sm:$0xff] }
 0x169   : > { %2178 = vmatmul.mubr.bf16.gmra.mrb[144].mxu0 %v6724_v29 }
 0x16a   : > { %3020 = vmatmul.mubr.bf16.gmra.mrb[144].mxu1 %v6724_v29  ;;  %2187 = vmatprep.mubr.bf16.mxu0 %v6725_v30  ;;  %v440_v29 = vld [vmem:[%s9392_s1 + $0x300] sm:$0xff] }
 0x16b   : > { %3029 = vmatprep.mubr.bf16.mxu1 %v6725_v30  ;;  %v6741_v30 = vld [vmem:[%s7350_s13 + $0x68] ss:$16 sps:$4 sm:$0xff]  }
 0x171   : > { %2188 = vmatmul.mubr.bf16.gmra.mrb[148].mxu0 %v6727_v32 }
 0x172   : > { %3030 = vmatmul.mubr.bf16.gmra.mrb[148].mxu1 %v6727_v32  ;;  %2197 = vmatprep.mubr.bf16.mxu0 %v7826_v33  ;;  %v777_v32 = vpack.c.bf16 %v427_v27, %v420_v26  ;;  %v6759_v26 = vld [vmem:[%s7350_s13 + $0x128] ss:$16 sps:$4 sm:$0xff]   ;;  %v6760_v27 = vld [vmem:[%s7350_s13 + $0x14c] ss:$16 sps:$4 sm:$0xff]  }
 0x173   : > { %3039 = vmatprep.mubr.bf16.mxu1 %v7826_v33 }
 0x179   : > { %2198 = vmatmul.mubr.bf16.gmra.mrb[152].mxu0 %v7830_v34 }
 0x17a   : > { %3040 = vmatmul.mubr.bf16.gmra.mrb[152].mxu1 %v7830_v34  ;;  %5805 = vmatprep.mubr.msk.bf16.mxu0 %vm1667_vm0, %v6732_v35 }
 0x17b   : > { %5844 = vmatprep.mubr.msk.bf16.mxu1 %vm1667_vm0, %v6732_v35  ;;  %v783_v35 = vpack.c.bf16 %v440_v29, %v433_v28  ;;  %v6762_v28 = vld [vmem:[%s7350_s13 + $0x148] ss:$16 sps:$4 sm:$0xff]   ;;  %v6763_v29 = vld [vmem:[%s7350_s13 + $0x16c] ss:$16 sps:$4 sm:$0xff]  }
 0x181   : > { %2239 = vmatmul.mubr.bf16.vlgmr.msra.gmra.mrb[0].mxu0 %v6730_v40 }
 0x182   : > { %3081 = vmatmul.mubr.bf16.vlgmr.msra.gmra.mrb[0].mxu1 %v6730_v40  ;;  %3470 = vmatpush1.bf16.msra.mxu0 %v740_v43  ;;  %v447_v40 = vld [vmem:[%s9392_s1 + $0x338] sm:$0xff]  ;;  %v782_v43 = vpack.c.bf16 %v439_v37, %v432_v36  ;;  %v502_v37 = vld [vmem:[%s9392_s1 + $0x4f0] sm:$0xff] }
 0x183   : > { %4312 = vmatpush1.bf16.msra.mxu1 %v742_v45  ;;  %5806 = vmatprep.mubr.msk.bf16.mxu0 %vm1667_vm0, %v6733_v44  ;;  %v790_v45 = vpack.c.bf16 %v454_v41, %v447_v40  ;;  %v511_v41 = vld [vmem:[%s9392_s1 + $0x538] sm:$0xff] }
 0x184   : > { %5845 = vmatprep.mubr.msk.bf16.mxu1 %vm1667_vm0, %v6733_v44  ;;  %3471 = vmatprep.subr.bf16.mxu0 %v748_v49  ;;  %v784_v44 = vpack.c.bf16 %v441_v39, %v434_v38  ;;  %v455_v49 = vld [vmem:[%s9392_s1 + $0x378] sm:$0xff]  ;;  %v509_v38 = vld [vmem:[%s9392_s1 + $0x528] sm:$0xff]  ;;  %v504_v39 = vld [vmem:[%s9392_s1 + $0x500] sm:$0xff] }
 0x185   : > { %4313 = vmatprep.subr.bf16.mxu1 %v7022_v4  ;;  %v817_v40 = vpack.c.bf16 %v509_v38, %v502_v37  ;;  %v6798_v38 = vld [vmem:[%s7350_s13 + $0x2c8] ss:$16 sps:$4 sm:$0xff]  }
 0x186   : > { %3472 = vmatpush1.bf16.msra.mxu0 %v747_v53  ;;  %v791_v53 = vpack.c.bf16 %v455_v49, %v448_v48  ;;  %v524_v48 = vld [vmem:[%s9392_s1 + $0x5a0] sm:$0xff] }
 0x187   : > { %4314 = vmatpush1.bf16.msra.mxu1 %v749_v55  ;;  %3473 = vmatprep.subr.bf16.mxu0 %v755_v56  ;;  %v460_v55 = vld [vmem:[%s9392_s1 + $0x3a0] sm:$0xff]  ;;  %v467_v56 = vld [vmem:[%s9392_s1 + $0x3d8] sm:$0xff]  ;;  %v825_v49 = vpack.c.bf16 %v524_v48, %v517_v47 }
 0x188   : > { %4315 = vmatprep.subr.bf16.mxu1 %v7022_v4  ;;  %v796_v61 = vpack.c.bf16 %v467_v56, %v460_v55  ;;  %v525_v56 = vld [vmem:[%s9392_s1 + $0x5a8] sm:$0xff] }
 0x189   : > { %2249 = vmatmul.mubr.bf16.gmra.mrb[4].mxu0 %v6735_v54  ;;  %v6807_v47 = vld [vmem:[%s7350_s13 + $0x328] ss:$16 sps:$4 sm:$0xff]   ;;  %v6808_v48 = vld [vmem:[%s7350_s13 + $0x34c] ss:$16 sps:$4 sm:$0xff]  }
 0x18a   : > { %3091 = vmatmul.mubr.bf16.gmra.mrb[4].mxu1 %v6735_v54  ;;  %5807 = vmatprep.mubr.msk.bf16.mxu0 %vm1667_vm0, %v6736_v63  ;;  %v797_v54 = vpack.c.bf16 %v468_v51, %v461_v50  ;;  %v6774_v50 = vld [vmem:[%s7350_s13 + $0x1c8] ss:$16 sps:$4 sm:$0xff]   ;;  %v6775_v51 = vld [vmem:[%s7350_s13 + $0x1ec] ss:$16 sps:$4 sm:$0xff]  }
 0x18b   : > { %5846 = vmatprep.mubr.msk.bf16.mxu1 %vm1667_vm0, %v6736_v63  ;;  %3474 = vmatpush1.bf16.msra.mxu0 %v754_v0  ;;  %v6747_v63 = vld [vmem:[%s7350_s13 + $0xa8] ss:$16 sps:$4 sm:$0xff]   ;;  %v6748_v0 = vld [vmem:[%s7350_s13 + $0xcc] ss:$16 sps:$4 sm:$0xff]  }
 0x18c   : > { %4316 = vmatpush1.bf16.msra.mxu1 %v756_v1  ;;  %3475 = vmatprep.subr.bf16.mxu0 %v762_v2  ;;  %v6750_v1 = vld [vmem:[%s7350_s13 + $0xc8] ss:$16 sps:$4 sm:$0xff]   ;;  %v6751_v2 = vld [vmem:[%s7350_s13 + $0xec] ss:$16 sps:$4 sm:$0xff]  }
 0x18d   : > { %4317 = vmatprep.subr.bf16.mxu1 %v7022_v4 }
 0x18f   : > { %3476 = vmatpush1.bf16.msra.mxu0 %v761_v11  ;;  %v803_v11 = vpack.c.bf16 %v481_v8, %v474_v6  ;;  %v6783_v8 = vld [vmem:[%s7350_s13 + $0x228] ss:$16 sps:$4 sm:$0xff]  }
 0x190   : > { %4318 = vmatpush1.bf16.msra.mxu1 %v763_v12  ;;  %3477 = vmatprep.subr.bf16.mxu0 %v769_v13  ;;  %v6753_v13 = vld [vmem:[%s7350_s13 + $0xe8] ss:$16 sps:$4 sm:$0xff]  }
 0x191   : > { %2259 = vmatmul.mubr.bf16.gmra.mrb[8].mxu0 %v6738_v10  ;;  %4319 = vmatprep.subr.bf16.mxu1 %v7022_v4 }
 0x192   : > { %3101 = vmatmul.mubr.bf16.gmra.mrb[8].mxu1 %v6738_v10  ;;  %5808 = vmatprep.mubr.msk.bf16.mxu0 %vm1667_vm0, %v6739_v20  ;;  %v483_v10 = vld [vmem:[%s9392_s1 + $0x458] sm:$0xff] }
 0x193   : > { %5847 = vmatprep.mubr.msk.bf16.mxu1 %vm1667_vm0, %v6739_v20  ;;  %3478 = vmatpush1.bf16.msra.mxu0 %v768_v21  ;;  %v805_v12 = vpack.c.bf16 %v483_v10, %v476_v9  ;;  %v811_v20 = vpack.c.bf16 %v496_v18, %v489_v17  ;;  %v495_v21 = vld [vmem:[%s9392_s1 + $0x4b8] sm:$0xff]  ;;  %v546_v17 = vld [vmem:[%s9392_s1 + $0x650] sm:$0xff]  ;;  %v553_v18 = vld [vmem:[%s9392_s1 + $0x688] sm:$0xff] }
 0x194   : > { %4320 = vmatpush1.bf16.msra.mxu1 %v770_v22  ;;  %3479 = vmatprep.subr.bf16.mxu0 %v776_v23  ;;  %v490_v22 = vld [vmem:[%s9392_s1 + $0x490] sm:$0xff]  ;;  %v497_v23 = vld [vmem:[%s9392_s1 + $0x4c8] sm:$0xff]  ;;  %v810_v24 = vpack.c.bf16 %v495_v21, %v488_v19 }
 0x195   : > { %4321 = vmatprep.subr.bf16.mxu1 %v7022_v4  ;;  %v812_v25 = vpack.c.bf16 %v497_v23, %v490_v22  ;;  %v6784_v9 = vld [vmem:[%s7350_s13 + $0x24c] ss:$16 sps:$4 sm:$0xff]   ;;  %v6786_v10 = vld [vmem:[%s7350_s13 + $0x248] ss:$16 sps:$4 sm:$0xff]  }
 0x196   : > { %v6789_v21 = vld [vmem:[%s7350_s13 + $0x268] ss:$16 sps:$4 sm:$0xff]   ;;  %v6790_v22 = vld [vmem:[%s7350_s13 + $0x28c] ss:$16 sps:$4 sm:$0xff]  }
 0x197   : > { %3480 = vmatpush1.bf16.msra.mxu0 %v775_v31  ;;  %v6766_v31 = vld [vmem:[%s7350_s13 + $0x18c] ss:$16 sps:$4 sm:$0xff]   ;;  %v6792_v23 = vld [vmem:[%s7350_s13 + $0x288] ss:$16 sps:$4 sm:$0xff]  }
 0x198   : > { %4322 = vmatpush1.bf16.msra.mxu1 %v777_v32  ;;  %3481 = vmatprep.subr.bf16.mxu0 %v783_v35  ;;  %v503_v32 = vld [vmem:[%s9392_s1 + $0x4f8] sm:$0xff]  ;;  %v510_v35 = vld [vmem:[%s9392_s1 + $0x530] sm:$0xff] }
 0x199   : > { %2269 = vmatmul.mubr.bf16.gmra.mrb[12].mxu0 %v6741_v30  ;;  %4323 = vmatprep.subr.bf16.mxu1 %v7022_v4  ;;  %v818_v36 = vpack.c.bf16 %v510_v35, %v503_v32  ;;  %v560_v32 = vld [vmem:[%s9392_s1 + $0x6c0] sm:$0xff] }
 0x19a   : > { %3111 = vmatmul.mubr.bf16.gmra.mrb[12].mxu1 %v6741_v30  ;;  %5809 = vmatprep.mubr.msk.bf16.mxu0 %vm1667_vm0, %v6742_v42  ;;  %v6765_v30 = vld [vmem:[%s7350_s13 + $0x168] ss:$16 sps:$4 sm:$0xff]  }
 0x19b   : > { %5848 = vmatprep.mubr.msk.bf16.mxu1 %vm1667_vm0, %v6742_v42  ;;  %3482 = vmatpush1.bf16.msra.mxu0 %v782_v43  ;;  %v819_v42 = vpack.c.bf16 %v511_v41, %v504_v39  ;;  %v6768_v43 = vld [vmem:[%s7350_s13 + $0x188] ss:$16 sps:$4 sm:$0xff]   ;;  %v6799_v39 = vld [vmem:[%s7350_s13 + $0x2ec] ss:$16 sps:$4 sm:$0xff]  }
 0x19c   : > { %4324 = vmatpush1.bf16.msra.mxu1 %v784_v44  ;;  %3483 = vmatprep.subr.bf16.mxu0 %v790_v45  ;;  %v6769_v44 = vld [vmem:[%s7350_s13 + $0x1ac] ss:$16 sps:$4 sm:$0xff]   ;;  %v6771_v45 = vld [vmem:[%s7350_s13 + $0x1a8] ss:$16 sps:$4 sm:$0xff]  }
 0x19d   : > { %4325 = vmatprep.subr.bf16.mxu1 %v7022_v4  ;;  %v6802_v41 = vld [vmem:[%s7350_s13 + $0x30c] ss:$16 sps:$4 sm:$0xff]  }
 0x19f   : > { %3484 = vmatpush1.bf16.msra.mxu0 %v789_v52  ;;  %v516_v52 = vld [vmem:[%s9392_s1 + $0x560] sm:$0xff] }
 0x1a0   : > { %4326 = vmatpush1.bf16.msra.mxu1 %v791_v53  ;;  %3485 = vmatprep.subr.bf16.mxu0 %v797_v54  ;;  %v523_v53 = vld [vmem:[%s9392_s1 + $0x598] sm:$0xff]  ;;  %v518_v54 = vld [vmem:[%s9392_s1 + $0x570] sm:$0xff] }
 0x1a1   : > { %2279 = vmatmul.mubr.bf16.gmra.mrb[16].mxu0 %v6744_v57  ;;  %4327 = vmatprep.subr.bf16.mxu1 %v7022_v4  ;;  %v824_v55 = vpack.c.bf16 %v523_v53, %v516_v52 }
 0x1a2   : > { %3121 = vmatmul.mubr.bf16.gmra.mrb[16].mxu1 %v6744_v57  ;;  %5810 = vmatprep.mubr.msk.bf16.mxu0 %vm1667_vm0, %v6745_v60  ;;  %v826_v57 = vpack.c.bf16 %v525_v56, %v518_v54  ;;  %v6813_v54 = vld [vmem:[%s7350_s13 + $0x368] ss:$16 sps:$4 sm:$0xff]  }
 0x1a3   : > { %5849 = vmatprep.mubr.msk.bf16.mxu1 %vm1667_vm0, %v6745_v60  ;;  %3486 = vmatpush1.bf16.msra.mxu0 %v796_v61  ;;  %v6780_v60 = vld [vmem:[%s7350_s13 + $0x208] ss:$16 sps:$4 sm:$0xff]   ;;  %v6781_v61 = vld [vmem:[%s7350_s13 + $0x22c] ss:$16 sps:$4 sm:$0xff]  }
 0x1a4   : > { %4328 = vmatpush1.bf16.msra.mxu1 %v798_v62  ;;  %3487 = vmatprep.subr.bf16.mxu0 %v804_v7  ;;  %v531_v62 = vld [vmem:[%s9392_s1 + $0x5d8] sm:$0xff]  ;;  %v833_v7 = vpack.c.bf16 %v539_v5, %v532_v3 }
 0x1a5   : > { %4329 = vmatprep.subr.bf16.mxu1 %v7022_v4  ;;  %v6817_v3 = vld [vmem:[%s7350_s13 + $0x3ac] ss:$16 sps:$4 sm:$0xff]  }
 0x1a7   : > { %3488 = vmatpush1.bf16.msra.mxu0 %v803_v11  ;;  %v6787_v11 = vld [vmem:[%s7350_s13 + $0x26c] ss:$16 sps:$4 sm:$0xff]  }
 0x1a8   : > { %4330 = vmatpush1.bf16.msra.mxu1 %v805_v12  ;;  %3489 = vmatprep.subr.bf16.mxu0 %v811_v20  ;;  %v545_v12 = vld [vmem:[%s9392_s1 + $0x648] sm:$0xff]  ;;  %v840_v20 = vpack.c.bf16 %v553_v18, %v546_v17 }
 0x1a9   : > { %2289 = vmatmul.mubr.bf16.gmra.mrb[20].mxu0 %v6747_v63  ;;  %4331 = vmatprep.subr.bf16.mxu1 %v7022_v4 }
 0x1aa   : > { %3131 = vmatmul.mubr.bf16.gmra.mrb[20].mxu1 %v6747_v63  ;;  %5811 = vmatprep.mubr.msk.bf16.mxu0 %vm1667_vm0, %v6748_v0  ;;  %v538_v63 = vld [vmem:[%s9392_s1 + $0x610] sm:$0xff] }
 0x1ab   : > { %5850 = vmatprep.mubr.msk.bf16.mxu1 %vm1667_vm0, %v6748_v0  ;;  %3490 = vmatpush1.bf16.msra.mxu0 %v810_v24  ;;  %v530_v0 = vld [vmem:[%s9392_s1 + $0x5d0] sm:$0xff]  ;;  %v6793_v24 = vld [vmem:[%s7350_s13 + $0x2ac] ss:$16 sps:$4 sm:$0xff]  }
 0x1ac   : > { %4332 = vmatpush1.bf16.msra.mxu1 %v812_v25  ;;  %3491 = vmatprep.subr.bf16.mxu0 %v818_v36  ;;  %v6795_v25 = vld [vmem:[%s7350_s13 + $0x2a8] ss:$16 sps:$4 sm:$0xff]  }
 0x1ad   : > { %4333 = vmatprep.subr.bf16.mxu1 %v7022_v4  ;;  %v567_v36 = vld [vmem:[%s9392_s1 + $0x6f8] sm:$0xff] }
 0x1ae   : > { %v847_v37 = vpack.c.bf16 %v567_v36, %v560_v32  ;;  %v6826_v36 = vld [vmem:[%s7350_s13 + $0x40c] ss:$16 sps:$4 sm:$0xff]  }
 0x1af   : > { %3492 = vmatpush1.bf16.msra.mxu0 %v817_v40  ;;  %v6801_v40 = vld [vmem:[%s7350_s13 + $0x2e8] ss:$16 sps:$4 sm:$0xff]  }
 0x1b0   : > { %4334 = vmatpush1.bf16.msra.mxu1 %v819_v42  ;;  %3493 = vmatprep.subr.bf16.mxu0 %v825_v49  ;;  %v573_v42 = vld [vmem:[%s9392_s1 + $0x728] sm:$0xff] }
 0x1b1   : > { %2299 = vmatmul.mubr.bf16.gmra.mrb[24].mxu0 %v6750_v1  ;;  %4335 = vmatprep.subr.bf16.mxu1 %v7022_v4  ;;  %v6810_v49 = vld [vmem:[%s7350_s13 + $0x348] ss:$16 sps:$4 sm:$0xff]  }
 0x1b2   : > { %3141 = vmatmul.mubr.bf16.gmra.mrb[24].mxu1 %v6750_v1  ;;  %5812 = vmatprep.mubr.msk.bf16.mxu0 %vm1667_vm0, %v6751_v2  ;;  %v832_v1 = vpack.c.bf16 %v538_v63, %v531_v62 }
 0x1b3   : > { %5851 = vmatprep.mubr.msk.bf16.mxu1 %vm1667_vm0, %v6751_v2  ;;  %3494 = vmatpush1.bf16.msra.mxu0 %v824_v55  ;;  %v537_v2 = vld [vmem:[%s9392_s1 + $0x608] sm:$0xff] }
 0x1b4   : > { %4336 = vmatpush1.bf16.msra.mxu1 %v826_v57  ;;  %v831_v6 = vpack.c.bf16 %v537_v2, %v530_v0  ;;  %3495 = vmatprep.subr.bf16.mxu0 %v832_v1  ;;  %v6814_v57 = vld [vmem:[%s7350_s13 + $0x38c] ss:$16 sps:$4 sm:$0xff]   ;;  %v6816_v0 = vld [vmem:[%s7350_s13 + $0x388] ss:$16 sps:$4 sm:$0xff]  }
 0x1b5   : > { %4337 = vmatprep.subr.bf16.mxu1 %v7022_v4 }
 0x1b7   : > { %3496 = vmatpush1.bf16.msra.mxu0 %v831_v6 }
 0x1b8   : > { %4338 = vmatpush1.bf16.msra.mxu1 %v833_v7 }
 0x1b9   : > { %2309 = vmatmul.mubr.bf16.gmra.mrb[28].mxu0 %v6753_v13  ;;  %4339 = vmatprep.subr.bf16.mxu1 %v7022_v4 }
 0x1ba   : > { %3151 = vmatmul.mubr.bf16.gmra.mrb[28].mxu1 %v6753_v13  ;;  %5813 = vmatprep.mubr.msk.bf16.mxu0 %vm1667_vm0, %v6754_v14  ;;  %v552_v13 = vld [vmem:[%s9392_s1 + $0x680] sm:$0xff] }
 0x1bb   : > { %5852 = vmatprep.mubr.msk.bf16.mxu1 %vm1667_vm0, %v6754_v14  ;;  %v544_v14 = vld [vmem:[%s9392_s1 + $0x640] sm:$0xff] }
 0x1bc   : > { %4340 = vmatpush1.bf16.msra.mxu1 %v840_v20 }
 0x1bd   : > { %4341 = vmatprep.subr.bf16.mxu1 %v7022_v4 }
 0x1c0   : > { %4342 = vmatpush1.bf16.msra.mxu1 %v847_v37 }
 0x1c1   : > { %2319 = vmatmul.mubr.bf16.gmra.mrb[32].mxu0 %v6756_v15  ;;  %4655 = vmatprep.subr.bf16.mxu1 %v7022_v4 }
 0x1c2   : > { %3161 = vmatmul.mubr.bf16.gmra.mrb[32].mxu1 %v6756_v15  ;;  %5814 = vmatprep.mubr.msk.bf16.mxu0 %vm1667_vm0, %v6757_v16  ;;  %v839_v15 = vpack.c.bf16 %v552_v13, %v545_v12 }
 0x1c3   : > { %5853 = vmatprep.mubr.msk.bf16.mxu1 %vm1667_vm0, %v6757_v16  ;;  %v551_v16 = vld [vmem:[%s9392_s1 + $0x678] sm:$0xff] }
 0x1c4   : > { %v838_v19 = vpack.c.bf16 %v551_v16, %v544_v14  ;;  %3497 = vmatprep.subr.bf16.mxu0 %v839_v15  ;;  %v6820_v14 = vld [vmem:[%s7350_s13 + $0x3cc] ss:$16 sps:$4 sm:$0xff]  }
 0x1c6   : > { %3498 = vmatpush1.bf16.msra.mxu0 %v838_v19 }
 0x1c9   : > { %2329 = vmatmul.mubr.bf16.gmra.mrb[36].mxu0 %v6759_v26 }
 0x1ca   : > { %3171 = vmatmul.mubr.bf16.gmra.mrb[36].mxu1 %v6759_v26  ;;  %5815 = vmatprep.mubr.msk.bf16.mxu0 %vm1667_vm0, %v6760_v27  ;;  %v6796_v26 = vld [vmem:[%s7350_s13 + $0x2cc] ss:$16 sps:$4 sm:$0xff]  }
 0x1cb   : > { %5854 = vmatprep.mubr.msk.bf16.mxu1 %vm1667_vm0, %v6760_v27  ;;  %v559_v27 = vld [vmem:[%s9392_s1 + $0x6b8] sm:$0xff] }
 0x1d1   : > { %2339 = vmatmul.mubr.bf16.gmra.mrb[40].mxu0 %v6762_v28 }
 0x1d2   : > { %3181 = vmatmul.mubr.bf16.gmra.mrb[40].mxu1 %v6762_v28  ;;  %5816 = vmatprep.mubr.msk.bf16.mxu0 %vm1667_vm0, %v6763_v29  ;;  %v566_v28 = vld [vmem:[%s9392_s1 + $0x6f0] sm:$0xff] }
 0x1d3   : > { %5855 = vmatprep.mubr.msk.bf16.mxu1 %vm1667_vm0, %v6763_v29  ;;  %v846_v29 = vpack.c.bf16 %v566_v28, %v559_v27 }
 0x1d5   : > { %3499 = vmatprep.subr.bf16.mxu0 %v846_v29 }
 0x1d9   : > { %2349 = vmatmul.mubr.bf16.gmra.mrb[44].mxu0 %v6765_v30 }
 0x1da   : > { %3191 = vmatmul.mubr.bf16.gmra.mrb[44].mxu1 %v6765_v30  ;;  %5817 = vmatprep.mubr.msk.bf16.mxu0 %vm1667_vm0, %v6766_v31  ;;  %v558_v30 = vld [vmem:[%s9392_s1 + $0x6b0] sm:$0xff] }
 0x1db   : > { %5856 = vmatprep.mubr.msk.bf16.mxu1 %vm1667_vm0, %v6766_v31  ;;  %v565_v31 = vld [vmem:[%s9392_s1 + $0x6e8] sm:$0xff] }
 0x1dc   : > { %v845_v35 = vpack.c.bf16 %v565_v31, %v558_v30  ;;  %v6825_v31 = vld [vmem:[%s7350_s13 + $0x3e8] ss:$16 sps:$4 sm:$0xff]  }
 0x1de   : > { %3500 = vmatpush1.bf16.msra.mxu0 %v845_v35 }
 0x1e1   : > { %2359 = vmatmul.mubr.bf16.gmra.mrb[48].mxu0 %v6768_v43 }
 0x1e2   : > { %3201 = vmatmul.mubr.bf16.gmra.mrb[48].mxu1 %v6768_v43  ;;  %5818 = vmatprep.mubr.msk.bf16.mxu0 %vm1667_vm0, %v6769_v44  ;;  %v580_v43 = vld [vmem:[%s9392_s1 + $0x760] sm:$0xff] }
 0x1e3   : > { %5857 = vmatprep.mubr.msk.bf16.mxu1 %vm1667_vm0, %v6769_v44  ;;  %v853_v44 = vpack.c.bf16 %v580_v43, %v573_v42  ;;  %v6828_v43 = vld [vmem:[%s7350_s13 + $0x408] ss:$16 sps:$4 sm:$0xff]  }
 0x1e5   : > { %3890 = vmatprep.subr.bf16.mxu0 %v853_v44 }
 0x1e9   : > { %2369 = vmatmul.mubr.bf16.gmra.mrb[52].mxu0 %v6771_v45 }
 0x1ea   : > { %3211 = vmatmul.mubr.bf16.gmra.mrb[52].mxu1 %v6771_v45  ;;  %5819 = vmatprep.mubr.msk.bf16.mxu0 %vm1667_vm0, %v6772_v46  ;;  %v6804_v45 = vld [vmem:[%s7350_s13 + $0x308] ss:$16 sps:$4 sm:$0xff]  }
 0x1eb   : > { %5858 = vmatprep.mubr.msk.bf16.mxu1 %vm1667_vm0, %v6772_v46  ;;  %v6805_v46 = vld [vmem:[%s7350_s13 + $0x32c] ss:$16 sps:$4 sm:$0xff]  }
 0x1f1   : > { %2379 = vmatmul.mubr.bf16.gmra.mrb[56].mxu0 %v6774_v50 }
 0x1f2   : > { %3221 = vmatmul.mubr.bf16.gmra.mrb[56].mxu1 %v6774_v50  ;;  %5820 = vmatprep.mubr.msk.bf16.mxu0 %vm1667_vm0, %v6775_v51  ;;  %v6811_v50 = vld [vmem:[%s7350_s13 + $0x36c] ss:$16 sps:$4 sm:$0xff]  }
 0x1f3   : > { %5859 = vmatprep.mubr.msk.bf16.mxu1 %vm1667_vm0, %v6775_v51 }
 0x1f9   : > { %2389 = vmatmul.mubr.bf16.gmra.mrb[60].mxu0 %v6777_v58 }
 0x1fa   : > { %3231 = vmatmul.mubr.bf16.gmra.mrb[60].mxu1 %v6777_v58  ;;  %5821 = vmatprep.mubr.msk.bf16.mxu0 %vm1667_vm0, %v6778_v59 }
 0x1fb   : > { %5860 = vmatprep.mubr.msk.bf16.mxu1 %vm1667_vm0, %v6778_v59 }
 0x201   : > { %2399 = vmatmul.mubr.bf16.gmra.mrb[64].mxu0 %v6780_v60 }
 0x202   : > { %3241 = vmatmul.mubr.bf16.gmra.mrb[64].mxu1 %v6780_v60  ;;  %5822 = vmatprep.mubr.msk.bf16.mxu0 %vm1667_vm0, %v6781_v61 }
 0x203   : > { %5861 = vmatprep.mubr.msk.bf16.mxu1 %vm1667_vm0, %v6781_v61 }
 0x209   : > { %2409 = vmatmul.mubr.bf16.gmra.mrb[68].mxu0 %v6783_v8 }
 0x20a   : > { %3251 = vmatmul.mubr.bf16.gmra.mrb[68].mxu1 %v6783_v8  ;;  %5823 = vmatprep.mubr.msk.bf16.mxu0 %vm1667_vm0, %v6784_v9 }
 0x20b   : > { %5862 = vmatprep.mubr.msk.bf16.mxu1 %vm1667_vm0, %v6784_v9 }
 0x211   : > { %2419 = vmatmul.mubr.bf16.gmra.mrb[72].mxu0 %v6786_v10 }
 0x212   : > { %3261 = vmatmul.mubr.bf16.gmra.mrb[72].mxu1 %v6786_v10  ;;  %5824 = vmatprep.mubr.msk.bf16.mxu0 %vm1667_vm0, %v6787_v11 }
 0x213   : > { %5863 = vmatprep.mubr.msk.bf16.mxu1 %vm1667_vm0, %v6787_v11  ;;  %v6819_v11 = vld [vmem:[%s7350_s13 + $0x3a8] ss:$16 sps:$4 sm:$0xff]  }
 0x219   : > { %2429 = vmatmul.mubr.bf16.gmra.mrb[76].mxu0 %v6789_v21 }
 0x21a   : > { %3271 = vmatmul.mubr.bf16.gmra.mrb[76].mxu1 %v6789_v21  ;;  %5825 = vmatprep.mubr.msk.bf16.mxu0 %vm1667_vm0, %v6790_v22  ;;  %v6822_v21 = vld [vmem:[%s7350_s13 + $0x3c8] ss:$16 sps:$4 sm:$0xff]  }
 0x21b   : > { %5864 = vmatprep.mubr.msk.bf16.mxu1 %vm1667_vm0, %v6790_v22 }
 0x221   : > { %2439 = vmatmul.mubr.bf16.gmra.mrb[80].mxu0 %v6792_v23 }
 0x222   : > { %3281 = vmatmul.mubr.bf16.gmra.mrb[80].mxu1 %v6792_v23  ;;  %5826 = vmatprep.mubr.msk.bf16.mxu0 %vm1667_vm0, %v6793_v24 }
 0x223   : > { %5865 = vmatprep.mubr.msk.bf16.mxu1 %vm1667_vm0, %v6793_v24  ;;  %v6823_v24 = vld [vmem:[%s7350_s13 + $0x3ec] ss:$16 sps:$4 sm:$0xff]  }
 0x229   : > { %2449 = vmatmul.mubr.bf16.gmra.mrb[84].mxu0 %v6795_v25 }
 0x22a   : > { %3291 = vmatmul.mubr.bf16.gmra.mrb[84].mxu1 %v6795_v25  ;;  %5827 = vmatprep.mubr.msk.bf16.mxu0 %vm1667_vm0, %v6796_v26 }
 0x22b   : > { %5866 = vmatprep.mubr.msk.bf16.mxu1 %vm1667_vm0, %v6796_v26 }
 0x231   : > { %2459 = vmatmul.mubr.bf16.gmra.mrb[88].mxu0 %v6798_v38 }
 0x232   : > { %3301 = vmatmul.mubr.bf16.gmra.mrb[88].mxu1 %v6798_v38  ;;  %5828 = vmatprep.mubr.msk.bf16.mxu0 %vm1667_vm0, %v6799_v39 }
 0x233   : > { %5867 = vmatprep.mubr.msk.bf16.mxu1 %vm1667_vm0, %v6799_v39 }
 0x239   : > { %2469 = vmatmul.mubr.bf16.gmra.mrb[92].mxu0 %v6801_v40 }
 0x23a   : > { %3311 = vmatmul.mubr.bf16.gmra.mrb[92].mxu1 %v6801_v40  ;;  %5829 = vmatprep.mubr.msk.bf16.mxu0 %vm1667_vm0, %v6802_v41 }
 0x23b   : > { %5868 = vmatprep.mubr.msk.bf16.mxu1 %vm1667_vm0, %v6802_v41 }
 0x241   : > { %2479 = vmatmul.mubr.bf16.gmra.mrb[96].mxu0 %v6804_v45 }
 0x242   : > { %3321 = vmatmul.mubr.bf16.gmra.mrb[96].mxu1 %v6804_v45  ;;  %5830 = vmatprep.mubr.msk.bf16.mxu0 %vm1667_vm0, %v6805_v46 }
 0x243   : > { %5869 = vmatprep.mubr.msk.bf16.mxu1 %vm1667_vm0, %v6805_v46  ;;  %v6829_v46 = vld [vmem:[%s7350_s13 + $0x42c] ss:$16 sps:$4 sm:$0xff]  }
 0x249   : > { %2489 = vmatmul.mubr.bf16.gmra.mrb[100].mxu0 %v6807_v47 }
 0x24a   : > { %3331 = vmatmul.mubr.bf16.gmra.mrb[100].mxu1 %v6807_v47  ;;  %5831 = vmatprep.mubr.msk.bf16.mxu0 %vm1667_vm0, %v6808_v48 }
 0x24b   : > { %5870 = vmatprep.mubr.msk.bf16.mxu1 %vm1667_vm0, %v6808_v48 }
 0x251   : > { %2499 = vmatmul.mubr.bf16.gmra.mrb[104].mxu0 %v6810_v49 }
 0x252   : > { %3341 = vmatmul.mubr.bf16.gmra.mrb[104].mxu1 %v6810_v49  ;;  %5832 = vmatprep.mubr.msk.bf16.mxu0 %vm1667_vm0, %v6811_v50 }
 0x253   : > { %5871 = vmatprep.mubr.msk.bf16.mxu1 %vm1667_vm0, %v6811_v50 }
 0x254   : > { %v2240_v51 = vpop.f32.mrb[0].mxu0 }
 0x255   : > { %4999 = vst [vmem:[%s8251_s8] sm:$0xff] %v2240_v51  ;;  %v3082_v52 = vpop.f32.mrb[0].mxu1  ;;  %v2242_v53 = vpop.f32.mrb[1].mxu0 }
 0x256   : > { %5001 = vst [vmem:[%s8251_s8 + $0x10] sm:$0xff] %v3082_v52  ;;  %5000 = vst [vmem:[%s8251_s8 + $0x8] sm:$0xff] %v2242_v53  ;;  %v3084_v55 = vpop.f32.mrb[1].mxu1  ;;  %v2244_v56 = vpop.f32.mrb[2].mxu0  ;;  %v6831_v53 = vld [vmem:[%s7350_s13 + $0x428] ss:$16 sps:$4 sm:$0xff]  }
 0x257   : > { %5002 = vst [vmem:[%s8251_s8 + $0x18] sm:$0xff] %v3084_v55  ;;  %5007 = vst [vmem:[%s8251_s8 + $0x38] sm:$0xff] %v2244_v56  ;;  %v3086_v58 = vpop.f32.mrb[2].mxu1  ;;  %v2246_v59 = vpop.f32.mrb[3].mxu0  ;;  %v6832_v56 = vld [vmem:[%s7350_s13 + $0x44c] ss:$16 sps:$4 sm:$0xff]  }
 0x258   : > { %5009 = vst [vmem:[%s8251_s8 + $0x48] sm:$0xff] %v3086_v58  ;;  %5008 = vst [vmem:[%s8251_s8 + $0x40] sm:$0xff] %v2246_v59  ;;  %v3088_v60 = vpop.f32.mrb[3].mxu1 }
 0x259   : > { %5010 = vst [vmem:[%s8251_s8 + $0x50] sm:$0xff] %v3088_v60  ;;  %2509 = vmatmul.mubr.bf16.gmra.mrb[108].mxu0 %v6813_v54 }
 0x25a   : > { %3351 = vmatmul.mubr.bf16.gmra.mrb[108].mxu1 %v6813_v54  ;;  %5833 = vmatprep.mubr.msk.bf16.mxu0 %vm1667_vm0, %v6814_v57 }
 0x25b   : > { %5872 = vmatprep.mubr.msk.bf16.mxu1 %vm1667_vm0, %v6814_v57 }
 0x25c   : > { %v2250_v61 = vpop.f32.mrb[4].mxu0 }
 0x25d   : > { %5014 = vst [vmem:[%s8251_s8 + $0x70] sm:$0xff] %v2250_v61  ;;  %v3092_v62 = vpop.f32.mrb[4].mxu1  ;;  %v2252_v63 = vpop.f32.mrb[5].mxu0 }
 0x25e   : > { %5016 = vst [vmem:[%s8251_s8 + $0x80] sm:$0xff] %v3092_v62  ;;  %5015 = vst [vmem:[%s8251_s8 + $0x78] sm:$0xff] %v2252_v63  ;;  %v3094_v1 = vpop.f32.mrb[5].mxu1  ;;  %v2254_v2 = vpop.f32.mrb[6].mxu0  ;;  %v6834_v63 = vld [vmem:[%s7350_s13 + $0x448] ss:$16 sps:$4 sm:$0xff]  }
 0x25f   : > { %5017 = vst [vmem:[%s8251_s8 + $0x88] sm:$0xff] %v3094_v1  ;;  %5021 = vst [vmem:[%s8251_s8 + $0xa8] sm:$0xff] %v2254_v2  ;;  %v3096_v5 = vpop.f32.mrb[6].mxu1  ;;  %v2256_v6 = vpop.f32.mrb[7].mxu0  ;;  %v6835_v2 = vld [vmem:[%s7350_s13 + $0x46c] ss:$16 sps:$4 sm:$0xff]  }
 0x260   : > { %5023 = vst [vmem:[%s8251_s8 + $0xb8] sm:$0xff] %v3096_v5  ;;  %5022 = vst [vmem:[%s8251_s8 + $0xb0] sm:$0xff] %v2256_v6  ;;  %v3098_v7 = vpop.f32.mrb[7].mxu1 }
 0x261   : > { %5024 = vst [vmem:[%s8251_s8 + $0xc0] sm:$0xff] %v3098_v7  ;;  %2519 = vmatmul.mubr.bf16.gmra.mrb[112].mxu0 %v6816_v0 }
 0x262   : > { %3361 = vmatmul.mubr.bf16.gmra.mrb[112].mxu1 %v6816_v0  ;;  %5834 = vmatprep.mubr.msk.bf16.mxu0 %vm1667_vm0, %v6817_v3 }
 0x263   : > { %5873 = vmatprep.mubr.msk.bf16.mxu1 %vm1667_vm0, %v6817_v3 }
 0x264   : > { %v2260_v8 = vpop.f32.mrb[8].mxu0 }
 0x265   : > { %5028 = vst [vmem:[%s8251_s8 + $0xe0] sm:$0xff] %v2260_v8  ;;  %v3102_v9 = vpop.f32.mrb[8].mxu1  ;;  %v2262_v10 = vpop.f32.mrb[9].mxu0 }
 0x266   : > { %5030 = vst [vmem:[%s8251_s8 + $0xf0] sm:$0xff] %v3102_v9  ;;  %5029 = vst [vmem:[%s8251_s8 + $0xe8] sm:$0xff] %v2262_v10  ;;  %v3104_v12 = vpop.f32.mrb[9].mxu1  ;;  %v2264_v13 = vpop.f32.mrb[10].mxu0  ;;  %v6837_v10 = vld [vmem:[%s7350_s13 + $0x468] ss:$16 sps:$4 sm:$0xff]  }
 0x267   : > { %5031 = vst [vmem:[%s8251_s8 + $0xf8] sm:$0xff] %v3104_v12  ;;  %5035 = vst [vmem:[%s8251_s8 + $0x118] sm:$0xff] %v2264_v13  ;;  %v3106_v15 = vpop.f32.mrb[10].mxu1  ;;  %v2266_v16 = vpop.f32.mrb[11].mxu0  ;;  %v6838_v13 = vld [vmem:[%s7350_s13 + $0x48c] ss:$16 sps:$4 sm:$0xff]  }
 0x268   : > { %5037 = vst [vmem:[%s8251_s8 + $0x128] sm:$0xff] %v3106_v15  ;;  %5036 = vst [vmem:[%s8251_s8 + $0x120] sm:$0xff] %v2266_v16  ;;  %v3108_v17 = vpop.f32.mrb[11].mxu1 }
 0x269   : > { %5038 = vst [vmem:[%s8251_s8 + $0x130] sm:$0xff] %v3108_v17  ;;  %2529 = vmatmul.mubr.bf16.gmra.mrb[116].mxu0 %v6819_v11 }
 0x26a   : > { %3371 = vmatmul.mubr.bf16.gmra.mrb[116].mxu1 %v6819_v11  ;;  %5835 = vmatprep.mubr.msk.bf16.mxu0 %vm1667_vm0, %v6820_v14 }
 0x26b   : > { %5874 = vmatprep.mubr.msk.bf16.mxu1 %vm1667_vm0, %v6820_v14 }
 0x26c   : > { %v2270_v18 = vpop.f32.mrb[12].mxu0 }
 0x26d   : > { %5042 = vst [vmem:[%s8251_s8 + $0x150] sm:$0xff] %v2270_v18  ;;  %v3112_v19 = vpop.f32.mrb[12].mxu1  ;;  %v2272_v20 = vpop.f32.mrb[13].mxu0 }
 0x26e   : > { %5044 = vst [vmem:[%s8251_s8 + $0x160] sm:$0xff] %v3112_v19  ;;  %5043 = vst [vmem:[%s8251_s8 + $0x158] sm:$0xff] %v2272_v20  ;;  %v3114_v22 = vpop.f32.mrb[13].mxu1  ;;  %v2274_v23 = vpop.f32.mrb[14].mxu0  ;;  %v6840_v20 = vld [vmem:[%s7350_s13 + $0x488] ss:$16 sps:$4 sm:$0xff]  }
 0x26f   : > { %5045 = vst [vmem:[%s8251_s8 + $0x168] sm:$0xff] %v3114_v22  ;;  %5049 = vst [vmem:[%s8251_s8 + $0x188] sm:$0xff] %v2274_v23  ;;  %v3116_v25 = vpop.f32.mrb[14].mxu1  ;;  %v2276_v26 = vpop.f32.mrb[15].mxu0  ;;  %v6841_v23 = vld [vmem:[%s7350_s13 + $0x4ac] ss:$16 sps:$4 sm:$0xff]  }
 0x270   : > { %5051 = vst [vmem:[%s8251_s8 + $0x198] sm:$0xff] %v3116_v25  ;;  %5050 = vst [vmem:[%s8251_s8 + $0x190] sm:$0xff] %v2276_v26  ;;  %v3118_v27 = vpop.f32.mrb[15].mxu1 }
 0x271   : > { %5052 = vst [vmem:[%s8251_s8 + $0x1a0] sm:$0xff] %v3118_v27  ;;  %2539 = vmatmul.mubr.bf16.gmra.mrb[120].mxu0 %v6822_v21  ;;  %v343_v27 = vld [vmem:[%s7350_s13 + $0x4c8] sm:$0xff] }
 0x272   : > { %3381 = vmatmul.mubr.bf16.gmra.mrb[120].mxu1 %v6822_v21  ;;  %5836 = vmatprep.mubr.msk.bf16.mxu0 %vm1667_vm0, %v6823_v24 }
 0x273   : > { %5875 = vmatprep.mubr.msk.bf16.mxu1 %vm1667_vm0, %v6823_v24 }
 0x274   : > { %v2280_v28 = vpop.f32.mrb[16].mxu0 }
 0x275   : > { %5056 = vst [vmem:[%s8251_s8 + $0x1c0] sm:$0xff] %v2280_v28  ;;  %v3122_v29 = vpop.f32.mrb[16].mxu1  ;;  %v2282_v30 = vpop.f32.mrb[17].mxu0 }
 0x276   : > { %5058 = vst [vmem:[%s8251_s8 + $0x1d0] sm:$0xff] %v3122_v29  ;;  %5057 = vst [vmem:[%s8251_s8 + $0x1c8] sm:$0xff] %v2282_v30  ;;  %v3124_v32 = vpop.f32.mrb[17].mxu1  ;;  %v2284_v35 = vpop.f32.mrb[18].mxu0 }
 0x277   : > { %5059 = vst [vmem:[%s8251_s8 + $0x1d8] sm:$0xff] %v3124_v32  ;;  %5063 = vst [vmem:[%s8251_s8 + $0x1f8] sm:$0xff] %v2284_v35  ;;  %v3126_v37 = vpop.f32.mrb[18].mxu1  ;;  %v2286_v38 = vpop.f32.mrb[19].mxu0 }
 0x278   : > { %5065 = vst [vmem:[%s8251_s8 + $0x208] sm:$0xff] %v3126_v37  ;;  %5064 = vst [vmem:[%s8251_s8 + $0x200] sm:$0xff] %v2286_v38  ;;  %v3128_v39 = vpop.f32.mrb[19].mxu1 }
 0x279   : > { %5066 = vst [vmem:[%s8251_s8 + $0x210] sm:$0xff] %v3128_v39  ;;  %2549 = vmatmul.mubr.bf16.gmra.mrb[124].mxu0 %v6825_v31 }
 0x27a   : > { %3391 = vmatmul.mubr.bf16.gmra.mrb[124].mxu1 %v6825_v31  ;;  %5837 = vmatprep.mubr.msk.bf16.mxu0 %vm1667_vm0, %v6826_v36  ;;  %v6843_v31 = vld [vmem:[%s7350_s13 + $0x4a8] ss:$16 sps:$4 sm:$0xff]  }
 0x27b   : > { %5876 = vmatprep.mubr.msk.bf16.mxu1 %vm1667_vm0, %v6826_v36  ;;  %v8380_v36 = vcombine.high %v343_v27, %v343_v27 }
 0x27c   : > { %v2290_v40 = vpop.f32.mrb[20].mxu0 }
 0x27d   : > { %5070 = vst [vmem:[%s8251_s8 + $0x230] sm:$0xff] %v2290_v40  ;;  %v3132_v41 = vpop.f32.mrb[20].mxu1  ;;  %v2292_v42 = vpop.f32.mrb[21].mxu0 }
 0x27e   : > { %5072 = vst [vmem:[%s8251_s8 + $0x240] sm:$0xff] %v3132_v41  ;;  %5071 = vst [vmem:[%s8251_s8 + $0x238] sm:$0xff] %v2292_v42  ;;  %v3134_v44 = vpop.f32.mrb[21].mxu1  ;;  %v2294_v45 = vpop.f32.mrb[22].mxu0 }
 0x27f   : > { %5073 = vst [vmem:[%s8251_s8 + $0x248] sm:$0xff] %v3134_v44  ;;  %5077 = vst [vmem:[%s8251_s8 + $0x268] sm:$0xff] %v2294_v45  ;;  %v3136_v47 = vpop.f32.mrb[22].mxu1  ;;  %v2296_v48 = vpop.f32.mrb[23].mxu0 }
 0x280   : > { %5079 = vst [vmem:[%s8251_s8 + $0x278] sm:$0xff] %v3136_v47  ;;  %5078 = vst [vmem:[%s8251_s8 + $0x270] sm:$0xff] %v2296_v48  ;;  %v3138_v49 = vpop.f32.mrb[23].mxu1 }
 0x281   : > { %5080 = vst [vmem:[%s8251_s8 + $0x280] sm:$0xff] %v3138_v49  ;;  %2559 = vmatmul.mubr.bf16.gmra.mrb[128].mxu0 %v6828_v43  ;;  %v6846_v49 = vld [vmem:[%s7350_s13 + $0x4] ss:$16 sps:$4 sm:$0xff]  }
 0x282   : > { %3401 = vmatmul.mubr.bf16.gmra.mrb[128].mxu1 %v6828_v43  ;;  %5838 = vmatprep.mubr.msk.bf16.mxu0 %vm1667_vm0, %v6829_v46  ;;  %v8392_v43 = vcombine.low %v343_v27, %v343_v27 }
 0x283   : > { %5877 = vmatprep.mubr.msk.bf16.mxu1 %vm1667_vm0, %v6829_v46 }
 0x284   : > { %v2300_v50 = vpop.f32.mrb[24].mxu0 }
 0x285   : > { %5084 = vst [vmem:[%s8251_s8 + $0x2a0] sm:$0xff] %v2300_v50  ;;  %v3142_v51 = vpop.f32.mrb[24].mxu1  ;;  %v2302_v52 = vpop.f32.mrb[25].mxu0  ;;  %v572_v50 = vld [vmem:[%s9392_s1 + $0x720] sm:$0xff] }
 0x286   : > { %5086 = vst [vmem:[%s8251_s8 + $0x2b0] sm:$0xff] %v3142_v51  ;;  %5085 = vst [vmem:[%s8251_s8 + $0x2a8] sm:$0xff] %v2302_v52  ;;  %v3144_v54 = vpop.f32.mrb[25].mxu1  ;;  %v2304_v55 = vpop.f32.mrb[26].mxu0  ;;  %v579_v51 = vld [vmem:[%s9392_s1 + $0x758] sm:$0xff] }
 0x287   : > { %5087 = vst [vmem:[%s8251_s8 + $0x2b8] sm:$0xff] %v3144_v54  ;;  %5091 = vst [vmem:[%s8251_s8 + $0x2d8] sm:$0xff] %v2304_v55  ;;  %v3146_v57 = vpop.f32.mrb[26].mxu1  ;;  %v2306_v58 = vpop.f32.mrb[27].mxu0  ;;  %v581_v54 = vld [vmem:[%s9392_s1 + $0x768] sm:$0xff] }
 0x288   : > { %5093 = vst [vmem:[%s8251_s8 + $0x2e8] sm:$0xff] %v3146_v57  ;;  %5092 = vst [vmem:[%s8251_s8 + $0x2e0] sm:$0xff] %v2306_v58  ;;  %v3148_v59 = vpop.f32.mrb[27].mxu1  ;;  %v587_v57 = vld [vmem:[%s9392_s1 + $0x798] sm:$0xff]  ;;  %v594_v58 = vld [vmem:[%s9392_s1 + $0x7d0] sm:$0xff] }
 0x289   : > { %5094 = vst [vmem:[%s8251_s8 + $0x2f0] sm:$0xff] %v3148_v59  ;;  %2569 = vmatmul.mubr.bf16.gmra.mrb[132].mxu0 %v6831_v53 }
 0x28a   : > { %3411 = vmatmul.mubr.bf16.gmra.mrb[132].mxu1 %v6831_v53  ;;  %5839 = vmatprep.mubr.msk.bf16.mxu0 %vm1667_vm0, %v6832_v56  ;;  %v574_v53 = vld [vmem:[%s9392_s1 + $0x730] sm:$0xff] }
 0x28b   : > { %5878 = vmatprep.mubr.msk.bf16.mxu1 %vm1667_vm0, %v6832_v56 }
 0x28c   : > { %v2310_v60 = vpop.f32.mrb[28].mxu0 }
 0x28d   : > { %5098 = vst [vmem:[%s8251_s8 + $0x310] sm:$0xff] %v2310_v60  ;;  %v3152_v61 = vpop.f32.mrb[28].mxu1  ;;  %v2312_v62 = vpop.f32.mrb[29].mxu0 }
 0x28e   : > { %5100 = vst [vmem:[%s8251_s8 + $0x320] sm:$0xff] %v3152_v61  ;;  %5099 = vst [vmem:[%s8251_s8 + $0x318] sm:$0xff] %v2312_v62  ;;  %v3154_v0 = vpop.f32.mrb[29].mxu1  ;;  %v2314_v1 = vpop.f32.mrb[30].mxu0  ;;  %v852_v61 = vpack.c.bf16 %v579_v51, %v572_v50  ;;  %v630_v50 = vld [vmem:[%s9392_s1 + $0x8f0] sm:$0xff] }
 0x28f   : > { %5101 = vst [vmem:[%s8251_s8 + $0x328] sm:$0xff] %v3154_v0  ;;  %5105 = vst [vmem:[%s8251_s8 + $0x348] sm:$0xff] %v2314_v1  ;;  %v3156_v3 = vpop.f32.mrb[30].mxu1  ;;  %v2316_v5 = vpop.f32.mrb[31].mxu0  ;;  %v854_v0 = vpack.c.bf16 %v581_v54, %v574_v53  ;;  %v586_v1 = vld [vmem:[%s9392_s1 + $0x790] sm:$0xff]  ;;  %v637_v53 = vld [vmem:[%s9392_s1 + $0x928] sm:$0xff] }
 0x290   : > { %5107 = vst [vmem:[%s8251_s8 + $0x358] sm:$0xff] %v3156_v3  ;;  %5106 = vst [vmem:[%s8251_s8 + $0x350] sm:$0xff] %v2316_v5  ;;  %v3158_v6 = vpop.f32.mrb[31].mxu1  ;;  %v588_v3 = vld [vmem:[%s9392_s1 + $0x7a0] sm:$0xff]  ;;  %v643_v54 = vld [vmem:[%s9392_s1 + $0x958] sm:$0xff] }
 0x291   : > { %5108 = vst [vmem:[%s8251_s8 + $0x360] sm:$0xff] %v3158_v6  ;;  %2579 = vmatmul.mubr.bf16.gmra.mrb[136].mxu0 %v6834_v63  ;;  %v860_v6 = vpack.c.bf16 %v594_v58, %v587_v57 }
 0x292   : > { %3421 = vmatmul.mubr.bf16.gmra.mrb[136].mxu1 %v6834_v63  ;;  %5840 = vmatprep.mubr.msk.bf16.mxu0 %vm1667_vm0, %v6835_v2 }
 0x293   : > { %5879 = vmatprep.mubr.msk.bf16.mxu1 %vm1667_vm0, %v6835_v2  ;;  %v593_v2 = vld [vmem:[%s9392_s1 + $0x7c8] sm:$0xff] }
 0x294   : > { %v2320_v7 = vpop.f32.mrb[32].mxu0 }
 0x295   : > { %5112 = vst [vmem:[%s8251_s8 + $0x380] sm:$0xff] %v2320_v7  ;;  %v3162_v8 = vpop.f32.mrb[32].mxu1  ;;  %v2322_v9 = vpop.f32.mrb[33].mxu0  ;;  %v595_v7 = vld [vmem:[%s9392_s1 + $0x7d8] sm:$0xff] }
 0x296   : > { %5114 = vst [vmem:[%s8251_s8 + $0x390] sm:$0xff] %v3162_v8  ;;  %5113 = vst [vmem:[%s8251_s8 + $0x388] sm:$0xff] %v2322_v9  ;;  %v3164_v11 = vpop.f32.mrb[33].mxu1  ;;  %v2324_v12 = vpop.f32.mrb[34].mxu0  ;;  %v601_v8 = vld [vmem:[%s9392_s1 + $0x808] sm:$0xff]  ;;  %v608_v9 = vld [vmem:[%s9392_s1 + $0x840] sm:$0xff] }
 0x297   : > { %5115 = vst [vmem:[%s8251_s8 + $0x398] sm:$0xff] %v3164_v11  ;;  %5119 = vst [vmem:[%s8251_s8 + $0x3b8] sm:$0xff] %v2324_v12  ;;  %v3166_v14 = vpop.f32.mrb[34].mxu1  ;;  %v2326_v15 = vpop.f32.mrb[35].mxu0  ;;  %v859_v11 = vpack.c.bf16 %v593_v2, %v586_v1  ;;  %v6848_v12 = vld [vmem:[%s7350_s13 + $0x24] ss:$16 sps:$4 sm:$0xff]  }
 0x298   : > { %5121 = vst [vmem:[%s8251_s8 + $0x3c8] sm:$0xff] %v3166_v14  ;;  %5120 = vst [vmem:[%s8251_s8 + $0x3c0] sm:$0xff] %v2326_v15  ;;  %v3168_v16 = vpop.f32.mrb[35].mxu1  ;;  %v867_v14 = vpack.c.bf16 %v608_v9, %v601_v8  ;;  %v649_v1 = vld [vmem:[%s9392_s1 + $0x988] sm:$0xff]  ;;  %v6851_v2 = vld [vmem:[%s7350_s13 + $0x40] ss:$16 sps:$4 sm:$0xff]  }
 0x299   : > { %5122 = vst [vmem:[%s8251_s8 + $0x3d0] sm:$0xff] %v3168_v16  ;;  %2589 = vmatmul.mubr.bf16.gmra.mrb[140].mxu0 %v6837_v10  ;;  %v600_v16 = vld [vmem:[%s9392_s1 + $0x800] sm:$0xff] }
 0x29a   : > { %3431 = vmatmul.mubr.bf16.gmra.mrb[140].mxu1 %v6837_v10  ;;  %5841 = vmatprep.mubr.msk.bf16.mxu0 %vm1667_vm0, %v6838_v13  ;;  %v6847_v10 = vld [vmem:[%s7350_s13] ss:$16 sps:$4 sm:$0xff]  }
 0x29b   : > { %5880 = vmatprep.mubr.msk.bf16.mxu1 %vm1667_vm0, %v6838_v13  ;;  %v861_v13 = vpack.c.bf16 %v595_v7, %v588_v3  ;;  %v644_v3 = vld [vmem:[%s9392_s1 + $0x960] sm:$0xff] }
 0x29c   : > { %v2330_v17 = vpop.f32.mrb[36].mxu0 }
 0x29d   : > { %5126 = vst [vmem:[%s8251_s8 + $0x3f0] sm:$0xff] %v2330_v17  ;;  %v3172_v18 = vpop.f32.mrb[36].mxu1  ;;  %v2332_v19 = vpop.f32.mrb[37].mxu0  ;;  %v607_v17 = vld [vmem:[%s9392_s1 + $0x838] sm:$0xff] }
 0x29e   : > { %5128 = vst [vmem:[%s8251_s8 + $0x400] sm:$0xff] %v3172_v18  ;;  %5127 = vst [vmem:[%s8251_s8 + $0x3f8] sm:$0xff] %v2332_v19  ;;  %v3174_v21 = vpop.f32.mrb[37].mxu1  ;;  %v2334_v22 = vpop.f32.mrb[38].mxu0  ;;  %v602_v18 = vld [vmem:[%s9392_s1 + $0x810] sm:$0xff] }
 0x29f   : > { %5129 = vst [vmem:[%s8251_s8 + $0x408] sm:$0xff] %v3174_v21  ;;  %5133 = vst [vmem:[%s8251_s8 + $0x428] sm:$0xff] %v2334_v22  ;;  %v3176_v24 = vpop.f32.mrb[38].mxu1  ;;  %v2336_v25 = vpop.f32.mrb[39].mxu0  ;;  %v609_v21 = vld [vmem:[%s9392_s1 + $0x848] sm:$0xff]  ;;  %v615_v22 = vld [vmem:[%s9392_s1 + $0x878] sm:$0xff] }
 0x2a0   : > { %5135 = vst [vmem:[%s8251_s8 + $0x438] sm:$0xff] %v3176_v24  ;;  %5134 = vst [vmem:[%s8251_s8 + $0x430] sm:$0xff] %v2336_v25  ;;  %v3178_v26 = vpop.f32.mrb[39].mxu1 }
 0x2a1   : > { %5136 = vst [vmem:[%s8251_s8 + $0x440] sm:$0xff] %v3178_v26  ;;  %2599 = vmatmul.mubr.bf16.gmra.mrb[144].mxu0 %v6840_v20 }
 0x2a2   : > { %3441 = vmatmul.mubr.bf16.gmra.mrb[144].mxu1 %v6840_v20  ;;  %5842 = vmatprep.mubr.msk.bf16.mxu0 %vm1667_vm0, %v6841_v23 }
 0x2a3   : > { %5881 = vmatprep.mubr.msk.bf16.mxu1 %vm1667_vm0, %v6841_v23  ;;  %v622_v23 = vld [vmem:[%s9392_s1 + $0x8b0] sm:$0xff] }
 0x2a4   : > { %v2340_v28 = vpop.f32.mrb[40].mxu0 }
 0x2a5   : > { %5140 = vst [vmem:[%s8251_s8 + $0x460] sm:$0xff] %v2340_v28  ;;  %v3182_v29 = vpop.f32.mrb[40].mxu1  ;;  %v2342_v30 = vpop.f32.mrb[41].mxu0  ;;  %v866_v28 = vpack.c.bf16 %v607_v17, %v600_v16  ;;  %v6853_v17 = vld [vmem:[%s7350_s13 + $0x60] ss:$16 sps:$4 sm:$0xff]  }
 0x2a6   : > { %5142 = vst [vmem:[%s8251_s8 + $0x470] sm:$0xff] %v3182_v29  ;;  %5141 = vst [vmem:[%s8251_s8 + $0x468] sm:$0xff] %v2342_v30  ;;  %v3184_v32 = vpop.f32.mrb[41].mxu1  ;;  %v2344_v35 = vpop.f32.mrb[42].mxu0  ;;  %v868_v30 = vpack.c.bf16 %v609_v21, %v602_v18  ;;  %v6854_v18 = vld [vmem:[%s7350_s13 + $0x84] ss:$16 sps:$4 sm:$0xff]  }
 0x2a7   : > { %5143 = vst [vmem:[%s8251_s8 + $0x478] sm:$0xff] %v3184_v32  ;;  %5147 = vst [vmem:[%s8251_s8 + $0x498] sm:$0xff] %v2344_v35  ;;  %v3186_v37 = vpop.f32.mrb[42].mxu1  ;;  %v2346_v38 = vpop.f32.mrb[43].mxu0  ;;  %v614_v32 = vld [vmem:[%s9392_s1 + $0x870] sm:$0xff]  ;;  %v621_v35 = vld [vmem:[%s9392_s1 + $0x8a8] sm:$0xff] }
 0x2a8   : > { %5149 = vst [vmem:[%s8251_s8 + $0x4a8] sm:$0xff] %v3186_v37  ;;  %5148 = vst [vmem:[%s8251_s8 + $0x4a0] sm:$0xff] %v2346_v38  ;;  %v3188_v39 = vpop.f32.mrb[43].mxu1  ;;  %v616_v37 = vld [vmem:[%s9392_s1 + $0x880] sm:$0xff] }
 0x2a9   : > { %5150 = vst [vmem:[%s8251_s8 + $0x4b0] sm:$0xff] %v3188_v39  ;;  %2609 = vmatmul.mubr.bf16.gmra.mrb[148].mxu0 %v6843_v31  ;;  %v6849_v38 = vld [vmem:[%s7350_s13 + $0x20] ss:$16 sps:$4 sm:$0xff]   ;;  %v623_v39 = vld [vmem:[%s9392_s1 + $0x8b8] sm:$0xff] }
 0x2aa   : > { %3451 = vmatmul.mubr.bf16.gmra.mrb[148].mxu1 %v6843_v31  ;;  %5843 = vmatprep.mubr.msk.bf16.mxu0 %vm1667_vm0, %v8380_v36  ;;  %v874_v31 = vpack.c.bf16 %v622_v23, %v615_v22 }
 0x2ab   : > { %5882 = vmatprep.mubr.msk.bf16.mxu1 %vm1667_vm0, %v8380_v36 }
 0x2ac   : > { %v2350_v40 = vpop.f32.mrb[44].mxu0 }
 0x2ad   : > { %5154 = vst [vmem:[%s8251_s8 + $0x4d0] sm:$0xff] %v2350_v40  ;;  %v3192_v41 = vpop.f32.mrb[44].mxu1  ;;  %v2352_v42 = vpop.f32.mrb[45].mxu0  ;;  %v629_v40 = vld [vmem:[%s9392_s1 + $0x8e8] sm:$0xff] }
 0x2ae   : > { %5156 = vst [vmem:[%s8251_s8 + $0x4e0] sm:$0xff] %v3192_v41  ;;  %5155 = vst [vmem:[%s8251_s8 + $0x4d8] sm:$0xff] %v2352_v42  ;;  %v3194_v44 = vpop.f32.mrb[45].mxu1  ;;  %v2354_v45 = vpop.f32.mrb[46].mxu0  ;;  %v636_v41 = vld [vmem:[%s9392_s1 + $0x920] sm:$0xff] }
 0x2af   : > { %5157 = vst [vmem:[%s8251_s8 + $0x4e8] sm:$0xff] %v3194_v44  ;;  %5161 = vst [vmem:[%s8251_s8 + $0x508] sm:$0xff] %v2354_v45  ;;  %v3196_v46 = vpop.f32.mrb[46].mxu1  ;;  %v2356_v47 = vpop.f32.mrb[47].mxu0  ;;  %v6850_v42 = vld [vmem:[%s7350_s13 + $0x44] ss:$16 sps:$4 sm:$0xff]   ;;  %v873_v44 = vpack.c.bf16 %v621_v35, %v614_v32 }
 0x2b0   : > { %5163 = vst [vmem:[%s8251_s8 + $0x518] sm:$0xff] %v3196_v46  ;;  %5162 = vst [vmem:[%s8251_s8 + $0x510] sm:$0xff] %v2356_v47  ;;  %v3198_v48 = vpop.f32.mrb[47].mxu1  ;;  %v875_v46 = vpack.c.bf16 %v623_v39, %v616_v37  ;;  %v881_v47 = vpack.c.bf16 %v636_v41, %v629_v40  ;;  %v658_v32 = vld [vmem:[%s9392_s1 + $0x9d0] sm:$0xff] }
 0x2b1   : > { %5164 = vst [vmem:[%s8251_s8 + $0x520] sm:$0xff] %v3198_v48  ;;  %2619 = vmatmul.mubr.bf16.gmra.mrb[152].mxu0 %v8392_v43  ;;  %v628_v48 = vld [vmem:[%s9392_s1 + $0x8e0] sm:$0xff] }
 0x2b2   : > { %3461 = vmatmul.mubr.bf16.gmra.mrb[152].mxu1 %v8392_v43  ;;  %3501 = vmatprep.mubr.bf16.mxu0 %v6846_v49  ;;  %v6855_v35 = vld [vmem:[%s7350_s13 + $0x80] ss:$16 sps:$4 sm:$0xff]   ;;  %v6856_v39 = vld [vmem:[%s7350_s13 + $0xa4] ss:$16 sps:$4 sm:$0xff]  }
 0x2b3   : > { %4343 = vmatprep.mubr.bf16.mxu1 %v6846_v49  ;;  %v635_v49 = vld [vmem:[%s9392_s1 + $0x918] sm:$0xff] }
 0x2b4   : > { %v2360_v52 = vpop.f32.mrb[48].mxu0 }
 0x2b5   : > { %5168 = vst [vmem:[%s8251_s8 + $0x540] sm:$0xff] %v2360_v52  ;;  %v3202_v55 = vpop.f32.mrb[48].mxu1  ;;  %v2362_v56 = vpop.f32.mrb[49].mxu0 }
 0x2b6   : > { %5170 = vst [vmem:[%s8251_s8 + $0x550] sm:$0xff] %v3202_v55  ;;  %5169 = vst [vmem:[%s8251_s8 + $0x548] sm:$0xff] %v2362_v56  ;;  %v3204_v59 = vpop.f32.mrb[49].mxu1  ;;  %v2364_v60 = vpop.f32.mrb[50].mxu0  ;;  %v650_v55 = vld [vmem:[%s9392_s1 + $0x990] sm:$0xff] }
 0x2b7   : > { %5171 = vst [vmem:[%s8251_s8 + $0x558] sm:$0xff] %v3204_v59  ;;  %5175 = vst [vmem:[%s8251_s8 + $0x578] sm:$0xff] %v2364_v60  ;;  %v3206_v62 = vpop.f32.mrb[50].mxu1  ;;  %v2366_v63 = vpop.f32.mrb[51].mxu0  ;;  %v880_v60 = vpack.c.bf16 %v635_v49, %v628_v48 }
 0x2b8   : > { %5177 = vst [vmem:[%s8251_s8 + $0x588] sm:$0xff] %v3206_v62  ;;  %5176 = vst [vmem:[%s8251_s8 + $0x580] sm:$0xff] %v2366_v63  ;;  %v3208_v5 = vpop.f32.mrb[51].mxu1  ;;  %v882_v62 = vpack.c.bf16 %v637_v53, %v630_v50  ;;  %v888_v63 = vpack.c.bf16 %v650_v55, %v643_v54  ;;  %v6857_v50 = vld [vmem:[%s7350_s13 + $0xa0] ss:$16 sps:$4 sm:$0xff]  }
 0x2b9   : > { %5178 = vst [vmem:[%s8251_s8 + $0x590] sm:$0xff] %v3208_v5  ;;  %3502 = vmatmul.mubr.bf16.vlgmr.msra.gmra.mrb[156].mxu0 %v6847_v10  ;;  %v651_v5 = vld [vmem:[%s9392_s1 + $0x998] sm:$0xff] }
 0x2ba   : > { %4344 = vmatmul.mubr.bf16.vlgmr.msra.gmra.mrb[156].mxu1 %v6847_v10  ;;  %3891 = vmatpush1.bf16.msra.mxu0 %v852_v61  ;;  %v889_v9 = vpack.c.bf16 %v651_v5, %v644_v3 }
 0x2bb   : > { %4656 = vmatpush1.bf16.msra.mxu1 %v854_v0  ;;  %3511 = vmatprep.mubr.bf16.mxu0 %v6848_v12  ;;  %v642_v0 = vld [vmem:[%s9392_s1 + $0x950] sm:$0xff] }
 0x2bc   : > { %v2370_v15 = vpop.f32.mrb[52].mxu0  ;;  %4351 = vmatprep.mubr.bf16.mxu1 %v6848_v12  ;;  %3892 = vmatprep.subr.bf16.mxu0 %v860_v6  ;;  %v6852_v6 = vld [vmem:[%s7350_s13 + $0x64] ss:$16 sps:$4 sm:$0xff]   ;;  %v887_v7 = vpack.c.bf16 %v649_v1, %v642_v0 }
 0x2bd   : > { %5182 = vst [vmem:[%s8251_s8 + $0x5b0] sm:$0xff] %v2370_v15  ;;  %v3212_v19 = vpop.f32.mrb[52].mxu1  ;;  %v2372_v20 = vpop.f32.mrb[53].mxu0  ;;  %4657 = vmatprep.subr.bf16.mxu1 %v7022_v4 }
 0x2be   : > { %5184 = vst [vmem:[%s8251_s8 + $0x5c0] sm:$0xff] %v3212_v19  ;;  %5183 = vst [vmem:[%s8251_s8 + $0x5b8] sm:$0xff] %v2372_v20  ;;  %v3214_v24 = vpop.f32.mrb[53].mxu1  ;;  %v2374_v25 = vpop.f32.mrb[54].mxu0  ;;  %3893 = vmatpush1.bf16.msra.mxu0 %v859_v11 }
 0x2bf   : > { %5185 = vst [vmem:[%s8251_s8 + $0x5c8] sm:$0xff] %v3214_v24  ;;  %5189 = vst [vmem:[%s8251_s8 + $0x5e8] sm:$0xff] %v2374_v25  ;;  %v3216_v26 = vpop.f32.mrb[54].mxu1  ;;  %v2376_v27 = vpop.f32.mrb[55].mxu0  ;;  %4658 = vmatpush1.bf16.msra.mxu1 %v861_v13  ;;  %3894 = vmatprep.subr.bf16.mxu0 %v867_v14 }
 0x2c0   : > { %5191 = vst [vmem:[%s8251_s8 + $0x5f8] sm:$0xff] %v3216_v26  ;;  %5190 = vst [vmem:[%s8251_s8 + $0x5f0] sm:$0xff] %v2376_v27  ;;  %v3218_v29 = vpop.f32.mrb[55].mxu1  ;;  %4659 = vmatprep.subr.bf16.mxu1 %v7022_v4  ;;  %v657_v26 = vld [vmem:[%s9392_s1 + $0x9c8] sm:$0xff]  ;;  %v664_v27 = vld [vmem:[%s9392_s1 + $0xa00] sm:$0xff] }
 0x2c1   : > { %5192 = vst [vmem:[%s8251_s8 + $0x600] sm:$0xff] %v3218_v29  ;;  %3512 = vmatmul.mubr.bf16.gmra.mrb[160].mxu0 %v6849_v38  ;;  %v895_v29 = vpack.c.bf16 %v664_v27, %v657_v26  ;;  %v6863_v26 = vld [vmem:[%s7350_s13 + $0x100] ss:$16 sps:$4 sm:$0xff]   ;;  %v6864_v27 = vld [vmem:[%s7350_s13 + $0x124] ss:$16 sps:$4 sm:$0xff]  }
 0x2c2   : > { %4352 = vmatmul.mubr.bf16.gmra.mrb[160].mxu1 %v6849_v38  ;;  %3521 = vmatprep.mubr.bf16.mxu0 %v6850_v42  ;;  %v665_v38 = vld [vmem:[%s9392_s1 + $0xa08] sm:$0xff] }
 0x2c3   : > { %4359 = vmatprep.mubr.bf16.mxu1 %v6850_v42  ;;  %3895 = vmatpush1.bf16.msra.mxu0 %v866_v28  ;;  %v896_v40 = vpack.c.bf16 %v665_v38, %v658_v32 }
 0x2c4   : > { %v2380_v45 = vpop.f32.mrb[56].mxu0  ;;  %4660 = vmatpush1.bf16.msra.mxu1 %v868_v30  ;;  %3896 = vmatprep.subr.bf16.mxu0 %v874_v31  ;;  %v656_v30 = vld [vmem:[%s9392_s1 + $0x9c0] sm:$0xff]  ;;  %v663_v31 = vld [vmem:[%s9392_s1 + $0x9f8] sm:$0xff] }
 0x2c5   : > { %5196 = vst [vmem:[%s8251_s8 + $0x620] sm:$0xff] %v2380_v45  ;;  %v3222_v51 = vpop.f32.mrb[56].mxu1  ;;  %v2382_v52 = vpop.f32.mrb[57].mxu0  ;;  %4661 = vmatprep.subr.bf16.mxu1 %v7022_v4  ;;  %v894_v37 = vpack.c.bf16 %v663_v31, %v656_v30 }
 0x2c6   : > { %5198 = vst [vmem:[%s8251_s8 + $0x630] sm:$0xff] %v3222_v51  ;;  %5197 = vst [vmem:[%s8251_s8 + $0x628] sm:$0xff] %v2382_v52  ;;  %v3224_v56 = vpop.f32.mrb[57].mxu1  ;;  %v2384_v57 = vpop.f32.mrb[58].mxu0  ;;  %v6858_v51 = vld [vmem:[%s7350_s13 + $0xc4] ss:$16 sps:$4 sm:$0xff]  }
 0x2c7   : > { %5199 = vst [vmem:[%s8251_s8 + $0x638] sm:$0xff] %v3224_v56  ;;  %5203 = vst [vmem:[%s8251_s8 + $0x658] sm:$0xff] %v2384_v57  ;;  %v3226_v58 = vpop.f32.mrb[58].mxu1  ;;  %v2386_v59 = vpop.f32.mrb[59].mxu0  ;;  %3897 = vmatpush1.bf16.msra.mxu0 %v873_v44 }
 0x2c8   : > { %5205 = vst [vmem:[%s8251_s8 + $0x668] sm:$0xff] %v3226_v58  ;;  %5204 = vst [vmem:[%s8251_s8 + $0x660] sm:$0xff] %v2386_v59  ;;  %v3228_v61 = vpop.f32.mrb[59].mxu1  ;;  %4662 = vmatpush1.bf16.msra.mxu1 %v875_v46  ;;  %3898 = vmatprep.subr.bf16.mxu0 %v881_v47 }
 0x2c9   : > { %5206 = vst [vmem:[%s8251_s8 + $0x670] sm:$0xff] %v3228_v61  ;;  %3522 = vmatmul.mubr.bf16.gmra.mrb[164].mxu0 %v6851_v2  ;;  %4663 = vmatprep.subr.bf16.mxu1 %v7022_v4  ;;  %v6860_v61 = vld [vmem:[%s7350_s13 + $0xe4] ss:$16 sps:$4 sm:$0xff]  }
 0x2ca   : > { %4360 = vmatmul.mubr.bf16.gmra.mrb[164].mxu1 %v6851_v2  ;;  %3531 = vmatprep.mubr.bf16.mxu0 %v6852_v6 }
 0x2cb   : > { %4367 = vmatprep.mubr.bf16.mxu1 %v6852_v6  ;;  %3899 = vmatpush1.bf16.msra.mxu0 %v880_v60  ;;  %v6859_v60 = vld [vmem:[%s7350_s13 + $0xc0] ss:$16 sps:$4 sm:$0xff]  }
 0x2cc   : > { %v2390_v8 = vpop.f32.mrb[60].mxu0  ;;  %4664 = vmatpush1.bf16.msra.mxu1 %v882_v62  ;;  %3900 = vmatprep.subr.bf16.mxu0 %v888_v63 }
 0x2cd   : > { %5210 = vst [vmem:[%s8251_s8 + $0x690] sm:$0xff] %v2390_v8  ;;  %v3232_v10 = vpop.f32.mrb[60].mxu1  ;;  %v2392_v11 = vpop.f32.mrb[61].mxu0  ;;  %4665 = vmatprep.subr.bf16.mxu1 %v7022_v4  ;;  %v671_v8 = vld [vmem:[%s9392_s1 + $0xa38] sm:$0xff] }
 0x2ce   : > { %5212 = vst [vmem:[%s8251_s8 + $0x6a0] sm:$0xff] %v3232_v10  ;;  %5211 = vst [vmem:[%s8251_s8 + $0x698] sm:$0xff] %v2392_v11  ;;  %v3234_v12 = vpop.f32.mrb[61].mxu1  ;;  %v2394_v13 = vpop.f32.mrb[62].mxu0  ;;  %v670_v10 = vld [vmem:[%s9392_s1 + $0xa30] sm:$0xff] }
 0x2cf   : > { %5213 = vst [vmem:[%s8251_s8 + $0x6a8] sm:$0xff] %v3234_v12  ;;  %5217 = vst [vmem:[%s8251_s8 + $0x6c8] sm:$0xff] %v2394_v13  ;;  %v3236_v14 = vpop.f32.mrb[62].mxu1  ;;  %v2396_v15 = vpop.f32.mrb[63].mxu0  ;;  %3901 = vmatpush1.bf16.msra.mxu0 %v887_v7  ;;  %v6861_v7 = vld [vmem:[%s7350_s13 + $0xe0] ss:$16 sps:$4 sm:$0xff]  }
 0x2d0   : > { %5219 = vst [vmem:[%s8251_s8 + $0x6d8] sm:$0xff] %v3236_v14  ;;  %5218 = vst [vmem:[%s8251_s8 + $0x6d0] sm:$0xff] %v2396_v15  ;;  %v3238_v16 = vpop.f32.mrb[63].mxu1  ;;  %4666 = vmatpush1.bf16.msra.mxu1 %v889_v9  ;;  %3902 = vmatprep.subr.bf16.mxu0 %v895_v29  ;;  %v678_v9 = vld [vmem:[%s9392_s1 + $0xa70] sm:$0xff]  ;;  %v677_v13 = vld [vmem:[%s9392_s1 + $0xa68] sm:$0xff] }
 0x2d1   : > { %5220 = vst [vmem:[%s8251_s8 + $0x6e0] sm:$0xff] %v3238_v16  ;;  %3532 = vmatmul.mubr.bf16.gmra.mrb[168].mxu0 %v6853_v17  ;;  %4667 = vmatprep.subr.bf16.mxu1 %v7022_v4  ;;  %v6862_v11 = vld [vmem:[%s7350_s13 + $0x104] ss:$16 sps:$4 sm:$0xff]   ;;  %v902_v12 = vpack.c.bf16 %v678_v9, %v671_v8  ;;  %v679_v15 = vld [vmem:[%s9392_s1 + $0xa78] sm:$0xff]  ;;  %v901_v16 = vpack.c.bf16 %v677_v13, %v670_v10 }
 0x2d2   : > { %4368 = vmatmul.mubr.bf16.gmra.mrb[168].mxu1 %v6853_v17  ;;  %3541 = vmatprep.mubr.bf16.mxu0 %v6854_v18  ;;  %v672_v14 = vld [vmem:[%s9392_s1 + $0xa40] sm:$0xff] }
 0x2d3   : > { %4375 = vmatprep.mubr.bf16.mxu1 %v6854_v18  ;;  %3903 = vmatpush1.bf16.msra.mxu0 %v894_v37  ;;  %v903_v17 = vpack.c.bf16 %v679_v15, %v672_v14 }
 0x2d4   : > { %v2400_v19 = vpop.f32.mrb[64].mxu0  ;;  %4668 = vmatpush1.bf16.msra.mxu1 %v896_v40  ;;  %3904 = vmatprep.subr.bf16.mxu0 %v902_v12  ;;  %v6866_v40 = vld [vmem:[%s7350_s13 + $0x144] ss:$16 sps:$4 sm:$0xff]  }
 0x2d5   : > { %5224 = vst [vmem:[%s8251_s8 + $0x700] sm:$0xff] %v2400_v19  ;;  %v3242_v20 = vpop.f32.mrb[64].mxu1  ;;  %v2402_v21 = vpop.f32.mrb[65].mxu0  ;;  %4669 = vmatprep.subr.bf16.mxu1 %v7022_v4 }
 0x2d6   : > { %5226 = vst [vmem:[%s8251_s8 + $0x710] sm:$0xff] %v3242_v20  ;;  %5225 = vst [vmem:[%s8251_s8 + $0x708] sm:$0xff] %v2402_v21  ;;  %v3244_v22 = vpop.f32.mrb[65].mxu1  ;;  %v2404_v23 = vpop.f32.mrb[66].mxu0 }
 0x2d7   : > { %5227 = vst [vmem:[%s8251_s8 + $0x718] sm:$0xff] %v3244_v22  ;;  %5231 = vst [vmem:[%s8251_s8 + $0x738] sm:$0xff] %v2404_v23  ;;  %v3246_v24 = vpop.f32.mrb[66].mxu1  ;;  %v2406_v25 = vpop.f32.mrb[67].mxu0  ;;  %3905 = vmatpush1.bf16.msra.mxu0 %v901_v16  ;;  %v6871_v16 = vld [vmem:[%s7350_s13 + $0x180] ss:$16 sps:$4 sm:$0xff]  }
 0x2d8   : > { %5233 = vst [vmem:[%s8251_s8 + $0x748] sm:$0xff] %v3246_v24  ;;  %5232 = vst [vmem:[%s8251_s8 + $0x740] sm:$0xff] %v2406_v25  ;;  %v3248_v28 = vpop.f32.mrb[67].mxu1  ;;  %4670 = vmatpush1.bf16.msra.mxu1 %v903_v17  ;;  %v6872_v17 = vld [vmem:[%s7350_s13 + $0x1a4] ss:$16 sps:$4 sm:$0xff]  }
 0x2d9   : > { %5234 = vst [vmem:[%s8251_s8 + $0x750] sm:$0xff] %v3248_v28  ;;  %3542 = vmatmul.mubr.bf16.gmra.mrb[172].mxu0 %v6855_v35  ;;  %4671 = vmatprep.subr.bf16.mxu1 %v7022_v4 }
 0x2da   : > { %4376 = vmatmul.mubr.bf16.gmra.mrb[172].mxu1 %v6855_v35  ;;  %3551 = vmatprep.mubr.bf16.mxu0 %v6856_v39 }
 0x2db   : > { %4383 = vmatprep.mubr.bf16.mxu1 %v6856_v39  ;;  %v6865_v39 = vld [vmem:[%s7350_s13 + $0x120] ss:$16 sps:$4 sm:$0xff]  }
 0x2dc   : > { %v2410_v41 = vpop.f32.mrb[68].mxu0 }
 0x2dd   : > { %5238 = vst [vmem:[%s8251_s8 + $0x770] sm:$0xff] %v2410_v41  ;;  %v3252_v42 = vpop.f32.mrb[68].mxu1  ;;  %v2412_v44 = vpop.f32.mrb[69].mxu0 }
 0x2de   : > { %5240 = vst [vmem:[%s8251_s8 + $0x780] sm:$0xff] %v3252_v42  ;;  %5239 = vst [vmem:[%s8251_s8 + $0x778] sm:$0xff] %v2412_v44  ;;  %v3254_v45 = vpop.f32.mrb[69].mxu1  ;;  %v2414_v46 = vpop.f32.mrb[70].mxu0 }
 0x2df   : > { %5241 = vst [vmem:[%s8251_s8 + $0x788] sm:$0xff] %v3254_v45  ;;  %5245 = vst [vmem:[%s8251_s8 + $0x7a8] sm:$0xff] %v2414_v46  ;;  %v3256_v47 = vpop.f32.mrb[70].mxu1  ;;  %v2416_v48 = vpop.f32.mrb[71].mxu0 }
 0x2e0   : > { %5247 = vst [vmem:[%s8251_s8 + $0x7b8] sm:$0xff] %v3256_v47  ;;  %5246 = vst [vmem:[%s8251_s8 + $0x7b0] sm:$0xff] %v2416_v48  ;;  %v3258_v49 = vpop.f32.mrb[71].mxu1 }
 0x2e1   : > { %5248 = vst [vmem:[%s8251_s8 + $0x7c0] sm:$0xff] %v3258_v49  ;;  %3552 = vmatmul.mubr.bf16.gmra.mrb[176].mxu0 %v6857_v50 }
 0x2e2   : > { %4384 = vmatmul.mubr.bf16.gmra.mrb[176].mxu1 %v6857_v50  ;;  %3561 = vmatprep.mubr.bf16.mxu0 %v6858_v51  ;;  %v6867_v50 = vld [vmem:[%s7350_s13 + $0x140] ss:$16 sps:$4 sm:$0xff]  }
 0x2e3   : > { %4391 = vmatprep.mubr.bf16.mxu1 %v6858_v51  ;;  %v685_v51 = vld [vmem:[%s9392_s1 + $0xaa8] sm:$0xff] }
 0x2e4   : > { %v2420_v52 = vpop.f32.mrb[72].mxu0 }
 0x2e5   : > { %5252 = vst [vmem:[%s8251_s8 + $0x7e0] sm:$0xff] %v2420_v52  ;;  %v3262_v53 = vpop.f32.mrb[72].mxu1  ;;  %v2422_v54 = vpop.f32.mrb[73].mxu0  ;;  %v692_v52 = vld [vmem:[%s9392_s1 + $0xae0] sm:$0xff] }
 0x2e6   : > { %5254 = vst [vmem:[%s8251_s8 + $0x7f0] sm:$0xff] %v3262_v53  ;;  %5253 = vst [vmem:[%s8251_s8 + $0x7e8] sm:$0xff] %v2422_v54  ;;  %v3264_v55 = vpop.f32.mrb[73].mxu1  ;;  %v2424_v56 = vpop.f32.mrb[74].mxu0  ;;  %v6868_v53 = vld [vmem:[%s7350_s13 + $0x164] ss:$16 sps:$4 sm:$0xff]   ;;  %v909_v54 = vpack.c.bf16 %v692_v52, %v685_v51 }
 0x2e7   : > { %5255 = vst [vmem:[%s8251_s8 + $0x7f8] sm:$0xff] %v3264_v55  ;;  %5259 = vst [vmem:[%s8251_s8 + $0x818] sm:$0xff] %v2424_v56  ;;  %v3266_v57 = vpop.f32.mrb[74].mxu1  ;;  %v2426_v58 = vpop.f32.mrb[75].mxu0  ;;  %v684_v55 = vld [vmem:[%s9392_s1 + $0xaa0] sm:$0xff]  ;;  %v691_v56 = vld [vmem:[%s9392_s1 + $0xad8] sm:$0xff] }
 0x2e8   : > { %5261 = vst [vmem:[%s8251_s8 + $0x828] sm:$0xff] %v3266_v57  ;;  %5260 = vst [vmem:[%s8251_s8 + $0x820] sm:$0xff] %v2426_v58  ;;  %v3268_v59 = vpop.f32.mrb[75].mxu1  ;;  %v686_v57 = vld [vmem:[%s9392_s1 + $0xab0] sm:$0xff]  ;;  %v908_v58 = vpack.c.bf16 %v691_v56, %v684_v55  ;;  %3906 = vmatprep.subr.bf16.mxu0 %v909_v54 }
 0x2e9   : > { %5262 = vst [vmem:[%s8251_s8 + $0x830] sm:$0xff] %v3268_v59  ;;  %3562 = vmatmul.mubr.bf16.gmra.mrb[180].mxu0 %v6859_v60  ;;  %v693_v59 = vld [vmem:[%s9392_s1 + $0xae8] sm:$0xff] }
 0x2ea   : > { %4392 = vmatmul.mubr.bf16.gmra.mrb[180].mxu1 %v6859_v60  ;;  %3571 = vmatprep.mubr.bf16.mxu0 %v6860_v61 }
 0x2eb   : > { %4399 = vmatprep.mubr.bf16.mxu1 %v6860_v61  ;;  %v910_v61 = vpack.c.bf16 %v693_v59, %v686_v57  ;;  %3907 = vmatpush1.bf16.msra.mxu0 %v908_v58  ;;  %v6877_v59 = vld [vmem:[%s7350_s13 + $0x1e0] ss:$16 sps:$4 sm:$0xff]  }
 0x2ec   : > { %v2430_v62 = vpop.f32.mrb[76].mxu0 }
 0x2ed   : > { %5266 = vst [vmem:[%s8251_s8 + $0x850] sm:$0xff] %v2430_v62  ;;  %v3272_v63 = vpop.f32.mrb[76].mxu1  ;;  %v2432_v0 = vpop.f32.mrb[77].mxu0  ;;  %4672 = vmatpush1.bf16.msra.mxu1 %v910_v61 }
 0x2ee   : > { %5268 = vst [vmem:[%s8251_s8 + $0x860] sm:$0xff] %v3272_v63  ;;  %5267 = vst [vmem:[%s8251_s8 + $0x858] sm:$0xff] %v2432_v0  ;;  %v3274_v1 = vpop.f32.mrb[77].mxu1  ;;  %v2434_v2 = vpop.f32.mrb[78].mxu0  ;;  %4673 = vmatprep.subr.bf16.mxu1 %v7022_v4 }
 0x2ef   : > { %5269 = vst [vmem:[%s8251_s8 + $0x868] sm:$0xff] %v3274_v1  ;;  %5273 = vst [vmem:[%s8251_s8 + $0x888] sm:$0xff] %v2434_v2  ;;  %v3276_v3 = vpop.f32.mrb[78].mxu1  ;;  %v2436_v5 = vpop.f32.mrb[79].mxu0 }
 0x2f0   : > { %5275 = vst [vmem:[%s8251_s8 + $0x898] sm:$0xff] %v3276_v3  ;;  %5274 = vst [vmem:[%s8251_s8 + $0x890] sm:$0xff] %v2436_v5  ;;  %v3278_v6 = vpop.f32.mrb[79].mxu1 }
 0x2f1   : > { %5276 = vst [vmem:[%s8251_s8 + $0x8a0] sm:$0xff] %v3278_v6  ;;  %3572 = vmatmul.mubr.bf16.gmra.mrb[184].mxu0 %v6861_v7  ;;  %v6869_v6 = vld [vmem:[%s7350_s13 + $0x160] ss:$16 sps:$4 sm:$0xff]  }
 0x2f2   : > { %4400 = vmatmul.mubr.bf16.gmra.mrb[184].mxu1 %v6861_v7  ;;  %3581 = vmatprep.mubr.bf16.mxu0 %v6862_v11  ;;  %v6870_v7 = vld [vmem:[%s7350_s13 + $0x184] ss:$16 sps:$4 sm:$0xff]  }
 0x2f3   : > { %4407 = vmatprep.mubr.bf16.mxu1 %v6862_v11 }
 0x2f4   : > { %v2440_v18 = vpop.f32.mrb[80].mxu0 }
 0x2f5   : > { %5280 = vst [vmem:[%s8251_s8 + $0x8c0] sm:$0xff] %v2440_v18  ;;  %v3282_v19 = vpop.f32.mrb[80].mxu1  ;;  %v2442_v20 = vpop.f32.mrb[81].mxu0 }
 0x2f6   : > { %5282 = vst [vmem:[%s8251_s8 + $0x8d0] sm:$0xff] %v3282_v19  ;;  %5281 = vst [vmem:[%s8251_s8 + $0x8c8] sm:$0xff] %v2442_v20  ;;  %v3284_v21 = vpop.f32.mrb[81].mxu1  ;;  %v2444_v22 = vpop.f32.mrb[82].mxu0 }
 0x2f7   : > { %5283 = vst [vmem:[%s8251_s8 + $0x8d8] sm:$0xff] %v3284_v21  ;;  %5287 = vst [vmem:[%s8251_s8 + $0x8f8] sm:$0xff] %v2444_v22  ;;  %v3286_v23 = vpop.f32.mrb[82].mxu1  ;;  %v2446_v24 = vpop.f32.mrb[83].mxu0 }
 0x2f8   : > { %5289 = vst [vmem:[%s8251_s8 + $0x908] sm:$0xff] %v3286_v23  ;;  %5288 = vst [vmem:[%s8251_s8 + $0x900] sm:$0xff] %v2446_v24  ;;  %v3288_v25 = vpop.f32.mrb[83].mxu1 }
 0x2f9   : > { %5290 = vst [vmem:[%s8251_s8 + $0x910] sm:$0xff] %v3288_v25  ;;  %3582 = vmatmul.mubr.bf16.gmra.mrb[188].mxu0 %v6863_v26 }
 0x2fa   : > { %4408 = vmatmul.mubr.bf16.gmra.mrb[188].mxu1 %v6863_v26  ;;  %3591 = vmatprep.mubr.bf16.mxu0 %v6864_v27  ;;  %v6873_v26 = vld [vmem:[%s7350_s13 + $0x1a0] ss:$16 sps:$4 sm:$0xff]  }
 0x2fb   : > { %4415 = vmatprep.mubr.bf16.mxu1 %v6864_v27  ;;  %v6874_v27 = vld [vmem:[%s7350_s13 + $0x1c4] ss:$16 sps:$4 sm:$0xff]  }
 0x2fc   : > { %v2450_v28 = vpop.f32.mrb[84].mxu0 }
 0x2fd   : > { %5294 = vst [vmem:[%s8251_s8 + $0x930] sm:$0xff] %v2450_v28  ;;  %v3292_v29 = vpop.f32.mrb[84].mxu1  ;;  %v2452_v30 = vpop.f32.mrb[85].mxu0  ;;  %v699_v28 = vld [vmem:[%s9392_s1 + $0xb18] sm:$0xff] }
 0x2fe   : > { %5296 = vst [vmem:[%s8251_s8 + $0x940] sm:$0xff] %v3292_v29  ;;  %5295 = vst [vmem:[%s8251_s8 + $0x938] sm:$0xff] %v2452_v30  ;;  %v3294_v31 = vpop.f32.mrb[85].mxu1  ;;  %v2454_v32 = vpop.f32.mrb[86].mxu0  ;;  %v706_v29 = vld [vmem:[%s9392_s1 + $0xb50] sm:$0xff] }
 0x2ff   : > { %5297 = vst [vmem:[%s8251_s8 + $0x948] sm:$0xff] %v3294_v31  ;;  %5301 = vst [vmem:[%s8251_s8 + $0x968] sm:$0xff] %v2454_v32  ;;  %v3296_v35 = vpop.f32.mrb[86].mxu1  ;;  %v2456_v37 = vpop.f32.mrb[87].mxu0  ;;  %v698_v30 = vld [vmem:[%s9392_s1 + $0xb10] sm:$0xff]  ;;  %v916_v31 = vpack.c.bf16 %v706_v29, %v699_v28  ;;  %v705_v32 = vld [vmem:[%s9392_s1 + $0xb48] sm:$0xff] }
 0x300   : > { %5303 = vst [vmem:[%s8251_s8 + $0x978] sm:$0xff] %v3296_v35  ;;  %5302 = vst [vmem:[%s8251_s8 + $0x970] sm:$0xff] %v2456_v37  ;;  %v3298_v38 = vpop.f32.mrb[87].mxu1  ;;  %v700_v35 = vld [vmem:[%s9392_s1 + $0xb20] sm:$0xff]  ;;  %v707_v37 = vld [vmem:[%s9392_s1 + $0xb58] sm:$0xff] }
 0x301   : > { %5304 = vst [vmem:[%s8251_s8 + $0x980] sm:$0xff] %v3298_v38  ;;  %3592 = vmatmul.mubr.bf16.gmra.mrb[192].mxu0 %v6865_v39  ;;  %3908 = vmatprep.subr.bf16.mxu0 %v916_v31 }
 0x302   : > { %4416 = vmatmul.mubr.bf16.gmra.mrb[192].mxu1 %v6865_v39  ;;  %3601 = vmatprep.mubr.bf16.mxu0 %v6866_v40  ;;  %v915_v39 = vpack.c.bf16 %v705_v32, %v698_v30 }
 0x303   : > { %4423 = vmatprep.mubr.bf16.mxu1 %v6866_v40  ;;  %v917_v40 = vpack.c.bf16 %v707_v37, %v700_v35  ;;  %v6883_v37 = vld [vmem:[%s7350_s13 + $0x240] ss:$16 sps:$4 sm:$0xff]  }
 0x304   : > { %v2460_v41 = vpop.f32.mrb[88].mxu0  ;;  %3909 = vmatpush1.bf16.msra.mxu0 %v915_v39 }
 0x305   : > { %5308 = vst [vmem:[%s8251_s8 + $0x9a0] sm:$0xff] %v2460_v41  ;;  %v3302_v42 = vpop.f32.mrb[88].mxu1  ;;  %v2462_v44 = vpop.f32.mrb[89].mxu0  ;;  %4674 = vmatpush1.bf16.msra.mxu1 %v917_v40 }
 0x306   : > { %5310 = vst [vmem:[%s8251_s8 + $0x9b0] sm:$0xff] %v3302_v42  ;;  %5309 = vst [vmem:[%s8251_s8 + $0x9a8] sm:$0xff] %v2462_v44  ;;  %v3304_v45 = vpop.f32.mrb[89].mxu1  ;;  %v2464_v46 = vpop.f32.mrb[90].mxu0  ;;  %4675 = vmatprep.subr.bf16.mxu1 %v7022_v4 }
 0x307   : > { %5311 = vst [vmem:[%s8251_s8 + $0x9b8] sm:$0xff] %v3304_v45  ;;  %5315 = vst [vmem:[%s8251_s8 + $0x9d8] sm:$0xff] %v2464_v46  ;;  %v3306_v47 = vpop.f32.mrb[90].mxu1  ;;  %v2466_v48 = vpop.f32.mrb[91].mxu0 }
 0x308   : > { %5317 = vst [vmem:[%s8251_s8 + $0x9e8] sm:$0xff] %v3306_v47  ;;  %5316 = vst [vmem:[%s8251_s8 + $0x9e0] sm:$0xff] %v2466_v48  ;;  %v3308_v49 = vpop.f32.mrb[91].mxu1 }
 0x309   : > { %5318 = vst [vmem:[%s8251_s8 + $0x9f0] sm:$0xff] %v3308_v49  ;;  %3602 = vmatmul.mubr.bf16.gmra.mrb[196].mxu0 %v6867_v50  ;;  %v6875_v49 = vld [vmem:[%s7350_s13 + $0x1c0] ss:$16 sps:$4 sm:$0xff]  }
 0x30a   : > { %4424 = vmatmul.mubr.bf16.gmra.mrb[196].mxu1 %v6867_v50  ;;  %3611 = vmatprep.mubr.bf16.mxu0 %v6868_v53  ;;  %v6876_v50 = vld [vmem:[%s7350_s13 + $0x1e4] ss:$16 sps:$4 sm:$0xff]  }
 0x30b   : > { %4431 = vmatprep.mubr.bf16.mxu1 %v6868_v53 }
 0x30c   : > { %v2470_v60 = vpop.f32.mrb[92].mxu0 }
 0x30d   : > { %5322 = vst [vmem:[%s8251_s8 + $0xa10] sm:$0xff] %v2470_v60  ;;  %v3312_v62 = vpop.f32.mrb[92].mxu1  ;;  %v2472_v63 = vpop.f32.mrb[93].mxu0  ;;  %v6878_v60 = vld [vmem:[%s7350_s13 + $0x204] ss:$16 sps:$4 sm:$0xff]  }
 0x30e   : > { %5324 = vst [vmem:[%s8251_s8 + $0xa20] sm:$0xff] %v3312_v62  ;;  %5323 = vst [vmem:[%s8251_s8 + $0xa18] sm:$0xff] %v2472_v63  ;;  %v3314_v0 = vpop.f32.mrb[93].mxu1  ;;  %v2474_v1 = vpop.f32.mrb[94].mxu0 }
 0x30f   : > { %5325 = vst [vmem:[%s8251_s8 + $0xa28] sm:$0xff] %v3314_v0  ;;  %5329 = vst [vmem:[%s8251_s8 + $0xa48] sm:$0xff] %v2474_v1  ;;  %v3316_v2 = vpop.f32.mrb[94].mxu1  ;;  %v2476_v3 = vpop.f32.mrb[95].mxu0 }
 0x310   : > { %5331 = vst [vmem:[%s8251_s8 + $0xa58] sm:$0xff] %v3316_v2  ;;  %5330 = vst [vmem:[%s8251_s8 + $0xa50] sm:$0xff] %v2476_v3  ;;  %v3318_v5 = vpop.f32.mrb[95].mxu1 }
 0x311   : > { %5332 = vst [vmem:[%s8251_s8 + $0xa60] sm:$0xff] %v3318_v5  ;;  %3612 = vmatmul.mubr.bf16.gmra.mrb[200].mxu0 %v6869_v6 }
 0x312   : > { %4432 = vmatmul.mubr.bf16.gmra.mrb[200].mxu1 %v6869_v6  ;;  %3621 = vmatprep.mubr.bf16.mxu0 %v6870_v7  ;;  %v6879_v6 = vld [vmem:[%s7350_s13 + $0x200] ss:$16 sps:$4 sm:$0xff]  }
 0x313   : > { %4439 = vmatprep.mubr.bf16.mxu1 %v6870_v7  ;;  %v6880_v7 = vld [vmem:[%s7350_s13 + $0x224] ss:$16 sps:$4 sm:$0xff]  }
 0x314   : > { %v2480_v8 = vpop.f32.mrb[96].mxu0 }
 0x315   : > { %5336 = vst [vmem:[%s8251_s8 + $0xa80] sm:$0xff] %v2480_v8  ;;  %v3322_v9 = vpop.f32.mrb[96].mxu1  ;;  %v2482_v10 = vpop.f32.mrb[97].mxu0  ;;  %v713_v8 = vld [vmem:[%s9392_s1 + $0xb88] sm:$0xff] }
 0x316   : > { %5338 = vst [vmem:[%s8251_s8 + $0xa90] sm:$0xff] %v3322_v9  ;;  %5337 = vst [vmem:[%s8251_s8 + $0xa88] sm:$0xff] %v2482_v10  ;;  %v3324_v11 = vpop.f32.mrb[97].mxu1  ;;  %v2484_v12 = vpop.f32.mrb[98].mxu0  ;;  %v720_v9 = vld [vmem:[%s9392_s1 + $0xbc0] sm:$0xff] }
 0x317   : > { %5339 = vst [vmem:[%s8251_s8 + $0xa98] sm:$0xff] %v3324_v11  ;;  %5343 = vst [vmem:[%s8251_s8 + $0xab8] sm:$0xff] %v2484_v12  ;;  %v3326_v13 = vpop.f32.mrb[98].mxu1  ;;  %v2486_v14 = vpop.f32.mrb[99].mxu0  ;;  %v712_v10 = vld [vmem:[%s9392_s1 + $0xb80] sm:$0xff]  ;;  %v923_v11 = vpack.c.bf16 %v720_v9, %v713_v8  ;;  %v719_v12 = vld [vmem:[%s9392_s1 + $0xbb8] sm:$0xff] }
 0x318   : > { %5345 = vst [vmem:[%s8251_s8 + $0xac8] sm:$0xff] %v3326_v13  ;;  %5344 = vst [vmem:[%s8251_s8 + $0xac0] sm:$0xff] %v2486_v14  ;;  %v3328_v15 = vpop.f32.mrb[99].mxu1  ;;  %v714_v13 = vld [vmem:[%s9392_s1 + $0xb90] sm:$0xff]  ;;  %v721_v14 = vld [vmem:[%s9392_s1 + $0xbc8] sm:$0xff] }
 0x319   : > { %5346 = vst [vmem:[%s8251_s8 + $0xad0] sm:$0xff] %v3328_v15  ;;  %3622 = vmatmul.mubr.bf16.gmra.mrb[204].mxu0 %v6871_v16  ;;  %3910 = vmatprep.subr.bf16.mxu0 %v923_v11 }
 0x31a   : > { %4440 = vmatmul.mubr.bf16.gmra.mrb[204].mxu1 %v6871_v16  ;;  %3631 = vmatprep.mubr.bf16.mxu0 %v6872_v17  ;;  %v922_v16 = vpack.c.bf16 %v719_v12, %v712_v10 }
 0x31b   : > { %4447 = vmatprep.mubr.bf16.mxu1 %v6872_v17  ;;  %v924_v17 = vpack.c.bf16 %v721_v14, %v714_v13  ;;  %v6889_v14 = vld [vmem:[%s7350_s13 + $0x2a0] ss:$16 sps:$4 sm:$0xff]  }
 0x31c   : > { %v2490_v18 = vpop.f32.mrb[100].mxu0  ;;  %3911 = vmatpush1.bf16.msra.mxu0 %v922_v16 }
 0x31d   : > { %5350 = vst [vmem:[%s8251_s8 + $0xaf0] sm:$0xff] %v2490_v18  ;;  %v3332_v19 = vpop.f32.mrb[100].mxu1  ;;  %v2492_v20 = vpop.f32.mrb[101].mxu0  ;;  %4676 = vmatpush1.bf16.msra.mxu1 %v924_v17 }
 0x31e   : > { %5352 = vst [vmem:[%s8251_s8 + $0xb00] sm:$0xff] %v3332_v19  ;;  %5351 = vst [vmem:[%s8251_s8 + $0xaf8] sm:$0xff] %v2492_v20  ;;  %v3334_v21 = vpop.f32.mrb[101].mxu1  ;;  %v2494_v22 = vpop.f32.mrb[102].mxu0  ;;  %4677 = vmatprep.subr.bf16.mxu1 %v7022_v4 }
 0x31f   : > { %5353 = vst [vmem:[%s8251_s8 + $0xb08] sm:$0xff] %v3334_v21  ;;  %5357 = vst [vmem:[%s8251_s8 + $0xb28] sm:$0xff] %v2494_v22  ;;  %v3336_v23 = vpop.f32.mrb[102].mxu1  ;;  %v2496_v24 = vpop.f32.mrb[103].mxu0 }
 0x320   : > { %5359 = vst [vmem:[%s8251_s8 + $0xb38] sm:$0xff] %v3336_v23  ;;  %5358 = vst [vmem:[%s8251_s8 + $0xb30] sm:$0xff] %v2496_v24  ;;  %v3338_v25 = vpop.f32.mrb[103].mxu1 }
 0x321   : > { %5360 = vst [vmem:[%s8251_s8 + $0xb40] sm:$0xff] %v3338_v25  ;;  %3632 = vmatmul.mubr.bf16.gmra.mrb[208].mxu0 %v6873_v26  ;;  %v6881_v25 = vld [vmem:[%s7350_s13 + $0x220] ss:$16 sps:$4 sm:$0xff]  }
 0x322   : > { %4448 = vmatmul.mubr.bf16.gmra.mrb[208].mxu1 %v6873_v26  ;;  %3641 = vmatprep.mubr.bf16.mxu0 %v6874_v27  ;;  %v6882_v26 = vld [vmem:[%s7350_s13 + $0x244] ss:$16 sps:$4 sm:$0xff]  }
 0x323   : > { %4455 = vmatprep.mubr.bf16.mxu1 %v6874_v27 }
 0x324   : > { %v2500_v38 = vpop.f32.mrb[104].mxu0 }
 0x325   : > { %5364 = vst [vmem:[%s8251_s8 + $0xb60] sm:$0xff] %v2500_v38  ;;  %v3342_v41 = vpop.f32.mrb[104].mxu1  ;;  %v2502_v42 = vpop.f32.mrb[105].mxu0  ;;  %v6884_v38 = vld [vmem:[%s7350_s13 + $0x264] ss:$16 sps:$4 sm:$0xff]  }
 0x326   : > { %5366 = vst [vmem:[%s8251_s8 + $0xb70] sm:$0xff] %v3342_v41  ;;  %5365 = vst [vmem:[%s8251_s8 + $0xb68] sm:$0xff] %v2502_v42  ;;  %v3344_v44 = vpop.f32.mrb[105].mxu1  ;;  %v2504_v45 = vpop.f32.mrb[106].mxu0 }
 0x327   : > { %5367 = vst [vmem:[%s8251_s8 + $0xb78] sm:$0xff] %v3344_v44  ;;  %5371 = vst [vmem:[%s8251_s8 + $0xb98] sm:$0xff] %v2504_v45  ;;  %v3346_v46 = vpop.f32.mrb[106].mxu1  ;;  %v2506_v47 = vpop.f32.mrb[107].mxu0 }
 0x328   : > { %5373 = vst [vmem:[%s8251_s8 + $0xba8] sm:$0xff] %v3346_v46  ;;  %5372 = vst [vmem:[%s8251_s8 + $0xba0] sm:$0xff] %v2506_v47  ;;  %v3348_v48 = vpop.f32.mrb[107].mxu1 }
 0x329   : > { %5374 = vst [vmem:[%s8251_s8 + $0xbb0] sm:$0xff] %v3348_v48  ;;  %3642 = vmatmul.mubr.bf16.gmra.mrb[212].mxu0 %v6875_v49  ;;  %v6885_v48 = vld [vmem:[%s7350_s13 + $0x260] ss:$16 sps:$4 sm:$0xff]  }
 0x32a   : > { %4456 = vmatmul.mubr.bf16.gmra.mrb[212].mxu1 %v6875_v49  ;;  %3651 = vmatprep.mubr.bf16.mxu0 %v6876_v50  ;;  %v6886_v49 = vld [vmem:[%s7350_s13 + $0x284] ss:$16 sps:$4 sm:$0xff]  }
 0x32b   : > { %4463 = vmatprep.mubr.bf16.mxu1 %v6876_v50  ;;  %v727_v50 = vld [vmem:[%s9392_s1 + $0xbf8] sm:$0xff] }
 0x32c   : > { %v2510_v51 = vpop.f32.mrb[108].mxu0 }
 0x32d   : > { %5378 = vst [vmem:[%s8251_s8 + $0xbd0] sm:$0xff] %v2510_v51  ;;  %v3352_v52 = vpop.f32.mrb[108].mxu1  ;;  %v2512_v53 = vpop.f32.mrb[109].mxu0  ;;  %v734_v51 = vld [vmem:[%s9392_s1 + $0xc30] sm:$0xff] }
 0x32e   : > { %5380 = vst [vmem:[%s8251_s8 + $0xbe0] sm:$0xff] %v3352_v52  ;;  %5379 = vst [vmem:[%s8251_s8 + $0xbd8] sm:$0xff] %v2512_v53  ;;  %v3354_v54 = vpop.f32.mrb[109].mxu1  ;;  %v2514_v55 = vpop.f32.mrb[110].mxu0  ;;  %v726_v52 = vld [vmem:[%s9392_s1 + $0xbf0] sm:$0xff]  ;;  %v930_v53 = vpack.c.bf16 %v734_v51, %v727_v50 }
 0x32f   : > { %5381 = vst [vmem:[%s8251_s8 + $0xbe8] sm:$0xff] %v3354_v54  ;;  %5385 = vst [vmem:[%s8251_s8 + $0xc08] sm:$0xff] %v2514_v55  ;;  %v3356_v56 = vpop.f32.mrb[110].mxu1  ;;  %v2516_v57 = vpop.f32.mrb[111].mxu0  ;;  %v733_v54 = vld [vmem:[%s9392_s1 + $0xc28] sm:$0xff]  ;;  %v728_v55 = vld [vmem:[%s9392_s1 + $0xc00] sm:$0xff] }
 0x330   : > { %5387 = vst [vmem:[%s8251_s8 + $0xc18] sm:$0xff] %v3356_v56  ;;  %5386 = vst [vmem:[%s8251_s8 + $0xc10] sm:$0xff] %v2516_v57  ;;  %v3358_v58 = vpop.f32.mrb[111].mxu1  ;;  %v735_v56 = vld [vmem:[%s9392_s1 + $0xc38] sm:$0xff]  ;;  %3912 = vmatprep.subr.bf16.mxu0 %v930_v53 }
 0x331   : > { %5388 = vst [vmem:[%s8251_s8 + $0xc20] sm:$0xff] %v3358_v58  ;;  %3652 = vmatmul.mubr.bf16.gmra.mrb[216].mxu0 %v6877_v59  ;;  %v929_v58 = vpack.c.bf16 %v733_v54, %v726_v52 }
 0x332   : > { %4464 = vmatmul.mubr.bf16.gmra.mrb[216].mxu1 %v6877_v59  ;;  %3661 = vmatprep.mubr.bf16.mxu0 %v6878_v60  ;;  %v931_v59 = vpack.c.bf16 %v735_v56, %v728_v55 }
 0x333   : > { %4471 = vmatprep.mubr.bf16.mxu1 %v6878_v60  ;;  %3913 = vmatpush1.bf16.msra.mxu0 %v929_v58  ;;  %v6898_v58 = vld [vmem:[%s7350_s13 + $0x344] ss:$16 sps:$4 sm:$0xff]  }
 0x334   : > { %v2520_v61 = vpop.f32.mrb[112].mxu0  ;;  %4678 = vmatpush1.bf16.msra.mxu1 %v931_v59 }
 0x335   : > { %5392 = vst [vmem:[%s8251_s8 + $0xc40] sm:$0xff] %v2520_v61  ;;  %v3362_v62 = vpop.f32.mrb[112].mxu1  ;;  %v2522_v63 = vpop.f32.mrb[113].mxu0 }
 0x336   : > { %5394 = vst [vmem:[%s8251_s8 + $0xc50] sm:$0xff] %v3362_v62  ;;  %5393 = vst [vmem:[%s8251_s8 + $0xc48] sm:$0xff] %v2522_v63  ;;  %v3364_v0 = vpop.f32.mrb[113].mxu1  ;;  %v2524_v1 = vpop.f32.mrb[114].mxu0 }
 0x337   : > { %5395 = vst [vmem:[%s8251_s8 + $0xc58] sm:$0xff] %v3364_v0  ;;  %5399 = vst [vmem:[%s8251_s8 + $0xc78] sm:$0xff] %v2524_v1  ;;  %v3366_v2 = vpop.f32.mrb[114].mxu1  ;;  %v2526_v3 = vpop.f32.mrb[115].mxu0 }
 0x338   : > { %5401 = vst [vmem:[%s8251_s8 + $0xc88] sm:$0xff] %v3366_v2  ;;  %5400 = vst [vmem:[%s8251_s8 + $0xc80] sm:$0xff] %v2526_v3  ;;  %v3368_v5 = vpop.f32.mrb[115].mxu1  ;;  %v6887_v3 = vld [vmem:[%s7350_s13 + $0x280] ss:$16 sps:$4 sm:$0xff]  }
 0x339   : > { %5402 = vst [vmem:[%s8251_s8 + $0xc90] sm:$0xff] %v3368_v5  ;;  %3662 = vmatmul.mubr.bf16.gmra.mrb[220].mxu0 %v6879_v6  ;;  %v6888_v5 = vld [vmem:[%s7350_s13 + $0x2a4] ss:$16 sps:$4 sm:$0xff]  }
 0x33a   : > { %4472 = vmatmul.mubr.bf16.gmra.mrb[220].mxu1 %v6879_v6  ;;  %3671 = vmatprep.mubr.bf16.mxu0 %v6880_v7 }
 0x33b   : > { %4479 = vmatprep.mubr.bf16.mxu1 %v6880_v7 }
 0x33c   : > { %v2530_v15 = vpop.f32.mrb[116].mxu0 }
 0x33d   : > { %5406 = vst [vmem:[%s8251_s8 + $0xcb0] sm:$0xff] %v2530_v15  ;;  %v3372_v18 = vpop.f32.mrb[116].mxu1  ;;  %v2532_v19 = vpop.f32.mrb[117].mxu0  ;;  %v6890_v15 = vld [vmem:[%s7350_s13 + $0x2c4] ss:$16 sps:$4 sm:$0xff]  }
 0x33e   : > { %5408 = vst [vmem:[%s8251_s8 + $0xcc0] sm:$0xff] %v3372_v18  ;;  %5407 = vst [vmem:[%s8251_s8 + $0xcb8] sm:$0xff] %v2532_v19  ;;  %v3374_v20 = vpop.f32.mrb[117].mxu1  ;;  %v2534_v21 = vpop.f32.mrb[118].mxu0 }
 0x33f   : > { %5409 = vst [vmem:[%s8251_s8 + $0xcc8] sm:$0xff] %v3374_v20  ;;  %5413 = vst [vmem:[%s8251_s8 + $0xce8] sm:$0xff] %v2534_v21  ;;  %v3376_v22 = vpop.f32.mrb[118].mxu1  ;;  %v2536_v23 = vpop.f32.mrb[119].mxu0 }
 0x340   : > { %5415 = vst [vmem:[%s8251_s8 + $0xcf8] sm:$0xff] %v3376_v22  ;;  %5414 = vst [vmem:[%s8251_s8 + $0xcf0] sm:$0xff] %v2536_v23  ;;  %v3378_v24 = vpop.f32.mrb[119].mxu1 }
 0x341   : > { %5416 = vst [vmem:[%s8251_s8 + $0xd00] sm:$0xff] %v3378_v24  ;;  %3672 = vmatmul.mubr.bf16.gmra.mrb[224].mxu0 %v6881_v25  ;;  %v6891_v24 = vld [vmem:[%s7350_s13 + $0x2c0] ss:$16 sps:$4 sm:$0xff]  }
 0x342   : > { %4480 = vmatmul.mubr.bf16.gmra.mrb[224].mxu1 %v6881_v25  ;;  %3681 = vmatprep.mubr.bf16.mxu0 %v6882_v26  ;;  %v6892_v25 = vld [vmem:[%s7350_s13 + $0x2e4] ss:$16 sps:$4 sm:$0xff]  }
 0x343   : > { %4487 = vmatprep.mubr.bf16.mxu1 %v6882_v26 }
 0x344   : > { %v2540_v27 = vpop.f32.mrb[120].mxu0 }
 0x345   : > { %5420 = vst [vmem:[%s8251_s8 + $0xd20] sm:$0xff] %v2540_v27  ;;  %v3382_v4 = vpop.f32.mrb[120].mxu1  ;;  %v2542_v28 = vpop.f32.mrb[121].mxu0 }
 0x346   : > { %5422 = vst [vmem:[%s8251_s8 + $0xd30] sm:$0xff] %v3382_v4  ;;  %5421 = vst [vmem:[%s8251_s8 + $0xd28] sm:$0xff] %v2542_v28  ;;  %v3384_v29 = vpop.f32.mrb[121].mxu1  ;;  %v2544_v30 = vpop.f32.mrb[122].mxu0 }
 0x347   : > { %5423 = vst [vmem:[%s8251_s8 + $0xd38] sm:$0xff] %v3384_v29  ;;  %5427 = vst [vmem:[%s8251_s8 + $0xd58] sm:$0xff] %v2544_v30  ;;  %v3386_v31 = vpop.f32.mrb[122].mxu1  ;;  %v2546_v32 = vpop.f32.mrb[123].mxu0 }
 0x348   : > { %5429 = vst [vmem:[%s8251_s8 + $0xd68] sm:$0xff] %v3386_v31  ;;  %5428 = vst [vmem:[%s8251_s8 + $0xd60] sm:$0xff] %v2546_v32  ;;  %v3388_v35 = vpop.f32.mrb[123].mxu1 }
 0x349   : > { %5430 = vst [vmem:[%s8251_s8 + $0xd70] sm:$0xff] %v3388_v35  ;;  %3682 = vmatmul.mubr.bf16.gmra.mrb[228].mxu0 %v6883_v37  ;;  %v6893_v35 = vld [vmem:[%s7350_s13 + $0x2e0] ss:$16 sps:$4 sm:$0xff]  }
 0x34a   : > { %4488 = vmatmul.mubr.bf16.gmra.mrb[228].mxu1 %v6883_v37  ;;  %3691 = vmatprep.mubr.bf16.mxu0 %v6884_v38  ;;  %v6894_v37 = vld [vmem:[%s7350_s13 + $0x304] ss:$16 sps:$4 sm:$0xff]  }
 0x34b   : > { %4495 = vmatprep.mubr.bf16.mxu1 %v6884_v38 }
 0x34c   : > { %v2550_v39 = vpop.f32.mrb[124].mxu0 }
 0x34d   : > { %5434 = vst [vmem:[%s8251_s8 + $0xd90] sm:$0xff] %v2550_v39  ;;  %v3392_v40 = vpop.f32.mrb[124].mxu1  ;;  %v2552_v41 = vpop.f32.mrb[125].mxu0 }
 0x34e   : > { %5436 = vst [vmem:[%s8251_s8 + $0xda0] sm:$0xff] %v3392_v40  ;;  %5435 = vst [vmem:[%s8251_s8 + $0xd98] sm:$0xff] %v2552_v41  ;;  %v3394_v42 = vpop.f32.mrb[125].mxu1  ;;  %v2554_v44 = vpop.f32.mrb[126].mxu0 }
 0x34f   : > { %5437 = vst [vmem:[%s8251_s8 + $0xda8] sm:$0xff] %v3394_v42  ;;  %5441 = vst [vmem:[%s8251_s8 + $0xdc8] sm:$0xff] %v2554_v44  ;;  %v3396_v45 = vpop.f32.mrb[126].mxu1  ;;  %v2556_v46 = vpop.f32.mrb[127].mxu0 }
 0x350   : > { %5443 = vst [vmem:[%s8251_s8 + $0xdd8] sm:$0xff] %v3396_v45  ;;  %5442 = vst [vmem:[%s8251_s8 + $0xdd0] sm:$0xff] %v2556_v46  ;;  %v3398_v47 = vpop.f32.mrb[127].mxu1 }
 0x351   : > { %5444 = vst [vmem:[%s8251_s8 + $0xde0] sm:$0xff] %v3398_v47  ;;  %3692 = vmatmul.mubr.bf16.gmra.mrb[232].mxu0 %v6885_v48  ;;  %v6895_v47 = vld [vmem:[%s7350_s13 + $0x300] ss:$16 sps:$4 sm:$0xff]  }
 0x352   : > { %4496 = vmatmul.mubr.bf16.gmra.mrb[232].mxu1 %v6885_v48  ;;  %3701 = vmatprep.mubr.bf16.mxu0 %v6886_v49  ;;  %v6896_v48 = vld [vmem:[%s7350_s13 + $0x324] ss:$16 sps:$4 sm:$0xff]  }
 0x353   : > { %4503 = vmatprep.mubr.bf16.mxu1 %v6886_v49 }
 0x354   : > { %v2560_v57 = vpop.f32.mrb[128].mxu0 }
 0x355   : > { %5448 = vst [vmem:[%s8251_s8 + $0xe00] sm:$0xff] %v2560_v57  ;;  %v3402_v60 = vpop.f32.mrb[128].mxu1  ;;  %v2562_v61 = vpop.f32.mrb[129].mxu0  ;;  %v6897_v57 = vld [vmem:[%s7350_s13 + $0x320] ss:$16 sps:$4 sm:$0xff]  }
 0x356   : > { %5450 = vst [vmem:[%s8251_s8 + $0xe10] sm:$0xff] %v3402_v60  ;;  %5449 = vst [vmem:[%s8251_s8 + $0xe08] sm:$0xff] %v2562_v61  ;;  %v3404_v62 = vpop.f32.mrb[129].mxu1  ;;  %v2564_v63 = vpop.f32.mrb[130].mxu0 }
 0x357   : > { %5451 = vst [vmem:[%s8251_s8 + $0xe18] sm:$0xff] %v3404_v62  ;;  %5455 = vst [vmem:[%s8251_s8 + $0xe38] sm:$0xff] %v2564_v63  ;;  %v3406_v0 = vpop.f32.mrb[130].mxu1  ;;  %v2566_v1 = vpop.f32.mrb[131].mxu0 }
 0x358   : > { %5457 = vst [vmem:[%s8251_s8 + $0xe48] sm:$0xff] %v3406_v0  ;;  %5456 = vst [vmem:[%s8251_s8 + $0xe40] sm:$0xff] %v2566_v1  ;;  %v3408_v2 = vpop.f32.mrb[131].mxu1 }
 0x359   : > { %5458 = vst [vmem:[%s8251_s8 + $0xe50] sm:$0xff] %v3408_v2  ;;  %3702 = vmatmul.mubr.bf16.gmra.mrb[236].mxu0 %v6887_v3 }
 0x35a   : > { %4504 = vmatmul.mubr.bf16.gmra.mrb[236].mxu1 %v6887_v3  ;;  %3711 = vmatprep.mubr.bf16.mxu0 %v6888_v5  ;;  %v6899_v3 = vld [vmem:[%s7350_s13 + $0x340] ss:$16 sps:$4 sm:$0xff]  }
 0x35b   : > { %4511 = vmatprep.mubr.bf16.mxu1 %v6888_v5  ;;  %v6900_v5 = vld [vmem:[%s7350_s13 + $0x364] ss:$16 sps:$4 sm:$0xff]  }
 0x35c   : > { %v2570_v6 = vpop.f32.mrb[132].mxu0 }
 0x35d   : > { %5462 = vst [vmem:[%s8251_s8 + $0xe70] sm:$0xff] %v2570_v6  ;;  %v3412_v7 = vpop.f32.mrb[132].mxu1  ;;  %v2572_v8 = vpop.f32.mrb[133].mxu0  ;;  %v6901_v6 = vld [vmem:[%s7350_s13 + $0x360] ss:$16 sps:$4 sm:$0xff]  }
 0x35e   : > { %5464 = vst [vmem:[%s8251_s8 + $0xe80] sm:$0xff] %v3412_v7  ;;  %5463 = vst [vmem:[%s8251_s8 + $0xe78] sm:$0xff] %v2572_v8  ;;  %v3414_v9 = vpop.f32.mrb[133].mxu1  ;;  %v2574_v10 = vpop.f32.mrb[134].mxu0  ;;  %v6902_v7 = vld [vmem:[%s7350_s13 + $0x384] ss:$16 sps:$4 sm:$0xff]  }
 0x35f   : > { %5465 = vst [vmem:[%s8251_s8 + $0xe88] sm:$0xff] %v3414_v9  ;;  %5469 = vst [vmem:[%s8251_s8 + $0xea8] sm:$0xff] %v2574_v10  ;;  %v3416_v11 = vpop.f32.mrb[134].mxu1  ;;  %v2576_v12 = vpop.f32.mrb[135].mxu0  ;;  %v6903_v8 = vld [vmem:[%s7350_s13 + $0x380] ss:$16 sps:$4 sm:$0xff]  }
 0x360   : > { %5471 = vst [vmem:[%s8251_s8 + $0xeb8] sm:$0xff] %v3416_v11  ;;  %5470 = vst [vmem:[%s8251_s8 + $0xeb0] sm:$0xff] %v2576_v12  ;;  %v3418_v13 = vpop.f32.mrb[135].mxu1  ;;  %v6904_v9 = vld [vmem:[%s7350_s13 + $0x3a4] ss:$16 sps:$4 sm:$0xff]  }
 0x361   : > { %5472 = vst [vmem:[%s8251_s8 + $0xec0] sm:$0xff] %v3418_v13  ;;  %3712 = vmatmul.mubr.bf16.gmra.mrb[240].mxu0 %v6889_v14  ;;  %v6905_v10 = vld [vmem:[%s7350_s13 + $0x3a0] ss:$16 sps:$4 sm:$0xff]   ;;  %v6906_v11 = vld [vmem:[%s7350_s13 + $0x3c4] ss:$16 sps:$4 sm:$0xff]  }
 0x362   : > { %4512 = vmatmul.mubr.bf16.gmra.mrb[240].mxu1 %v6889_v14  ;;  %3721 = vmatprep.mubr.bf16.mxu0 %v6890_v15  ;;  %v6907_v12 = vld [vmem:[%s7350_s13 + $0x3c0] ss:$16 sps:$4 sm:$0xff]   ;;  %v6908_v13 = vld [vmem:[%s7350_s13 + $0x3e4] ss:$16 sps:$4 sm:$0xff]  }
 0x363   : > { %4519 = vmatprep.mubr.bf16.mxu1 %v6890_v15  ;;  %v6909_v14 = vld [vmem:[%s7350_s13 + $0x3e0] ss:$16 sps:$4 sm:$0xff]   ;;  %v6910_v15 = vld [vmem:[%s7350_s13 + $0x404] ss:$16 sps:$4 sm:$0xff]  }
 0x364   : > { %v2580_v16 = vpop.f32.mrb[136].mxu0 }
 0x365   : > { %5476 = vst [vmem:[%s8251_s8 + $0xee0] sm:$0xff] %v2580_v16  ;;  %v3422_v17 = vpop.f32.mrb[136].mxu1  ;;  %v2582_v18 = vpop.f32.mrb[137].mxu0  ;;  %v6911_v16 = vld [vmem:[%s7350_s13 + $0x400] ss:$16 sps:$4 sm:$0xff]  }
 0x366   : > { %5478 = vst [vmem:[%s8251_s8 + $0xef0] sm:$0xff] %v3422_v17  ;;  %5477 = vst [vmem:[%s8251_s8 + $0xee8] sm:$0xff] %v2582_v18  ;;  %v3424_v19 = vpop.f32.mrb[137].mxu1  ;;  %v2584_v20 = vpop.f32.mrb[138].mxu0  ;;  %v6912_v17 = vld [vmem:[%s7350_s13 + $0x424] ss:$16 sps:$4 sm:$0xff]  }
 0x367   : > { %5479 = vst [vmem:[%s8251_s8 + $0xef8] sm:$0xff] %v3424_v19  ;;  %5483 = vst [vmem:[%s8251_s8 + $0xf18] sm:$0xff] %v2584_v20  ;;  %v3426_v21 = vpop.f32.mrb[138].mxu1  ;;  %v2586_v22 = vpop.f32.mrb[139].mxu0  ;;  %v6913_v18 = vld [vmem:[%s7350_s13 + $0x420] ss:$16 sps:$4 sm:$0xff]  }
 0x368   : > { %5485 = vst [vmem:[%s8251_s8 + $0xf28] sm:$0xff] %v3426_v21  ;;  %5484 = vst [vmem:[%s8251_s8 + $0xf20] sm:$0xff] %v2586_v22  ;;  %v3428_v23 = vpop.f32.mrb[139].mxu1  ;;  %v6914_v19 = vld [vmem:[%s7350_s13 + $0x444] ss:$16 sps:$4 sm:$0xff]  }
 0x369   : > { %5486 = vst [vmem:[%s8251_s8 + $0xf30] sm:$0xff] %v3428_v23  ;;  %3722 = vmatmul.mubr.bf16.gmra.mrb[244].mxu0 %v6891_v24  ;;  %v6915_v20 = vld [vmem:[%s7350_s13 + $0x440] ss:$16 sps:$4 sm:$0xff]   ;;  %v6916_v21 = vld [vmem:[%s7350_s13 + $0x464] ss:$16 sps:$4 sm:$0xff]  }
 0x36a   : > { %4520 = vmatmul.mubr.bf16.gmra.mrb[244].mxu1 %v6891_v24  ;;  %3731 = vmatprep.mubr.bf16.mxu0 %v6892_v25  ;;  %v6917_v22 = vld [vmem:[%s7350_s13 + $0x460] ss:$16 sps:$4 sm:$0xff]   ;;  %v6918_v23 = vld [vmem:[%s7350_s13 + $0x484] ss:$16 sps:$4 sm:$0xff]  }
 0x36b   : > { %4527 = vmatprep.mubr.bf16.mxu1 %v6892_v25  ;;  %v6919_v24 = vld [vmem:[%s7350_s13 + $0x480] ss:$16 sps:$4 sm:$0xff]   ;;  %v6920_v25 = vld [vmem:[%s7350_s13 + $0x4a4] ss:$16 sps:$4 sm:$0xff]  }
 0x36c   : > { %v2590_v26 = vpop.f32.mrb[140].mxu0 }
 0x36d   : > { %5490 = vst [vmem:[%s8251_s8 + $0xf50] sm:$0xff] %v2590_v26  ;;  %v3432_v27 = vpop.f32.mrb[140].mxu1  ;;  %v2592_v4 = vpop.f32.mrb[141].mxu0  ;;  %v6921_v26 = vld [vmem:[%s7350_s13 + $0x4a0] ss:$16 sps:$4 sm:$0xff]  }
 0x36e   : > { %5492 = vst [vmem:[%s8251_s8 + $0xf60] sm:$0xff] %v3432_v27  ;;  %5491 = vst [vmem:[%s8251_s8 + $0xf58] sm:$0xff] %v2592_v4  ;;  %v3434_v28 = vpop.f32.mrb[141].mxu1  ;;  %v2594_v29 = vpop.f32.mrb[142].mxu0  ;;  %v6922_v27 = vld [vmem:[%s7350_s13 + $0xc] ss:$16 sps:$4 sm:$0xff]  }
 0x36f   : > { %5493 = vst [vmem:[%s8251_s8 + $0xf68] sm:$0xff] %v3434_v28  ;;  %5497 = vst [vmem:[%s8251_s8 + $0xf88] sm:$0xff] %v2594_v29  ;;  %v3436_v30 = vpop.f32.mrb[142].mxu1  ;;  %v2596_v31 = vpop.f32.mrb[143].mxu0  ;;  %v6923_v4 = vld [vmem:[%s7350_s13 + $0x8] ss:$16 sps:$4 sm:$0xff]  }
 0x370   : > { %5499 = vst [vmem:[%s8251_s8 + $0xf98] sm:$0xff] %v3436_v30  ;;  %5498 = vst [vmem:[%s8251_s8 + $0xf90] sm:$0xff] %v2596_v31  ;;  %v3438_v32 = vpop.f32.mrb[143].mxu1  ;;  %v6924_v28 = vld [vmem:[%s7350_s13 + $0x2c] ss:$16 sps:$4 sm:$0xff]  }
 0x371   : > { %5500 = vst [vmem:[%s8251_s8 + $0xfa0] sm:$0xff] %v3438_v32  ;;  %3732 = vmatmul.mubr.bf16.gmra.mrb[248].mxu0 %v6893_v35  ;;  %v6927_v29 = vld [vmem:[%s7350_s13 + $0x48] ss:$16 sps:$4 sm:$0xff]   ;;  %v6928_v30 = vld [vmem:[%s7350_s13 + $0x6c] ss:$16 sps:$4 sm:$0xff]  }
 0x372   : > { %4528 = vmatmul.mubr.bf16.gmra.mrb[248].mxu1 %v6893_v35  ;;  %3741 = vmatprep.mubr.bf16.mxu0 %v6894_v37  ;;  %v6929_v31 = vld [vmem:[%s7350_s13 + $0x68] ss:$16 sps:$4 sm:$0xff]   ;;  %v6930_v32 = vld [vmem:[%s7350_s13 + $0x8c] ss:$16 sps:$4 sm:$0xff]  }
 0x373   : > { %4535 = vmatprep.mubr.bf16.mxu1 %v6894_v37  ;;  %v6931_v35 = vld [vmem:[%s7350_s13 + $0x88] ss:$16 sps:$4 sm:$0xff]   ;;  %v6932_v37 = vld [vmem:[%s7350_s13 + $0xac] ss:$16 sps:$4 sm:$0xff]  }
 0x374   : > { %v2600_v38 = vpop.f32.mrb[144].mxu0 }
 0x375   : > { %5504 = vst [vmem:[%s8251_s8 + $0xfc0] sm:$0xff] %v2600_v38  ;;  %v3442_v39 = vpop.f32.mrb[144].mxu1  ;;  %v2602_v40 = vpop.f32.mrb[145].mxu0  ;;  %v6933_v38 = vld [vmem:[%s7350_s13 + $0xa8] ss:$16 sps:$4 sm:$0xff]  }
 0x376   : > { %5506 = vst [vmem:[%s8251_s8 + $0xfd0] sm:$0xff] %v3442_v39  ;;  %5505 = vst [vmem:[%s8251_s8 + $0xfc8] sm:$0xff] %v2602_v40  ;;  %v3444_v41 = vpop.f32.mrb[145].mxu1  ;;  %v2604_v42 = vpop.f32.mrb[146].mxu0  ;;  %v6934_v39 = vld [vmem:[%s7350_s13 + $0xcc] ss:$16 sps:$4 sm:$0xff]  }
 0x377   : > { %5507 = vst [vmem:[%s8251_s8 + $0xfd8] sm:$0xff] %v3444_v41  ;;  %5511 = vst [vmem:[%s8251_s8 + $0xff8] sm:$0xff] %v2604_v42  ;;  %v3446_v44 = vpop.f32.mrb[146].mxu1  ;;  %v2606_v45 = vpop.f32.mrb[147].mxu0  ;;  %v6935_v40 = vld [vmem:[%s7350_s13 + $0xc8] ss:$16 sps:$4 sm:$0xff]  }
 0x378   : > { %5513 = vst [vmem:[%s8251_s8 + $0x1008] sm:$0xff] %v3446_v44  ;;  %5512 = vst [vmem:[%s8251_s8 + $0x1000] sm:$0xff] %v2606_v45  ;;  %v3448_v46 = vpop.f32.mrb[147].mxu1  ;;  %v6936_v41 = vld [vmem:[%s7350_s13 + $0xec] ss:$16 sps:$4 sm:$0xff]  }
 0x379   : > { %5514 = vst [vmem:[%s8251_s8 + $0x1010] sm:$0xff] %v3448_v46  ;;  %3742 = vmatmul.mubr.bf16.gmra.mrb[252].mxu0 %v6895_v47  ;;  %v6937_v42 = vld [vmem:[%s7350_s13 + $0xe8] ss:$16 sps:$4 sm:$0xff]   ;;  %v6938_v44 = vld [vmem:[%s7350_s13 + $0x10c] ss:$16 sps:$4 sm:$0xff]  }
 0x37a   : > { %4536 = vmatmul.mubr.bf16.gmra.mrb[252].mxu1 %v6895_v47  ;;  %3751 = vmatprep.mubr.bf16.mxu0 %v6896_v48  ;;  %v6939_v45 = vld [vmem:[%s7350_s13 + $0x108] ss:$16 sps:$4 sm:$0xff]   ;;  %v6940_v46 = vld [vmem:[%s7350_s13 + $0x12c] ss:$16 sps:$4 sm:$0xff]  }
 0x37b   : > { %4543 = vmatprep.mubr.bf16.mxu1 %v6896_v48  ;;  %v6941_v47 = vld [vmem:[%s7350_s13 + $0x128] ss:$16 sps:$4 sm:$0xff]   ;;  %v6942_v48 = vld [vmem:[%s7350_s13 + $0x14c] ss:$16 sps:$4 sm:$0xff]  }
 0x37c   : > { %v2610_v49 = vpop.f32.mrb[148].mxu0 }
 0x37d   : > { %5518 = vst [vmem:[%s8251_s8 + $0x1030] sm:$0xff] %v2610_v49  ;;  %v3452_v50 = vpop.f32.mrb[148].mxu1  ;;  %v2612_v51 = vpop.f32.mrb[149].mxu0  ;;  %v6943_v49 = vld [vmem:[%s7350_s13 + $0x148] ss:$16 sps:$4 sm:$0xff]  }
 0x37e   : > { %5520 = vst [vmem:[%s8251_s8 + $0x1040] sm:$0xff] %v3452_v50  ;;  %5519 = vst [vmem:[%s8251_s8 + $0x1038] sm:$0xff] %v2612_v51  ;;  %v3454_v52 = vpop.f32.mrb[149].mxu1  ;;  %v2614_v53 = vpop.f32.mrb[150].mxu0  ;;  %v6944_v50 = vld [vmem:[%s7350_s13 + $0x16c] ss:$16 sps:$4 sm:$0xff]  }
 0x37f   : > { %5521 = vst [vmem:[%s8251_s8 + $0x1048] sm:$0xff] %v3454_v52  ;;  %5525 = vst [vmem:[%s8251_s8 + $0x1068] sm:$0xff] %v2614_v53  ;;  %v3456_v54 = vpop.f32.mrb[150].mxu1  ;;  %v2616_v55 = vpop.f32.mrb[151].mxu0  ;;  %v6945_v51 = vld [vmem:[%s7350_s13 + $0x168] ss:$16 sps:$4 sm:$0xff]  }
 0x380   : > { %5527 = vst [vmem:[%s8251_s8 + $0x1078] sm:$0xff] %v3456_v54  ;;  %5526 = vst [vmem:[%s8251_s8 + $0x1070] sm:$0xff] %v2616_v55  ;;  %v3458_v56 = vpop.f32.mrb[151].mxu1  ;;  %v6946_v52 = vld [vmem:[%s7350_s13 + $0x18c] ss:$16 sps:$4 sm:$0xff]  }
 0x381   : > { %5528 = vst [vmem:[%s8251_s8 + $0x1080] sm:$0xff] %v3458_v56  ;;  %3752 = vmatmul.mubr.bf16.gmra.mrb[0].mxu0 %v6897_v57  ;;  %v6947_v53 = vld [vmem:[%s7350_s13 + $0x188] ss:$16 sps:$4 sm:$0xff]   ;;  %v6948_v54 = vld [vmem:[%s7350_s13 + $0x1ac] ss:$16 sps:$4 sm:$0xff]  }
 0x382   : > { %4544 = vmatmul.mubr.bf16.gmra.mrb[0].mxu1 %v6897_v57  ;;  %3761 = vmatprep.mubr.bf16.mxu0 %v6898_v58  ;;  %v6949_v55 = vld [vmem:[%s7350_s13 + $0x1a8] ss:$16 sps:$4 sm:$0xff]   ;;  %v6950_v56 = vld [vmem:[%s7350_s13 + $0x1cc] ss:$16 sps:$4 sm:$0xff]  }
 0x383   : > { %4551 = vmatprep.mubr.bf16.mxu1 %v6898_v58  ;;  %v6951_v57 = vld [vmem:[%s7350_s13 + $0x1c8] ss:$16 sps:$4 sm:$0xff]   ;;  %v6952_v58 = vld [vmem:[%s7350_s13 + $0x1ec] ss:$16 sps:$4 sm:$0xff]  }
 0x384   : > { %v2620_v59 = vpop.f32.mrb[152].mxu0 }
 0x385   : > { %5532 = vst [vmem:[%s8251_s8 + $0x10a0] sm:$0xff] %v2620_v59  ;;  %v3462_v60 = vpop.f32.mrb[152].mxu1  ;;  %v2622_v61 = vpop.f32.mrb[153].mxu0  ;;  %v6953_v59 = vld [vmem:[%s7350_s13 + $0x1e8] ss:$16 sps:$4 sm:$0xff]  }
 0x386   : > { %5534 = vst [vmem:[%s8251_s8 + $0x10b0] sm:$0xff] %v3462_v60  ;;  %5533 = vst [vmem:[%s8251_s8 + $0x10a8] sm:$0xff] %v2622_v61  ;;  %v3464_v62 = vpop.f32.mrb[153].mxu1  ;;  %v2624_v63 = vpop.f32.mrb[154].mxu0  ;;  %v6954_v60 = vld [vmem:[%s7350_s13 + $0x20c] ss:$16 sps:$4 sm:$0xff]  }
 0x387   : > { %5535 = vst [vmem:[%s8251_s8 + $0x10b8] sm:$0xff] %v3464_v62  ;;  %v3466_v0 = vpop.f32.mrb[154].mxu1  ;;  %v2625_v1 = vpop.f32.mrb[155].mxu0  ;;  %v6955_v61 = vld [vmem:[%s7350_s13 + $0x208] ss:$16 sps:$4 sm:$0xff]  }
 0x388   : > { %v3467_v2 = vpop.f32.mrb[155].mxu1  ;;  %v6956_v62 = vld [vmem:[%s7350_s13 + $0x22c] ss:$16 sps:$4 sm:$0xff]   ;;  %v6957_v63 = vld [vmem:[%s7350_s13 + $0x228] ss:$16 sps:$4 sm:$0xff]  }
 0x389   : > { %3762 = vmatmul.mubr.bf16.gmra.mrb[4].mxu0 %v6899_v3  ;;  %v6958_v0 = vld [vmem:[%s7350_s13 + $0x24c] ss:$16 sps:$4 sm:$0xff]   ;;  %v6959_v1 = vld [vmem:[%s7350_s13 + $0x248] ss:$16 sps:$4 sm:$0xff]  }
 0x38a   : > { %4552 = vmatmul.mubr.bf16.gmra.mrb[4].mxu1 %v6899_v3  ;;  %3771 = vmatprep.mubr.bf16.mxu0 %v6900_v5  ;;  %v6960_v2 = vld [vmem:[%s7350_s13 + $0x26c] ss:$16 sps:$4 sm:$0xff]   ;;  %v6961_v3 = vld [vmem:[%s7350_s13 + $0x268] ss:$16 sps:$4 sm:$0xff]  }
 0x38b   : > { %4559 = vmatprep.mubr.bf16.mxu1 %v6900_v5  ;;  %v6962_v5 = vld [vmem:[%s7350_s13 + $0x28c] ss:$16 sps:$4 sm:$0xff]  }
 0x391   : > { %3772 = vmatmul.mubr.bf16.gmra.mrb[8].mxu0 %v6901_v6 }
 0x392   : > { %4560 = vmatmul.mubr.bf16.gmra.mrb[8].mxu1 %v6901_v6  ;;  %3781 = vmatprep.mubr.bf16.mxu0 %v6902_v7  ;;  %v6963_v6 = vld [vmem:[%s7350_s13 + $0x288] ss:$16 sps:$4 sm:$0xff]  }
 0x393   : > { %4567 = vmatprep.mubr.bf16.mxu1 %v6902_v7  ;;  %v6964_v7 = vld [vmem:[%s7350_s13 + $0x2ac] ss:$16 sps:$4 sm:$0xff]  }
 0x399   : > { %3782 = vmatmul.mubr.bf16.gmra.mrb[12].mxu0 %v6903_v8 }
 0x39a   : > { %4568 = vmatmul.mubr.bf16.gmra.mrb[12].mxu1 %v6903_v8  ;;  %3791 = vmatprep.mubr.bf16.mxu0 %v6904_v9  ;;  %v6965_v8 = vld [vmem:[%s7350_s13 + $0x2a8] ss:$16 sps:$4 sm:$0xff]  }
 0x39b   : > { %4575 = vmatprep.mubr.bf16.mxu1 %v6904_v9  ;;  %v6966_v9 = vld [vmem:[%s7350_s13 + $0x2cc] ss:$16 sps:$4 sm:$0xff]  }
 0x3a1   : > { %3792 = vmatmul.mubr.bf16.gmra.mrb[16].mxu0 %v6905_v10 }
 0x3a2   : > { %4576 = vmatmul.mubr.bf16.gmra.mrb[16].mxu1 %v6905_v10  ;;  %3801 = vmatprep.mubr.bf16.mxu0 %v6906_v11  ;;  %v6967_v10 = vld [vmem:[%s7350_s13 + $0x2c8] ss:$16 sps:$4 sm:$0xff]  }
 0x3a3   : > { %4583 = vmatprep.mubr.bf16.mxu1 %v6906_v11  ;;  %v6968_v11 = vld [vmem:[%s7350_s13 + $0x2ec] ss:$16 sps:$4 sm:$0xff]  }
 0x3a9   : > { %3802 = vmatmul.mubr.bf16.gmra.mrb[20].mxu0 %v6907_v12 }
 0x3aa   : > { %4584 = vmatmul.mubr.bf16.gmra.mrb[20].mxu1 %v6907_v12  ;;  %3811 = vmatprep.mubr.bf16.mxu0 %v6908_v13  ;;  %v6969_v12 = vld [vmem:[%s7350_s13 + $0x2e8] ss:$16 sps:$4 sm:$0xff]  }
 0x3ab   : > { %4591 = vmatprep.mubr.bf16.mxu1 %v6908_v13  ;;  %v6970_v13 = vld [vmem:[%s7350_s13 + $0x30c] ss:$16 sps:$4 sm:$0xff]  }
 0x3b1   : > { %3812 = vmatmul.mubr.bf16.gmra.mrb[24].mxu0 %v6909_v14 }
 0x3b2   : > { %4592 = vmatmul.mubr.bf16.gmra.mrb[24].mxu1 %v6909_v14  ;;  %3821 = vmatprep.mubr.bf16.mxu0 %v6910_v15  ;;  %v6971_v14 = vld [vmem:[%s7350_s13 + $0x308] ss:$16 sps:$4 sm:$0xff]  }
 0x3b3   : > { %4599 = vmatprep.mubr.bf16.mxu1 %v6910_v15  ;;  %v6972_v15 = vld [vmem:[%s7350_s13 + $0x32c] ss:$16 sps:$4 sm:$0xff]  }
 0x3b9   : > { %3822 = vmatmul.mubr.bf16.gmra.mrb[28].mxu0 %v6911_v16 }
 0x3ba   : > { %4600 = vmatmul.mubr.bf16.gmra.mrb[28].mxu1 %v6911_v16  ;;  %3831 = vmatprep.mubr.bf16.mxu0 %v6912_v17  ;;  %v6973_v16 = vld [vmem:[%s7350_s13 + $0x328] ss:$16 sps:$4 sm:$0xff]  }
 0x3bb   : > { %4607 = vmatprep.mubr.bf16.mxu1 %v6912_v17  ;;  %v6974_v17 = vld [vmem:[%s7350_s13 + $0x34c] ss:$16 sps:$4 sm:$0xff]  }
 0x3c1   : > { %3832 = vmatmul.mubr.bf16.gmra.mrb[32].mxu0 %v6913_v18 }
 0x3c2   : > { %4608 = vmatmul.mubr.bf16.gmra.mrb[32].mxu1 %v6913_v18  ;;  %3841 = vmatprep.mubr.bf16.mxu0 %v6914_v19  ;;  %v6975_v18 = vld [vmem:[%s7350_s13 + $0x348] ss:$16 sps:$4 sm:$0xff]  }
 0x3c3   : > { %4615 = vmatprep.mubr.bf16.mxu1 %v6914_v19  ;;  %v6976_v19 = vld [vmem:[%s7350_s13 + $0x36c] ss:$16 sps:$4 sm:$0xff]  }
 0x3c9   : > { %3842 = vmatmul.mubr.bf16.gmra.mrb[36].mxu0 %v6915_v20 }
 0x3ca   : > { %4616 = vmatmul.mubr.bf16.gmra.mrb[36].mxu1 %v6915_v20  ;;  %3851 = vmatprep.mubr.bf16.mxu0 %v6916_v21 }
 0x3cb   : > { %4623 = vmatprep.mubr.bf16.mxu1 %v6916_v21 }
 0x3d1   : > { %3852 = vmatmul.mubr.bf16.gmra.mrb[40].mxu0 %v6917_v22 }
 0x3d2   : > { %4624 = vmatmul.mubr.bf16.gmra.mrb[40].mxu1 %v6917_v22  ;;  %3861 = vmatprep.mubr.bf16.mxu0 %v6918_v23 }
 0x3d3   : > { %4631 = vmatprep.mubr.bf16.mxu1 %v6918_v23 }
 0x3d9   : > { %3862 = vmatmul.mubr.bf16.gmra.mrb[44].mxu0 %v6919_v24 }
 0x3da   : > { %4632 = vmatmul.mubr.bf16.gmra.mrb[44].mxu1 %v6919_v24  ;;  %3871 = vmatprep.mubr.bf16.mxu0 %v6920_v25 }
 0x3db   : > { %4639 = vmatprep.mubr.bf16.mxu1 %v6920_v25 }
 0x3e1   : > { %3872 = vmatmul.mubr.bf16.gmra.mrb[48].mxu0 %v6921_v26 }
 0x3e2   : > { %4640 = vmatmul.mubr.bf16.gmra.mrb[48].mxu1 %v6921_v26  ;;  %3881 = vmatprep.mubr.bf16.mxu0 %v7826_v33 }
 0x3e3   : > { %4647 = vmatprep.mubr.bf16.mxu1 %v7826_v33  ;;  %v6925_v33 = vld [vmem:[%s7350_s13 + $0x28] ss:$16 sps:$4 sm:$0xff]  }
 0x3e9   : > { %3882 = vmatmul.mubr.bf16.gmra.mrb[52].mxu0 %v7830_v34 }
 0x3ea   : > { %4648 = vmatmul.mubr.bf16.gmra.mrb[52].mxu1 %v7830_v34  ;;  %5883 = vmatprep.mubr.msk.bf16.mxu0 %vm1667_vm0, %v6922_v27  ;;  %v6926_v34 = vld [vmem:[%s7350_s13 + $0x4c] ss:$16 sps:$4 sm:$0xff]  }
 0x3eb   : > { %5922 = vmatprep.mubr.msk.bf16.mxu1 %vm1667_vm0, %v6922_v27 }
 0x3f1   : > { %3923 = vmatmul.mubr.bf16.vlgmr.msra.gmra.mrb[156].mxu0 %v6923_v4 }
 0x3f2   : > { %4688 = vmatmul.mubr.bf16.vlgmr.msra.gmra.mrb[156].mxu1 %v6923_v4  ;;  %5884 = vmatprep.mubr.msk.bf16.mxu0 %vm1667_vm0, %v6924_v28  ;;  %v6977_v4 = vld [vmem:[%s7350_s13 + $0x368] ss:$16 sps:$4 sm:$0xff]  }
 0x3f3   : > { %5923 = vmatprep.mubr.msk.bf16.mxu1 %vm1667_vm0, %v6924_v28  ;;  %v6978_v28 = vld [vmem:[%s7350_s13 + $0x38c] ss:$16 sps:$4 sm:$0xff]  }
 0x3f9   : > { %3933 = vmatmul.mubr.bf16.gmra.mrb[160].mxu0 %v6925_v33 }
 0x3fa   : > { %4696 = vmatmul.mubr.bf16.gmra.mrb[160].mxu1 %v6925_v33  ;;  %5885 = vmatprep.mubr.msk.bf16.mxu0 %vm1667_vm0, %v6926_v34 }
 0x3fb   : > { %5924 = vmatprep.mubr.msk.bf16.mxu1 %vm1667_vm0, %v6926_v34 }
 0x401   : > { %3943 = vmatmul.mubr.bf16.gmra.mrb[164].mxu0 %v6927_v29 }
 0x402   : > { %4704 = vmatmul.mubr.bf16.gmra.mrb[164].mxu1 %v6927_v29  ;;  %5886 = vmatprep.mubr.msk.bf16.mxu0 %vm1667_vm0, %v6928_v30 }
 0x403   : > { %5925 = vmatprep.mubr.msk.bf16.mxu1 %vm1667_vm0, %v6928_v30 }
 0x409   : > { %3953 = vmatmul.mubr.bf16.gmra.mrb[168].mxu0 %v6929_v31 }
 0x40a   : > { %4712 = vmatmul.mubr.bf16.gmra.mrb[168].mxu1 %v6929_v31  ;;  %5887 = vmatprep.mubr.msk.bf16.mxu0 %vm1667_vm0, %v6930_v32 }
 0x40b   : > { %5926 = vmatprep.mubr.msk.bf16.mxu1 %vm1667_vm0, %v6930_v32 }
 0x411   : > { %3963 = vmatmul.mubr.bf16.gmra.mrb[172].mxu0 %v6931_v35 }
 0x412   : > { %4720 = vmatmul.mubr.bf16.gmra.mrb[172].mxu1 %v6931_v35  ;;  %5888 = vmatprep.mubr.msk.bf16.mxu0 %vm1667_vm0, %v6932_v37 }
 0x413   : > { %5927 = vmatprep.mubr.msk.bf16.mxu1 %vm1667_vm0, %v6932_v37 }
 0x419   : > { %3973 = vmatmul.mubr.bf16.gmra.mrb[176].mxu0 %v6933_v38 }
 0x41a   : > { %4728 = vmatmul.mubr.bf16.gmra.mrb[176].mxu1 %v6933_v38  ;;  %5889 = vmatprep.mubr.msk.bf16.mxu0 %vm1667_vm0, %v6934_v39  ;;  %v6979_v38 = vld [vmem:[%s7350_s13 + $0x388] ss:$16 sps:$4 sm:$0xff]  }
 0x41b   : > { %5928 = vmatprep.mubr.msk.bf16.mxu1 %vm1667_vm0, %v6934_v39  ;;  %v6980_v39 = vld [vmem:[%s7350_s13 + $0x3ac] ss:$16 sps:$4 sm:$0xff]  }
 0x421   : > { %3983 = vmatmul.mubr.bf16.gmra.mrb[180].mxu0 %v6935_v40 }
 0x422   : > { %4736 = vmatmul.mubr.bf16.gmra.mrb[180].mxu1 %v6935_v40  ;;  %5890 = vmatprep.mubr.msk.bf16.mxu0 %vm1667_vm0, %v6936_v41 }
 0x423   : > { %5929 = vmatprep.mubr.msk.bf16.mxu1 %vm1667_vm0, %v6936_v41 }
 0x429   : > { %3993 = vmatmul.mubr.bf16.gmra.mrb[184].mxu0 %v6937_v42 }
 0x42a   : > { %4744 = vmatmul.mubr.bf16.gmra.mrb[184].mxu1 %v6937_v42  ;;  %5891 = vmatprep.mubr.msk.bf16.mxu0 %vm1667_vm0, %v6938_v44 }
 0x42b   : > { %5930 = vmatprep.mubr.msk.bf16.mxu1 %vm1667_vm0, %v6938_v44 }
 0x431   : > { %4003 = vmatmul.mubr.bf16.gmra.mrb[188].mxu0 %v6939_v45 }
 0x432   : > { %4752 = vmatmul.mubr.bf16.gmra.mrb[188].mxu1 %v6939_v45  ;;  %5892 = vmatprep.mubr.msk.bf16.mxu0 %vm1667_vm0, %v6940_v46 }
 0x433   : > { %5931 = vmatprep.mubr.msk.bf16.mxu1 %vm1667_vm0, %v6940_v46 }
 0x439   : > { %4013 = vmatmul.mubr.bf16.gmra.mrb[192].mxu0 %v6941_v47 }
 0x43a   : > { %4760 = vmatmul.mubr.bf16.gmra.mrb[192].mxu1 %v6941_v47  ;;  %5893 = vmatprep.mubr.msk.bf16.mxu0 %vm1667_vm0, %v6942_v48 }
 0x43b   : > { %5932 = vmatprep.mubr.msk.bf16.mxu1 %vm1667_vm0, %v6942_v48 }
 0x441   : > { %4023 = vmatmul.mubr.bf16.gmra.mrb[196].mxu0 %v6943_v49 }
 0x442   : > { %4768 = vmatmul.mubr.bf16.gmra.mrb[196].mxu1 %v6943_v49  ;;  %5894 = vmatprep.mubr.msk.bf16.mxu0 %vm1667_vm0, %v6944_v50  ;;  %v6981_v49 = vld [vmem:[%s7350_s13 + $0x3a8] ss:$16 sps:$4 sm:$0xff]  }
 0x443   : > { %5933 = vmatprep.mubr.msk.bf16.mxu1 %vm1667_vm0, %v6944_v50  ;;  %v6982_v50 = vld [vmem:[%s7350_s13 + $0x3cc] ss:$16 sps:$4 sm:$0xff]  }
 0x449   : > { %4033 = vmatmul.mubr.bf16.gmra.mrb[200].mxu0 %v6945_v51 }
 0x44a   : > { %4776 = vmatmul.mubr.bf16.gmra.mrb[200].mxu1 %v6945_v51  ;;  %5895 = vmatprep.mubr.msk.bf16.mxu0 %vm1667_vm0, %v6946_v52 }
 0x44b   : > { %5934 = vmatprep.mubr.msk.bf16.mxu1 %vm1667_vm0, %v6946_v52 }
 0x451   : > { %4043 = vmatmul.mubr.bf16.gmra.mrb[204].mxu0 %v6947_v53 }
 0x452   : > { %4784 = vmatmul.mubr.bf16.gmra.mrb[204].mxu1 %v6947_v53  ;;  %5896 = vmatprep.mubr.msk.bf16.mxu0 %vm1667_vm0, %v6948_v54 }
 0x453   : > { %5935 = vmatprep.mubr.msk.bf16.mxu1 %vm1667_vm0, %v6948_v54 }
 0x459   : > { %4053 = vmatmul.mubr.bf16.gmra.mrb[208].mxu0 %v6949_v55 }
 0x45a   : > { %4792 = vmatmul.mubr.bf16.gmra.mrb[208].mxu1 %v6949_v55  ;;  %5897 = vmatprep.mubr.msk.bf16.mxu0 %vm1667_vm0, %v6950_v56 }
 0x45b   : > { %5936 = vmatprep.mubr.msk.bf16.mxu1 %vm1667_vm0, %v6950_v56 }
 0x461   : > { %4063 = vmatmul.mubr.bf16.gmra.mrb[212].mxu0 %v6951_v57 }
 0x462   : > { %4800 = vmatmul.mubr.bf16.gmra.mrb[212].mxu1 %v6951_v57  ;;  %5898 = vmatprep.mubr.msk.bf16.mxu0 %vm1667_vm0, %v6952_v58 }
 0x463   : > { %5937 = vmatprep.mubr.msk.bf16.mxu1 %vm1667_vm0, %v6952_v58 }
 0x469   : > { %4073 = vmatmul.mubr.bf16.gmra.mrb[216].mxu0 %v6953_v59 }
 0x46a   : > { %4808 = vmatmul.mubr.bf16.gmra.mrb[216].mxu1 %v6953_v59  ;;  %5899 = vmatprep.mubr.msk.bf16.mxu0 %vm1667_vm0, %v6954_v60  ;;  %v6983_v59 = vld [vmem:[%s7350_s13 + $0x3c8] ss:$16 sps:$4 sm:$0xff]  }
 0x46b   : > { %5938 = vmatprep.mubr.msk.bf16.mxu1 %vm1667_vm0, %v6954_v60  ;;  %v6984_v60 = vld [vmem:[%s7350_s13 + $0x3ec] ss:$16 sps:$4 sm:$0xff]  }
 0x471   : > { %4083 = vmatmul.mubr.bf16.gmra.mrb[220].mxu0 %v6955_v61 }
 0x472   : > { %4816 = vmatmul.mubr.bf16.gmra.mrb[220].mxu1 %v6955_v61  ;;  %5900 = vmatprep.mubr.msk.bf16.mxu0 %vm1667_vm0, %v6956_v62 }
 0x473   : > { %5939 = vmatprep.mubr.msk.bf16.mxu1 %vm1667_vm0, %v6956_v62 }
 0x479   : > { %4093 = vmatmul.mubr.bf16.gmra.mrb[224].mxu0 %v6957_v63 }
 0x47a   : > { %4824 = vmatmul.mubr.bf16.gmra.mrb[224].mxu1 %v6957_v63  ;;  %5901 = vmatprep.mubr.msk.bf16.mxu0 %vm1667_vm0, %v6958_v0 }
 0x47b   : > { %5940 = vmatprep.mubr.msk.bf16.mxu1 %vm1667_vm0, %v6958_v0 }
 0x481   : > { %4103 = vmatmul.mubr.bf16.gmra.mrb[228].mxu0 %v6959_v1 }
 0x482   : > { %4832 = vmatmul.mubr.bf16.gmra.mrb[228].mxu1 %v6959_v1  ;;  %5902 = vmatprep.mubr.msk.bf16.mxu0 %vm1667_vm0, %v6960_v2 }
 0x483   : > { %5941 = vmatprep.mubr.msk.bf16.mxu1 %vm1667_vm0, %v6960_v2 }
 0x489   : > { %4113 = vmatmul.mubr.bf16.gmra.mrb[232].mxu0 %v6961_v3 }
 0x48a   : > { %4840 = vmatmul.mubr.bf16.gmra.mrb[232].mxu1 %v6961_v3  ;;  %5903 = vmatprep.mubr.msk.bf16.mxu0 %vm1667_vm0, %v6962_v5 }
 0x48b   : > { %5942 = vmatprep.mubr.msk.bf16.mxu1 %vm1667_vm0, %v6962_v5 }
 0x491   : > { %4123 = vmatmul.mubr.bf16.gmra.mrb[236].mxu0 %v6963_v6 }
 0x492   : > { %4848 = vmatmul.mubr.bf16.gmra.mrb[236].mxu1 %v6963_v6  ;;  %5904 = vmatprep.mubr.msk.bf16.mxu0 %vm1667_vm0, %v6964_v7  ;;  %v6985_v6 = vld [vmem:[%s7350_s13 + $0x3e8] ss:$16 sps:$4 sm:$0xff]  }
 0x493   : > { %5943 = vmatprep.mubr.msk.bf16.mxu1 %vm1667_vm0, %v6964_v7  ;;  %v6986_v7 = vld [vmem:[%s7350_s13 + $0x40c] ss:$16 sps:$4 sm:$0xff]  }
 0x499   : > { %4133 = vmatmul.mubr.bf16.gmra.mrb[240].mxu0 %v6965_v8 }
 0x49a   : > { %4856 = vmatmul.mubr.bf16.gmra.mrb[240].mxu1 %v6965_v8  ;;  %5905 = vmatprep.mubr.msk.bf16.mxu0 %vm1667_vm0, %v6966_v9 }
 0x49b   : > { %5944 = vmatprep.mubr.msk.bf16.mxu1 %vm1667_vm0, %v6966_v9 }
 0x4a1   : > { %4143 = vmatmul.mubr.bf16.gmra.mrb[244].mxu0 %v6967_v10 }
 0x4a2   : > { %4864 = vmatmul.mubr.bf16.gmra.mrb[244].mxu1 %v6967_v10  ;;  %5906 = vmatprep.mubr.msk.bf16.mxu0 %vm1667_vm0, %v6968_v11 }
 0x4a3   : > { %5945 = vmatprep.mubr.msk.bf16.mxu1 %vm1667_vm0, %v6968_v11 }
 0x4a9   : > { %4153 = vmatmul.mubr.bf16.gmra.mrb[248].mxu0 %v6969_v12 }
 0x4aa   : > { %4872 = vmatmul.mubr.bf16.gmra.mrb[248].mxu1 %v6969_v12  ;;  %5907 = vmatprep.mubr.msk.bf16.mxu0 %vm1667_vm0, %v6970_v13 }
 0x4ab   : > { %5946 = vmatprep.mubr.msk.bf16.mxu1 %vm1667_vm0, %v6970_v13 }
 0x4b1   : > { %4163 = vmatmul.mubr.bf16.gmra.mrb[252].mxu0 %v6971_v14 }
 0x4b2   : > { %4880 = vmatmul.mubr.bf16.gmra.mrb[252].mxu1 %v6971_v14  ;;  %5908 = vmatprep.mubr.msk.bf16.mxu0 %vm1667_vm0, %v6972_v15 }
 0x4b3   : > { %5947 = vmatprep.mubr.msk.bf16.mxu1 %vm1667_vm0, %v6972_v15 }
 0x4b9   : > { %4173 = vmatmul.mubr.bf16.gmra.mrb[0].mxu0 %v6973_v16 }
 0x4ba   : > { %4888 = vmatmul.mubr.bf16.gmra.mrb[0].mxu1 %v6973_v16  ;;  %5909 = vmatprep.mubr.msk.bf16.mxu0 %vm1667_vm0, %v6974_v17  ;;  %v6987_v16 = vld [vmem:[%s7350_s13 + $0x408] ss:$16 sps:$4 sm:$0xff]  }
 0x4bb   : > { %5948 = vmatprep.mubr.msk.bf16.mxu1 %vm1667_vm0, %v6974_v17  ;;  %v6988_v17 = vld [vmem:[%s7350_s13 + $0x42c] ss:$16 sps:$4 sm:$0xff]  }
 0x4c1   : > { %4183 = vmatmul.mubr.bf16.gmra.mrb[4].mxu0 %v6975_v18 }
 0x4c2   : > { %4896 = vmatmul.mubr.bf16.gmra.mrb[4].mxu1 %v6975_v18  ;;  %5910 = vmatprep.mubr.msk.bf16.mxu0 %vm1667_vm0, %v6976_v19 }
 0x4c3   : > { %5949 = vmatprep.mubr.msk.bf16.mxu1 %vm1667_vm0, %v6976_v19 }
 0x4c4   : > { %v3924_v20 = vpop.f32.mrb[156].mxu0 }
 0x4c5   : > { %5003 = vst [vmem:[%s8251_s8 + $0x20] sm:$0xff] %v3924_v20  ;;  %v4689_v21 = vpop.f32.mrb[156].mxu1  ;;  %v3926_v22 = vpop.f32.mrb[157].mxu0 }
 0x4c6   : > { %5006 = vst.msk [vmem:[%s8251_s8 + $0x30] sm:$0xff] %vm5005_vm1, %v4689_v21  ;;  %5004 = vst [vmem:[%s8251_s8 + $0x28] sm:$0xff] %v3926_v22  ;;  %v4691_v23 = vpop.f32.mrb[157].mxu1  ;;  %v3928_v24 = vpop.f32.mrb[158].mxu0 }
 0x4c7   : > { %5011 = vst [vmem:[%s8251_s8 + $0x58] sm:$0xff] %v3928_v24  ;;  %v4692_v25 = vpop.f32.mrb[158].mxu1  ;;  %v3930_v26 = vpop.f32.mrb[159].mxu0 }
 0x4c8   : > { %5013 = vst.msk [vmem:[%s8251_s8 + $0x68] sm:$0xff] %vm5005_vm1, %v4692_v25  ;;  %5012 = vst [vmem:[%s8251_s8 + $0x60] sm:$0xff] %v3930_v26  ;;  %v4694_v27 = vpop.f32.mrb[159].mxu1  ;;  %v6989_v26 = vld [vmem:[%s7350_s13 + $0x428] ss:$16 sps:$4 sm:$0xff]  }
 0x4c9   : > { %4193 = vmatmul.mubr.bf16.gmra.mrb[8].mxu0 %v6977_v4  ;;  %v6990_v27 = vld [vmem:[%s7350_s13 + $0x44c] ss:$16 sps:$4 sm:$0xff]  }
 0x4ca   : > { %4904 = vmatmul.mubr.bf16.gmra.mrb[8].mxu1 %v6977_v4  ;;  %5911 = vmatprep.mubr.msk.bf16.mxu0 %vm1667_vm0, %v6978_v28 }
 0x4cb   : > { %5950 = vmatprep.mubr.msk.bf16.mxu1 %vm1667_vm0, %v6978_v28 }
 0x4cc   : > { %v3934_v33 = vpop.f32.mrb[160].mxu0 }
 0x4cd   : > { %5018 = vst [vmem:[%s8251_s8 + $0x90] sm:$0xff] %v3934_v33  ;;  %v4697_v34 = vpop.f32.mrb[160].mxu1  ;;  %v3936_v29 = vpop.f32.mrb[161].mxu0 }
 0x4ce   : > { %5020 = vst.msk [vmem:[%s8251_s8 + $0xa0] sm:$0xff] %vm5005_vm1, %v4697_v34  ;;  %5019 = vst [vmem:[%s8251_s8 + $0x98] sm:$0xff] %v3936_v29  ;;  %v4699_v30 = vpop.f32.mrb[161].mxu1  ;;  %v3938_v31 = vpop.f32.mrb[162].mxu0 }
 0x4cf   : > { %5025 = vst [vmem:[%s8251_s8 + $0xc8] sm:$0xff] %v3938_v31  ;;  %v4700_v32 = vpop.f32.mrb[162].mxu1  ;;  %v3940_v35 = vpop.f32.mrb[163].mxu0 }
 0x4d0   : > { %5027 = vst.msk [vmem:[%s8251_s8 + $0xd8] sm:$0xff] %vm5005_vm1, %v4700_v32  ;;  %5026 = vst [vmem:[%s8251_s8 + $0xd0] sm:$0xff] %v3940_v35  ;;  %v4702_v37 = vpop.f32.mrb[163].mxu1  ;;  %v6991_v35 = vld [vmem:[%s7350_s13 + $0x448] ss:$16 sps:$4 sm:$0xff]  }
 0x4d1   : > { %4203 = vmatmul.mubr.bf16.gmra.mrb[12].mxu0 %v6979_v38  ;;  %v6992_v37 = vld [vmem:[%s7350_s13 + $0x46c] ss:$16 sps:$4 sm:$0xff]  }
 0x4d2   : > { %4912 = vmatmul.mubr.bf16.gmra.mrb[12].mxu1 %v6979_v38  ;;  %5912 = vmatprep.mubr.msk.bf16.mxu0 %vm1667_vm0, %v6980_v39 }
 0x4d3   : > { %5951 = vmatprep.mubr.msk.bf16.mxu1 %vm1667_vm0, %v6980_v39 }
 0x4d4   : > { %v3944_v40 = vpop.f32.mrb[164].mxu0 }
 0x4d5   : > { %5032 = vst [vmem:[%s8251_s8 + $0x100] sm:$0xff] %v3944_v40  ;;  %v4705_v41 = vpop.f32.mrb[164].mxu1  ;;  %v3946_v42 = vpop.f32.mrb[165].mxu0 }
 0x4d6   : > { %5034 = vst.msk [vmem:[%s8251_s8 + $0x110] sm:$0xff] %vm5005_vm1, %v4705_v41  ;;  %5033 = vst [vmem:[%s8251_s8 + $0x108] sm:$0xff] %v3946_v42  ;;  %v4707_v44 = vpop.f32.mrb[165].mxu1  ;;  %v3948_v45 = vpop.f32.mrb[166].mxu0 }
 0x4d7   : > { %5039 = vst [vmem:[%s8251_s8 + $0x138] sm:$0xff] %v3948_v45  ;;  %v4708_v46 = vpop.f32.mrb[166].mxu1  ;;  %v3950_v47 = vpop.f32.mrb[167].mxu0 }
 0x4d8   : > { %5041 = vst.msk [vmem:[%s8251_s8 + $0x148] sm:$0xff] %vm5005_vm1, %v4708_v46  ;;  %5040 = vst [vmem:[%s8251_s8 + $0x140] sm:$0xff] %v3950_v47  ;;  %v4710_v48 = vpop.f32.mrb[167].mxu1  ;;  %v6993_v47 = vld [vmem:[%s7350_s13 + $0x468] ss:$16 sps:$4 sm:$0xff]  }
 0x4d9   : > { %4213 = vmatmul.mubr.bf16.gmra.mrb[16].mxu0 %v6981_v49  ;;  %v6994_v48 = vld [vmem:[%s7350_s13 + $0x48c] ss:$16 sps:$4 sm:$0xff]  }
 0x4da   : > { %4920 = vmatmul.mubr.bf16.gmra.mrb[16].mxu1 %v6981_v49  ;;  %5913 = vmatprep.mubr.msk.bf16.mxu0 %vm1667_vm0, %v6982_v50 }
 0x4db   : > { %5952 = vmatprep.mubr.msk.bf16.mxu1 %vm1667_vm0, %v6982_v50 }
 0x4dc   : > { %v3954_v51 = vpop.f32.mrb[168].mxu0 }
 0x4dd   : > { %5046 = vst [vmem:[%s8251_s8 + $0x170] sm:$0xff] %v3954_v51  ;;  %v4713_v52 = vpop.f32.mrb[168].mxu1  ;;  %v3956_v53 = vpop.f32.mrb[169].mxu0 }
 0x4de   : > { %5048 = vst.msk [vmem:[%s8251_s8 + $0x180] sm:$0xff] %vm5005_vm1, %v4713_v52  ;;  %5047 = vst [vmem:[%s8251_s8 + $0x178] sm:$0xff] %v3956_v53  ;;  %v4715_v54 = vpop.f32.mrb[169].mxu1  ;;  %v3958_v55 = vpop.f32.mrb[170].mxu0 }
 0x4df   : > { %5053 = vst [vmem:[%s8251_s8 + $0x1a8] sm:$0xff] %v3958_v55  ;;  %v4716_v56 = vpop.f32.mrb[170].mxu1  ;;  %v3960_v57 = vpop.f32.mrb[171].mxu0 }
 0x4e0   : > { %5055 = vst.msk [vmem:[%s8251_s8 + $0x1b8] sm:$0xff] %vm5005_vm1, %v4716_v56  ;;  %5054 = vst [vmem:[%s8251_s8 + $0x1b0] sm:$0xff] %v3960_v57  ;;  %v4718_v58 = vpop.f32.mrb[171].mxu1  ;;  %v6995_v57 = vld [vmem:[%s7350_s13 + $0x488] ss:$16 sps:$4 sm:$0xff]  }
 0x4e1   : > { %4223 = vmatmul.mubr.bf16.gmra.mrb[20].mxu0 %v6983_v59  ;;  %v6996_v58 = vld [vmem:[%s7350_s13 + $0x4ac] ss:$16 sps:$4 sm:$0xff]  }
 0x4e2   : > { %4928 = vmatmul.mubr.bf16.gmra.mrb[20].mxu1 %v6983_v59  ;;  %5914 = vmatprep.mubr.msk.bf16.mxu0 %vm1667_vm0, %v6984_v60 }
 0x4e3   : > { %5953 = vmatprep.mubr.msk.bf16.mxu1 %vm1667_vm0, %v6984_v60 }
 0x4e4   : > { %v3964_v61 = vpop.f32.mrb[172].mxu0 }
 0x4e5   : > { %5060 = vst [vmem:[%s8251_s8 + $0x1e0] sm:$0xff] %v3964_v61  ;;  %v4721_v62 = vpop.f32.mrb[172].mxu1  ;;  %v3966_v63 = vpop.f32.mrb[173].mxu0 }
 0x4e6   : > { %5062 = vst.msk [vmem:[%s8251_s8 + $0x1f0] sm:$0xff] %vm5005_vm1, %v4721_v62  ;;  %5061 = vst [vmem:[%s8251_s8 + $0x1e8] sm:$0xff] %v3966_v63  ;;  %v4723_v0 = vpop.f32.mrb[173].mxu1  ;;  %v3968_v1 = vpop.f32.mrb[174].mxu0 }
 0x4e7   : > { %5067 = vst [vmem:[%s8251_s8 + $0x218] sm:$0xff] %v3968_v1  ;;  %v4724_v2 = vpop.f32.mrb[174].mxu1  ;;  %v3970_v3 = vpop.f32.mrb[175].mxu0 }
 0x4e8   : > { %5069 = vst.msk [vmem:[%s8251_s8 + $0x228] sm:$0xff] %vm5005_vm1, %v4724_v2  ;;  %5068 = vst [vmem:[%s8251_s8 + $0x220] sm:$0xff] %v3970_v3  ;;  %v4726_v5 = vpop.f32.mrb[175].mxu1  ;;  %v6997_v3 = vld [vmem:[%s7350_s13 + $0x4a8] ss:$16 sps:$4 sm:$0xff]  }
 0x4e9   : > { %4233 = vmatmul.mubr.bf16.gmra.mrb[24].mxu0 %v6985_v6 }
 0x4ea   : > { %4936 = vmatmul.mubr.bf16.gmra.mrb[24].mxu1 %v6985_v6  ;;  %5915 = vmatprep.mubr.msk.bf16.mxu0 %vm1667_vm0, %v6986_v7 }
 0x4eb   : > { %5954 = vmatprep.mubr.msk.bf16.mxu1 %vm1667_vm0, %v6986_v7 }
 0x4ec   : > { %v3974_v8 = vpop.f32.mrb[176].mxu0 }
 0x4ed   : > { %5074 = vst [vmem:[%s8251_s8 + $0x250] sm:$0xff] %v3974_v8  ;;  %v4729_v9 = vpop.f32.mrb[176].mxu1  ;;  %v3976_v10 = vpop.f32.mrb[177].mxu0 }
 0x4ee   : > { %5076 = vst.msk [vmem:[%s8251_s8 + $0x260] sm:$0xff] %vm5005_vm1, %v4729_v9  ;;  %5075 = vst [vmem:[%s8251_s8 + $0x258] sm:$0xff] %v3976_v10  ;;  %v4731_v11 = vpop.f32.mrb[177].mxu1  ;;  %v3978_v12 = vpop.f32.mrb[178].mxu0 }
 0x4ef   : > { %5081 = vst [vmem:[%s8251_s8 + $0x288] sm:$0xff] %v3978_v12  ;;  %v4732_v13 = vpop.f32.mrb[178].mxu1  ;;  %v3980_v14 = vpop.f32.mrb[179].mxu0 }
 0x4f0   : > { %5083 = vst.msk [vmem:[%s8251_s8 + $0x298] sm:$0xff] %vm5005_vm1, %v4732_v13  ;;  %5082 = vst [vmem:[%s8251_s8 + $0x290] sm:$0xff] %v3980_v14  ;;  %v4734_v15 = vpop.f32.mrb[179].mxu1 }
 0x4f1   : > { %4243 = vmatmul.mubr.bf16.gmra.mrb[28].mxu0 %v6987_v16 }
 0x4f2   : > { %4944 = vmatmul.mubr.bf16.gmra.mrb[28].mxu1 %v6987_v16  ;;  %5916 = vmatprep.mubr.msk.bf16.mxu0 %vm1667_vm0, %v6988_v17 }
 0x4f3   : > { %5955 = vmatprep.mubr.msk.bf16.mxu1 %vm1667_vm0, %v6988_v17 }
 0x4f4   : > { %v3984_v18 = vpop.f32.mrb[180].mxu0 }
 0x4f5   : > { %5088 = vst [vmem:[%s8251_s8 + $0x2c0] sm:$0xff] %v3984_v18  ;;  %v4737_v19 = vpop.f32.mrb[180].mxu1  ;;  %v3986_v20 = vpop.f32.mrb[181].mxu0 }
 0x4f6   : > { %5090 = vst.msk [vmem:[%s8251_s8 + $0x2d0] sm:$0xff] %vm5005_vm1, %v4737_v19  ;;  %5089 = vst [vmem:[%s8251_s8 + $0x2c8] sm:$0xff] %v3986_v20  ;;  %v4739_v21 = vpop.f32.mrb[181].mxu1  ;;  %v3988_v22 = vpop.f32.mrb[182].mxu0 }
 0x4f7   : > { %5095 = vst [vmem:[%s8251_s8 + $0x2f8] sm:$0xff] %v3988_v22  ;;  %v4740_v23 = vpop.f32.mrb[182].mxu1  ;;  %v3990_v24 = vpop.f32.mrb[183].mxu0 }
 0x4f8   : > { %5097 = vst.msk [vmem:[%s8251_s8 + $0x308] sm:$0xff] %vm5005_vm1, %v4740_v23  ;;  %5096 = vst [vmem:[%s8251_s8 + $0x300] sm:$0xff] %v3990_v24  ;;  %v4742_v25 = vpop.f32.mrb[183].mxu1 }
 0x4f9   : > { %4253 = vmatmul.mubr.bf16.gmra.mrb[32].mxu0 %v6989_v26 }
 0x4fa   : > { %4952 = vmatmul.mubr.bf16.gmra.mrb[32].mxu1 %v6989_v26  ;;  %5917 = vmatprep.mubr.msk.bf16.mxu0 %vm1667_vm0, %v6990_v27 }
 0x4fb   : > { %5956 = vmatprep.mubr.msk.bf16.mxu1 %vm1667_vm0, %v6990_v27 }
 0x4fc   : > { %v3994_v4 = vpop.f32.mrb[184].mxu0 }
 0x4fd   : > { %5102 = vst [vmem:[%s8251_s8 + $0x330] sm:$0xff] %v3994_v4  ;;  %v4745_v28 = vpop.f32.mrb[184].mxu1  ;;  %v3996_v33 = vpop.f32.mrb[185].mxu0 }
 0x4fe   : > { %5104 = vst.msk [vmem:[%s8251_s8 + $0x340] sm:$0xff] %vm5005_vm1, %v4745_v28  ;;  %5103 = vst [vmem:[%s8251_s8 + $0x338] sm:$0xff] %v3996_v33  ;;  %v4747_v34 = vpop.f32.mrb[185].mxu1  ;;  %v3998_v29 = vpop.f32.mrb[186].mxu0 }
 0x4ff   : > { %5109 = vst [vmem:[%s8251_s8 + $0x368] sm:$0xff] %v3998_v29  ;;  %v4748_v30 = vpop.f32.mrb[186].mxu1  ;;  %v4000_v31 = vpop.f32.mrb[187].mxu0 }
 0x500   : > { %5111 = vst.msk [vmem:[%s8251_s8 + $0x378] sm:$0xff] %vm5005_vm1, %v4748_v30  ;;  %5110 = vst [vmem:[%s8251_s8 + $0x370] sm:$0xff] %v4000_v31  ;;  %v4750_v32 = vpop.f32.mrb[187].mxu1 }
 0x501   : > { %4263 = vmatmul.mubr.bf16.gmra.mrb[36].mxu0 %v6991_v35 }
 0x502   : > { %4960 = vmatmul.mubr.bf16.gmra.mrb[36].mxu1 %v6991_v35  ;;  %5918 = vmatprep.mubr.msk.bf16.mxu0 %vm1667_vm0, %v6992_v37 }
 0x503   : > { %5957 = vmatprep.mubr.msk.bf16.mxu1 %vm1667_vm0, %v6992_v37 }
 0x504   : > { %v4004_v38 = vpop.f32.mrb[188].mxu0 }
 0x505   : > { %5116 = vst [vmem:[%s8251_s8 + $0x3a0] sm:$0xff] %v4004_v38  ;;  %v4753_v39 = vpop.f32.mrb[188].mxu1  ;;  %v4006_v40 = vpop.f32.mrb[189].mxu0 }
 0x506   : > { %5118 = vst.msk [vmem:[%s8251_s8 + $0x3b0] sm:$0xff] %vm5005_vm1, %v4753_v39  ;;  %5117 = vst [vmem:[%s8251_s8 + $0x3a8] sm:$0xff] %v4006_v40  ;;  %v4755_v41 = vpop.f32.mrb[189].mxu1  ;;  %v4008_v42 = vpop.f32.mrb[190].mxu0 }
 0x507   : > { %5123 = vst [vmem:[%s8251_s8 + $0x3d8] sm:$0xff] %v4008_v42  ;;  %v4756_v44 = vpop.f32.mrb[190].mxu1  ;;  %v4010_v45 = vpop.f32.mrb[191].mxu0 }
 0x508   : > { %5125 = vst.msk [vmem:[%s8251_s8 + $0x3e8] sm:$0xff] %vm5005_vm1, %v4756_v44  ;;  %5124 = vst [vmem:[%s8251_s8 + $0x3e0] sm:$0xff] %v4010_v45  ;;  %v4758_v46 = vpop.f32.mrb[191].mxu1 }
 0x509   : > { %4273 = vmatmul.mubr.bf16.gmra.mrb[40].mxu0 %v6993_v47 }
 0x50a   : > { %4968 = vmatmul.mubr.bf16.gmra.mrb[40].mxu1 %v6993_v47  ;;  %5919 = vmatprep.mubr.msk.bf16.mxu0 %vm1667_vm0, %v6994_v48 }
 0x50b   : > { %5958 = vmatprep.mubr.msk.bf16.mxu1 %vm1667_vm0, %v6994_v48 }
 0x50c   : > { %v4014_v49 = vpop.f32.mrb[192].mxu0 }
 0x50d   : > { %5130 = vst [vmem:[%s8251_s8 + $0x410] sm:$0xff] %v4014_v49  ;;  %v4761_v50 = vpop.f32.mrb[192].mxu1  ;;  %v4016_v51 = vpop.f32.mrb[193].mxu0 }
 0x50e   : > { %5132 = vst.msk [vmem:[%s8251_s8 + $0x420] sm:$0xff] %vm5005_vm1, %v4761_v50  ;;  %5131 = vst [vmem:[%s8251_s8 + $0x418] sm:$0xff] %v4016_v51  ;;  %v4763_v52 = vpop.f32.mrb[193].mxu1  ;;  %v4018_v53 = vpop.f32.mrb[194].mxu0 }
 0x50f   : > { %5137 = vst [vmem:[%s8251_s8 + $0x448] sm:$0xff] %v4018_v53  ;;  %v4764_v54 = vpop.f32.mrb[194].mxu1  ;;  %v4020_v55 = vpop.f32.mrb[195].mxu0 }
 0x510   : > { %5139 = vst.msk [vmem:[%s8251_s8 + $0x458] sm:$0xff] %vm5005_vm1, %v4764_v54  ;;  %5138 = vst [vmem:[%s8251_s8 + $0x450] sm:$0xff] %v4020_v55  ;;  %v4766_v56 = vpop.f32.mrb[195].mxu1 }
 0x511   : > { %4283 = vmatmul.mubr.bf16.gmra.mrb[44].mxu0 %v6995_v57 }
 0x512   : > { %4976 = vmatmul.mubr.bf16.gmra.mrb[44].mxu1 %v6995_v57  ;;  %5920 = vmatprep.mubr.msk.bf16.mxu0 %vm1667_vm0, %v6996_v58 }
 0x513   : > { %5959 = vmatprep.mubr.msk.bf16.mxu1 %vm1667_vm0, %v6996_v58 }
 0x514   : > { %v4024_v59 = vpop.f32.mrb[196].mxu0 }
 0x515   : > { %5144 = vst [vmem:[%s8251_s8 + $0x480] sm:$0xff] %v4024_v59  ;;  %v4769_v60 = vpop.f32.mrb[196].mxu1  ;;  %v4026_v61 = vpop.f32.mrb[197].mxu0 }
 0x516   : > { %5146 = vst.msk [vmem:[%s8251_s8 + $0x490] sm:$0xff] %vm5005_vm1, %v4769_v60  ;;  %5145 = vst [vmem:[%s8251_s8 + $0x488] sm:$0xff] %v4026_v61  ;;  %v4771_v62 = vpop.f32.mrb[197].mxu1  ;;  %v4028_v63 = vpop.f32.mrb[198].mxu0 }
 0x517   : > { %5151 = vst [vmem:[%s8251_s8 + $0x4b8] sm:$0xff] %v4028_v63  ;;  %v4772_v0 = vpop.f32.mrb[198].mxu1  ;;  %v4030_v1 = vpop.f32.mrb[199].mxu0 }
 0x518   : > { %5153 = vst.msk [vmem:[%s8251_s8 + $0x4c8] sm:$0xff] %vm5005_vm1, %v4772_v0  ;;  %5152 = vst [vmem:[%s8251_s8 + $0x4c0] sm:$0xff] %v4030_v1  ;;  %v4774_v2 = vpop.f32.mrb[199].mxu1 }
 0x519   : > { %4293 = vmatmul.mubr.bf16.gmra.mrb[48].mxu0 %v6997_v3 }
 0x51a   : > { %4984 = vmatmul.mubr.bf16.gmra.mrb[48].mxu1 %v6997_v3  ;;  %5921 = vmatprep.mubr.msk.bf16.mxu0 %vm1667_vm0, %v8380_v36 }
 0x51b   : > { %5960 = vmatprep.mubr.msk.bf16.mxu1 %vm1667_vm0, %v8380_v36 }
 0x51c   : > { %v4034_v5 = vpop.f32.mrb[200].mxu0 }
 0x51d   : > { %5158 = vst [vmem:[%s8251_s8 + $0x4f0] sm:$0xff] %v4034_v5  ;;  %v4777_v6 = vpop.f32.mrb[200].mxu1  ;;  %v4036_v7 = vpop.f32.mrb[201].mxu0 }
 0x51e   : > { %5160 = vst.msk [vmem:[%s8251_s8 + $0x500] sm:$0xff] %vm5005_vm1, %v4777_v6  ;;  %5159 = vst [vmem:[%s8251_s8 + $0x4f8] sm:$0xff] %v4036_v7  ;;  %v4779_v8 = vpop.f32.mrb[201].mxu1  ;;  %v4038_v9 = vpop.f32.mrb[202].mxu0 }
 0x51f   : > { %5165 = vst [vmem:[%s8251_s8 + $0x528] sm:$0xff] %v4038_v9  ;;  %v4780_v10 = vpop.f32.mrb[202].mxu1  ;;  %v4040_v11 = vpop.f32.mrb[203].mxu0 }
 0x520   : > { %5167 = vst.msk [vmem:[%s8251_s8 + $0x538] sm:$0xff] %vm5005_vm1, %v4780_v10  ;;  %5166 = vst [vmem:[%s8251_s8 + $0x530] sm:$0xff] %v4040_v11  ;;  %v4782_v36 = vpop.f32.mrb[203].mxu1 }
 0x521   : > { %4303 = vmatmul.mubr.bf16.gmra.mrb[52].mxu0 %v8392_v43 }
 0x522   : > { %4992 = vmatmul.mubr.bf16.gmra.mrb[52].mxu1 %v8392_v43 }
 0x524   : > { %v4044_v12 = vpop.f32.mrb[204].mxu0 }
 0x525   : > { %5172 = vst [vmem:[%s8251_s8 + $0x560] sm:$0xff] %v4044_v12  ;;  %v4785_v13 = vpop.f32.mrb[204].mxu1  ;;  %v4046_v14 = vpop.f32.mrb[205].mxu0 }
 0x526   : > { %5174 = vst.msk [vmem:[%s8251_s8 + $0x570] sm:$0xff] %vm5005_vm1, %v4785_v13  ;;  %5173 = vst [vmem:[%s8251_s8 + $0x568] sm:$0xff] %v4046_v14  ;;  %v4787_v15 = vpop.f32.mrb[205].mxu1  ;;  %v4048_v16 = vpop.f32.mrb[206].mxu0 }
 0x527   : > { %5179 = vst [vmem:[%s8251_s8 + $0x598] sm:$0xff] %v4048_v16  ;;  %v4788_v17 = vpop.f32.mrb[206].mxu1  ;;  %v4050_v18 = vpop.f32.mrb[207].mxu0 }
 0x528   : > { %5181 = vst.msk [vmem:[%s8251_s8 + $0x5a8] sm:$0xff] %vm5005_vm1, %v4788_v17  ;;  %5180 = vst [vmem:[%s8251_s8 + $0x5a0] sm:$0xff] %v4050_v18  ;;  %v4790_v43 = vpop.f32.mrb[207].mxu1 }
 0x52c   : > { %v4054_v19 = vpop.f32.mrb[208].mxu0 }
 0x52d   : > { %5186 = vst [vmem:[%s8251_s8 + $0x5d0] sm:$0xff] %v4054_v19  ;;  %v4793_v20 = vpop.f32.mrb[208].mxu1  ;;  %v4056_v21 = vpop.f32.mrb[209].mxu0 }
 0x52e   : > { %5188 = vst.msk [vmem:[%s8251_s8 + $0x5e0] sm:$0xff] %vm5005_vm1, %v4793_v20  ;;  %5187 = vst [vmem:[%s8251_s8 + $0x5d8] sm:$0xff] %v4056_v21  ;;  %v4795_v22 = vpop.f32.mrb[209].mxu1  ;;  %v4058_v23 = vpop.f32.mrb[210].mxu0 }
 0x52f   : > { %5193 = vst [vmem:[%s8251_s8 + $0x608] sm:$0xff] %v4058_v23  ;;  %v4796_v24 = vpop.f32.mrb[210].mxu1  ;;  %v4060_v25 = vpop.f32.mrb[211].mxu0 }
 0x530   : > { %5195 = vst.msk [vmem:[%s8251_s8 + $0x618] sm:$0xff] %vm5005_vm1, %v4796_v24  ;;  %5194 = vst [vmem:[%s8251_s8 + $0x610] sm:$0xff] %v4060_v25  ;;  %v4798_v26 = vpop.f32.mrb[211].mxu1 }
 0x534   : > { %v4064_v27 = vpop.f32.mrb[212].mxu0 }
 0x535   : > { %5200 = vst [vmem:[%s8251_s8 + $0x640] sm:$0xff] %v4064_v27  ;;  %v4801_v4 = vpop.f32.mrb[212].mxu1  ;;  %v4066_v28 = vpop.f32.mrb[213].mxu0 }
 0x536   : > { %5202 = vst.msk [vmem:[%s8251_s8 + $0x650] sm:$0xff] %vm5005_vm1, %v4801_v4  ;;  %5201 = vst [vmem:[%s8251_s8 + $0x648] sm:$0xff] %v4066_v28  ;;  %v4803_v33 = vpop.f32.mrb[213].mxu1  ;;  %v4068_v34 = vpop.f32.mrb[214].mxu0 }
 0x537   : > { %5207 = vst [vmem:[%s8251_s8 + $0x678] sm:$0xff] %v4068_v34  ;;  %v4804_v29 = vpop.f32.mrb[214].mxu1  ;;  %v4070_v30 = vpop.f32.mrb[215].mxu0 }
 0x538   : > { %5209 = vst.msk [vmem:[%s8251_s8 + $0x688] sm:$0xff] %vm5005_vm1, %v4804_v29  ;;  %5208 = vst [vmem:[%s8251_s8 + $0x680] sm:$0xff] %v4070_v30  ;;  %v4806_v31 = vpop.f32.mrb[215].mxu1 }
 0x53c   : > { %v4074_v32 = vpop.f32.mrb[216].mxu0 }
 0x53d   : > { %5214 = vst [vmem:[%s8251_s8 + $0x6b0] sm:$0xff] %v4074_v32  ;;  %v4809_v35 = vpop.f32.mrb[216].mxu1  ;;  %v4076_v37 = vpop.f32.mrb[217].mxu0 }
 0x53e   : > { %5216 = vst.msk [vmem:[%s8251_s8 + $0x6c0] sm:$0xff] %vm5005_vm1, %v4809_v35  ;;  %5215 = vst [vmem:[%s8251_s8 + $0x6b8] sm:$0xff] %v4076_v37  ;;  %v4811_v38 = vpop.f32.mrb[217].mxu1  ;;  %v4078_v39 = vpop.f32.mrb[218].mxu0 }
 0x53f   : > { %5221 = vst [vmem:[%s8251_s8 + $0x6e8] sm:$0xff] %v4078_v39  ;;  %v4812_v40 = vpop.f32.mrb[218].mxu1  ;;  %v4080_v41 = vpop.f32.mrb[219].mxu0 }
 0x540   : > { %5223 = vst.msk [vmem:[%s8251_s8 + $0x6f8] sm:$0xff] %vm5005_vm1, %v4812_v40  ;;  %5222 = vst [vmem:[%s8251_s8 + $0x6f0] sm:$0xff] %v4080_v41  ;;  %v4814_v42 = vpop.f32.mrb[219].mxu1 }
 0x544   : > { %v4084_v44 = vpop.f32.mrb[220].mxu0 }
 0x545   : > { %5228 = vst [vmem:[%s8251_s8 + $0x720] sm:$0xff] %v4084_v44  ;;  %v4817_v45 = vpop.f32.mrb[220].mxu1  ;;  %v4086_v46 = vpop.f32.mrb[221].mxu0 }
 0x546   : > { %5230 = vst.msk [vmem:[%s8251_s8 + $0x730] sm:$0xff] %vm5005_vm1, %v4817_v45  ;;  %5229 = vst [vmem:[%s8251_s8 + $0x728] sm:$0xff] %v4086_v46  ;;  %v4819_v47 = vpop.f32.mrb[221].mxu1  ;;  %v4088_v48 = vpop.f32.mrb[222].mxu0 }
 0x547   : > { %5235 = vst [vmem:[%s8251_s8 + $0x758] sm:$0xff] %v4088_v48  ;;  %v4820_v49 = vpop.f32.mrb[222].mxu1  ;;  %v4090_v50 = vpop.f32.mrb[223].mxu0 }
 0x548   : > { %5237 = vst.msk [vmem:[%s8251_s8 + $0x768] sm:$0xff] %vm5005_vm1, %v4820_v49  ;;  %5236 = vst [vmem:[%s8251_s8 + $0x760] sm:$0xff] %v4090_v50  ;;  %v4822_v51 = vpop.f32.mrb[223].mxu1 }
 0x54c   : > { %v4094_v52 = vpop.f32.mrb[224].mxu0 }
 0x54d   : > { %5242 = vst [vmem:[%s8251_s8 + $0x790] sm:$0xff] %v4094_v52  ;;  %v4825_v53 = vpop.f32.mrb[224].mxu1  ;;  %v4096_v54 = vpop.f32.mrb[225].mxu0 }
 0x54e   : > { %5244 = vst.msk [vmem:[%s8251_s8 + $0x7a0] sm:$0xff] %vm5005_vm1, %v4825_v53  ;;  %5243 = vst [vmem:[%s8251_s8 + $0x798] sm:$0xff] %v4096_v54  ;;  %v4827_v55 = vpop.f32.mrb[225].mxu1  ;;  %v4098_v56 = vpop.f32.mrb[226].mxu0 }
 0x54f   : > { %5249 = vst [vmem:[%s8251_s8 + $0x7c8] sm:$0xff] %v4098_v56  ;;  %v4828_v57 = vpop.f32.mrb[226].mxu1  ;;  %v4100_v58 = vpop.f32.mrb[227].mxu0 }
 0x550   : > { %5251 = vst.msk [vmem:[%s8251_s8 + $0x7d8] sm:$0xff] %vm5005_vm1, %v4828_v57  ;;  %5250 = vst [vmem:[%s8251_s8 + $0x7d0] sm:$0xff] %v4100_v58  ;;  %v4830_v59 = vpop.f32.mrb[227].mxu1 }
 0x554   : > { %v4104_v60 = vpop.f32.mrb[228].mxu0 }
 0x555   : > { %5256 = vst [vmem:[%s8251_s8 + $0x800] sm:$0xff] %v4104_v60  ;;  %v4833_v61 = vpop.f32.mrb[228].mxu1  ;;  %v4106_v62 = vpop.f32.mrb[229].mxu0 }
 0x556   : > { %5258 = vst.msk [vmem:[%s8251_s8 + $0x810] sm:$0xff] %vm5005_vm1, %v4833_v61  ;;  %5257 = vst [vmem:[%s8251_s8 + $0x808] sm:$0xff] %v4106_v62  ;;  %v4835_v63 = vpop.f32.mrb[229].mxu1  ;;  %v4108_v0 = vpop.f32.mrb[230].mxu0 }
 0x557   : > { %5263 = vst [vmem:[%s8251_s8 + $0x838] sm:$0xff] %v4108_v0  ;;  %v4836_v1 = vpop.f32.mrb[230].mxu1  ;;  %v4110_v2 = vpop.f32.mrb[231].mxu0 }
 0x558   : > { %5265 = vst.msk [vmem:[%s8251_s8 + $0x848] sm:$0xff] %vm5005_vm1, %v4836_v1  ;;  %5264 = vst [vmem:[%s8251_s8 + $0x840] sm:$0xff] %v4110_v2  ;;  %v4838_v3 = vpop.f32.mrb[231].mxu1 }
 0x55c   : > { %v4114_v5 = vpop.f32.mrb[232].mxu0 }
 0x55d   : > { %5270 = vst [vmem:[%s8251_s8 + $0x870] sm:$0xff] %v4114_v5  ;;  %v4841_v6 = vpop.f32.mrb[232].mxu1  ;;  %v4116_v7 = vpop.f32.mrb[233].mxu0 }
 0x55e   : > { %5272 = vst.msk [vmem:[%s8251_s8 + $0x880] sm:$0xff] %vm5005_vm1, %v4841_v6  ;;  %5271 = vst [vmem:[%s8251_s8 + $0x878] sm:$0xff] %v4116_v7  ;;  %v4843_v8 = vpop.f32.mrb[233].mxu1  ;;  %v4118_v9 = vpop.f32.mrb[234].mxu0 }
 0x55f   : > { %5277 = vst [vmem:[%s8251_s8 + $0x8a8] sm:$0xff] %v4118_v9  ;;  %v4844_v10 = vpop.f32.mrb[234].mxu1  ;;  %v4120_v11 = vpop.f32.mrb[235].mxu0 }
 0x560   : > { %5279 = vst.msk [vmem:[%s8251_s8 + $0x8b8] sm:$0xff] %vm5005_vm1, %v4844_v10  ;;  %5278 = vst [vmem:[%s8251_s8 + $0x8b0] sm:$0xff] %v4120_v11  ;;  %v4846_v36 = vpop.f32.mrb[235].mxu1 }
 0x564   : > { %v4124_v12 = vpop.f32.mrb[236].mxu0 }
 0x565   : > { %5284 = vst [vmem:[%s8251_s8 + $0x8e0] sm:$0xff] %v4124_v12  ;;  %v4849_v13 = vpop.f32.mrb[236].mxu1  ;;  %v4126_v14 = vpop.f32.mrb[237].mxu0 }
 0x566   : > { %5286 = vst.msk [vmem:[%s8251_s8 + $0x8f0] sm:$0xff] %vm5005_vm1, %v4849_v13  ;;  %5285 = vst [vmem:[%s8251_s8 + $0x8e8] sm:$0xff] %v4126_v14  ;;  %v4851_v15 = vpop.f32.mrb[237].mxu1  ;;  %v4128_v16 = vpop.f32.mrb[238].mxu0 }
 0x567   : > { %5291 = vst [vmem:[%s8251_s8 + $0x918] sm:$0xff] %v4128_v16  ;;  %v4852_v17 = vpop.f32.mrb[238].mxu1  ;;  %v4130_v18 = vpop.f32.mrb[239].mxu0 }
 0x568   : > { %5293 = vst.msk [vmem:[%s8251_s8 + $0x928] sm:$0xff] %vm5005_vm1, %v4852_v17  ;;  %5292 = vst [vmem:[%s8251_s8 + $0x920] sm:$0xff] %v4130_v18  ;;  %v4854_v43 = vpop.f32.mrb[239].mxu1 }
 0x56c   : > { %v4134_v19 = vpop.f32.mrb[240].mxu0 }
 0x56d   : > { %5298 = vst [vmem:[%s8251_s8 + $0x950] sm:$0xff] %v4134_v19  ;;  %v4857_v20 = vpop.f32.mrb[240].mxu1  ;;  %v4136_v21 = vpop.f32.mrb[241].mxu0 }
 0x56e   : > { %5300 = vst.msk [vmem:[%s8251_s8 + $0x960] sm:$0xff] %vm5005_vm1, %v4857_v20  ;;  %5299 = vst [vmem:[%s8251_s8 + $0x958] sm:$0xff] %v4136_v21  ;;  %v4859_v22 = vpop.f32.mrb[241].mxu1  ;;  %v4138_v23 = vpop.f32.mrb[242].mxu0 }
 0x56f   : > { %5305 = vst [vmem:[%s8251_s8 + $0x988] sm:$0xff] %v4138_v23  ;;  %v4860_v24 = vpop.f32.mrb[242].mxu1  ;;  %v4140_v25 = vpop.f32.mrb[243].mxu0 }
 0x570   : > { %5307 = vst.msk [vmem:[%s8251_s8 + $0x998] sm:$0xff] %vm5005_vm1, %v4860_v24  ;;  %5306 = vst [vmem:[%s8251_s8 + $0x990] sm:$0xff] %v4140_v25  ;;  %v4862_v26 = vpop.f32.mrb[243].mxu1 }
 0x574   : > { %v4144_v27 = vpop.f32.mrb[244].mxu0 }
 0x575   : > { %5312 = vst [vmem:[%s8251_s8 + $0x9c0] sm:$0xff] %v4144_v27  ;;  %v4865_v4 = vpop.f32.mrb[244].mxu1  ;;  %v4146_v28 = vpop.f32.mrb[245].mxu0 }
 0x576   : > { %5314 = vst.msk [vmem:[%s8251_s8 + $0x9d0] sm:$0xff] %vm5005_vm1, %v4865_v4  ;;  %5313 = vst [vmem:[%s8251_s8 + $0x9c8] sm:$0xff] %v4146_v28  ;;  %v4867_v33 = vpop.f32.mrb[245].mxu1  ;;  %v4148_v34 = vpop.f32.mrb[246].mxu0 }
 0x577   : > { %5319 = vst [vmem:[%s8251_s8 + $0x9f8] sm:$0xff] %v4148_v34  ;;  %v4868_v29 = vpop.f32.mrb[246].mxu1  ;;  %v4150_v30 = vpop.f32.mrb[247].mxu0 }
 0x578   : > { %5321 = vst.msk [vmem:[%s8251_s8 + $0xa08] sm:$0xff] %vm5005_vm1, %v4868_v29  ;;  %5320 = vst [vmem:[%s8251_s8 + $0xa00] sm:$0xff] %v4150_v30  ;;  %v4870_v31 = vpop.f32.mrb[247].mxu1 }
 0x57c   : > { %v4154_v32 = vpop.f32.mrb[248].mxu0 }
 0x57d   : > { %5326 = vst [vmem:[%s8251_s8 + $0xa30] sm:$0xff] %v4154_v32  ;;  %v4873_v35 = vpop.f32.mrb[248].mxu1  ;;  %v4156_v37 = vpop.f32.mrb[249].mxu0 }
 0x57e   : > { %5328 = vst.msk [vmem:[%s8251_s8 + $0xa40] sm:$0xff] %vm5005_vm1, %v4873_v35  ;;  %5327 = vst [vmem:[%s8251_s8 + $0xa38] sm:$0xff] %v4156_v37  ;;  %v4875_v38 = vpop.f32.mrb[249].mxu1  ;;  %v4158_v39 = vpop.f32.mrb[250].mxu0 }
 0x57f   : > { %5333 = vst [vmem:[%s8251_s8 + $0xa68] sm:$0xff] %v4158_v39  ;;  %v4876_v40 = vpop.f32.mrb[250].mxu1  ;;  %v4160_v41 = vpop.f32.mrb[251].mxu0 }
 0x580   : > { %5335 = vst.msk [vmem:[%s8251_s8 + $0xa78] sm:$0xff] %vm5005_vm1, %v4876_v40  ;;  %5334 = vst [vmem:[%s8251_s8 + $0xa70] sm:$0xff] %v4160_v41  ;;  %v4878_v42 = vpop.f32.mrb[251].mxu1 }
 0x584   : > { %v4164_v44 = vpop.f32.mrb[252].mxu0 }
 0x585   : > { %5340 = vst [vmem:[%s8251_s8 + $0xaa0] sm:$0xff] %v4164_v44  ;;  %v4881_v45 = vpop.f32.mrb[252].mxu1  ;;  %v4166_v46 = vpop.f32.mrb[253].mxu0 }
 0x586   : > { %5342 = vst.msk [vmem:[%s8251_s8 + $0xab0] sm:$0xff] %vm5005_vm1, %v4881_v45  ;;  %5341 = vst [vmem:[%s8251_s8 + $0xaa8] sm:$0xff] %v4166_v46  ;;  %v4883_v47 = vpop.f32.mrb[253].mxu1  ;;  %v4168_v48 = vpop.f32.mrb[254].mxu0 }
 0x587   : > { %5347 = vst [vmem:[%s8251_s8 + $0xad8] sm:$0xff] %v4168_v48  ;;  %v4884_v49 = vpop.f32.mrb[254].mxu1  ;;  %v4170_v50 = vpop.f32.mrb[255].mxu0 }
 0x588   : > { %5349 = vst.msk [vmem:[%s8251_s8 + $0xae8] sm:$0xff] %vm5005_vm1, %v4884_v49  ;;  %5348 = vst [vmem:[%s8251_s8 + $0xae0] sm:$0xff] %v4170_v50  ;;  %v4886_v51 = vpop.f32.mrb[255].mxu1 }
 0x58c   : > { %v4174_v52 = vpop.f32.mrb[0].mxu0 }
 0x58d   : > { %5354 = vst [vmem:[%s8251_s8 + $0xb10] sm:$0xff] %v4174_v52  ;;  %v4889_v53 = vpop.f32.mrb[0].mxu1  ;;  %v4176_v54 = vpop.f32.mrb[1].mxu0 }
 0x58e   : > { %5356 = vst.msk [vmem:[%s8251_s8 + $0xb20] sm:$0xff] %vm5005_vm1, %v4889_v53  ;;  %5355 = vst [vmem:[%s8251_s8 + $0xb18] sm:$0xff] %v4176_v54  ;;  %v4891_v55 = vpop.f32.mrb[1].mxu1  ;;  %v4178_v56 = vpop.f32.mrb[2].mxu0 }
 0x58f   : > { %5361 = vst [vmem:[%s8251_s8 + $0xb48] sm:$0xff] %v4178_v56  ;;  %v4892_v57 = vpop.f32.mrb[2].mxu1  ;;  %v4180_v58 = vpop.f32.mrb[3].mxu0 }
 0x590   : > { %5363 = vst.msk [vmem:[%s8251_s8 + $0xb58] sm:$0xff] %vm5005_vm1, %v4892_v57  ;;  %5362 = vst [vmem:[%s8251_s8 + $0xb50] sm:$0xff] %v4180_v58  ;;  %v4894_v59 = vpop.f32.mrb[3].mxu1 }
 0x594   : > { %v4184_v60 = vpop.f32.mrb[4].mxu0 }
 0x595   : > { %5368 = vst [vmem:[%s8251_s8 + $0xb80] sm:$0xff] %v4184_v60  ;;  %v4897_v61 = vpop.f32.mrb[4].mxu1  ;;  %v4186_v62 = vpop.f32.mrb[5].mxu0 }
 0x596   : > { %5370 = vst.msk [vmem:[%s8251_s8 + $0xb90] sm:$0xff] %vm5005_vm1, %v4897_v61  ;;  %5369 = vst [vmem:[%s8251_s8 + $0xb88] sm:$0xff] %v4186_v62  ;;  %v4899_v63 = vpop.f32.mrb[5].mxu1  ;;  %v4188_v0 = vpop.f32.mrb[6].mxu0 }
 0x597   : > { %5375 = vst [vmem:[%s8251_s8 + $0xbb8] sm:$0xff] %v4188_v0  ;;  %v4900_v1 = vpop.f32.mrb[6].mxu1  ;;  %v4190_v2 = vpop.f32.mrb[7].mxu0 }
 0x598   : > { %5377 = vst.msk [vmem:[%s8251_s8 + $0xbc8] sm:$0xff] %vm5005_vm1, %v4900_v1  ;;  %5376 = vst [vmem:[%s8251_s8 + $0xbc0] sm:$0xff] %v4190_v2  ;;  %v4902_v3 = vpop.f32.mrb[7].mxu1 }
 0x59c   : > { %v4194_v5 = vpop.f32.mrb[8].mxu0 }
 0x59d   : > { %5382 = vst [vmem:[%s8251_s8 + $0xbf0] sm:$0xff] %v4194_v5  ;;  %v4905_v6 = vpop.f32.mrb[8].mxu1  ;;  %v4196_v7 = vpop.f32.mrb[9].mxu0 }
 0x59e   : > { %5384 = vst.msk [vmem:[%s8251_s8 + $0xc00] sm:$0xff] %vm5005_vm1, %v4905_v6  ;;  %5383 = vst [vmem:[%s8251_s8 + $0xbf8] sm:$0xff] %v4196_v7  ;;  %v4907_v8 = vpop.f32.mrb[9].mxu1  ;;  %v4198_v9 = vpop.f32.mrb[10].mxu0 }
 0x59f   : > { %5389 = vst [vmem:[%s8251_s8 + $0xc28] sm:$0xff] %v4198_v9  ;;  %v4908_v10 = vpop.f32.mrb[10].mxu1  ;;  %v4200_v11 = vpop.f32.mrb[11].mxu0 }
 0x5a0   : > { %5391 = vst.msk [vmem:[%s8251_s8 + $0xc38] sm:$0xff] %vm5005_vm1, %v4908_v10  ;;  %5390 = vst [vmem:[%s8251_s8 + $0xc30] sm:$0xff] %v4200_v11  ;;  %v4910_v36 = vpop.f32.mrb[11].mxu1 }
 0x5a4   : > { %v4204_v12 = vpop.f32.mrb[12].mxu0 }
 0x5a5   : > { %5396 = vst [vmem:[%s8251_s8 + $0xc60] sm:$0xff] %v4204_v12  ;;  %v4913_v13 = vpop.f32.mrb[12].mxu1  ;;  %v4206_v14 = vpop.f32.mrb[13].mxu0 }
 0x5a6   : > { %5398 = vst.msk [vmem:[%s8251_s8 + $0xc70] sm:$0xff] %vm5005_vm1, %v4913_v13  ;;  %5397 = vst [vmem:[%s8251_s8 + $0xc68] sm:$0xff] %v4206_v14  ;;  %v4915_v15 = vpop.f32.mrb[13].mxu1  ;;  %v4208_v16 = vpop.f32.mrb[14].mxu0 }
 0x5a7   : > { %5403 = vst [vmem:[%s8251_s8 + $0xc98] sm:$0xff] %v4208_v16  ;;  %v4916_v17 = vpop.f32.mrb[14].mxu1  ;;  %v4210_v18 = vpop.f32.mrb[15].mxu0 }
 0x5a8   : > { %5405 = vst.msk [vmem:[%s8251_s8 + $0xca8] sm:$0xff] %vm5005_vm1, %v4916_v17  ;;  %5404 = vst [vmem:[%s8251_s8 + $0xca0] sm:$0xff] %v4210_v18  ;;  %v4918_v43 = vpop.f32.mrb[15].mxu1 }
 0x5ac   : > { %v4214_v19 = vpop.f32.mrb[16].mxu0 }
 0x5ad   : > { %5410 = vst [vmem:[%s8251_s8 + $0xcd0] sm:$0xff] %v4214_v19  ;;  %v4921_v20 = vpop.f32.mrb[16].mxu1  ;;  %v4216_v21 = vpop.f32.mrb[17].mxu0 }
 0x5ae   : > { %5412 = vst.msk [vmem:[%s8251_s8 + $0xce0] sm:$0xff] %vm5005_vm1, %v4921_v20  ;;  %5411 = vst [vmem:[%s8251_s8 + $0xcd8] sm:$0xff] %v4216_v21  ;;  %v4923_v22 = vpop.f32.mrb[17].mxu1  ;;  %v4218_v23 = vpop.f32.mrb[18].mxu0 }
 0x5af   : > { %5417 = vst [vmem:[%s8251_s8 + $0xd08] sm:$0xff] %v4218_v23  ;;  %v4924_v24 = vpop.f32.mrb[18].mxu1  ;;  %v4220_v25 = vpop.f32.mrb[19].mxu0 }
 0x5b0   : > { %5419 = vst.msk [vmem:[%s8251_s8 + $0xd18] sm:$0xff] %vm5005_vm1, %v4924_v24  ;;  %5418 = vst [vmem:[%s8251_s8 + $0xd10] sm:$0xff] %v4220_v25  ;;  %v4926_v26 = vpop.f32.mrb[19].mxu1 }
 0x5b4   : > { %v4224_v27 = vpop.f32.mrb[20].mxu0 }
 0x5b5   : > { %5424 = vst [vmem:[%s8251_s8 + $0xd40] sm:$0xff] %v4224_v27  ;;  %v4929_v4 = vpop.f32.mrb[20].mxu1  ;;  %v4226_v28 = vpop.f32.mrb[21].mxu0 }
 0x5b6   : > { %5426 = vst.msk [vmem:[%s8251_s8 + $0xd50] sm:$0xff] %vm5005_vm1, %v4929_v4  ;;  %5425 = vst [vmem:[%s8251_s8 + $0xd48] sm:$0xff] %v4226_v28  ;;  %v4931_v33 = vpop.f32.mrb[21].mxu1  ;;  %v4228_v34 = vpop.f32.mrb[22].mxu0 }
 0x5b7   : > { %5431 = vst [vmem:[%s8251_s8 + $0xd78] sm:$0xff] %v4228_v34  ;;  %v4932_v29 = vpop.f32.mrb[22].mxu1  ;;  %v4230_v30 = vpop.f32.mrb[23].mxu0 }
 0x5b8   : > { %5433 = vst.msk [vmem:[%s8251_s8 + $0xd88] sm:$0xff] %vm5005_vm1, %v4932_v29  ;;  %5432 = vst [vmem:[%s8251_s8 + $0xd80] sm:$0xff] %v4230_v30  ;;  %v4934_v31 = vpop.f32.mrb[23].mxu1 }
 0x5bc   : > { %v4234_v32 = vpop.f32.mrb[24].mxu0 }
 0x5bd   : > { %5438 = vst [vmem:[%s8251_s8 + $0xdb0] sm:$0xff] %v4234_v32  ;;  %v4937_v35 = vpop.f32.mrb[24].mxu1  ;;  %v4236_v37 = vpop.f32.mrb[25].mxu0 }
 0x5be   : > { %5440 = vst.msk [vmem:[%s8251_s8 + $0xdc0] sm:$0xff] %vm5005_vm1, %v4937_v35  ;;  %5439 = vst [vmem:[%s8251_s8 + $0xdb8] sm:$0xff] %v4236_v37  ;;  %v4939_v38 = vpop.f32.mrb[25].mxu1  ;;  %v4238_v39 = vpop.f32.mrb[26].mxu0 }
 0x5bf   : > { %5445 = vst [vmem:[%s8251_s8 + $0xde8] sm:$0xff] %v4238_v39  ;;  %v4940_v40 = vpop.f32.mrb[26].mxu1  ;;  %v4240_v41 = vpop.f32.mrb[27].mxu0 }
 0x5c0   : > { %5447 = vst.msk [vmem:[%s8251_s8 + $0xdf8] sm:$0xff] %vm5005_vm1, %v4940_v40  ;;  %5446 = vst [vmem:[%s8251_s8 + $0xdf0] sm:$0xff] %v4240_v41  ;;  %v4942_v42 = vpop.f32.mrb[27].mxu1 }
 0x5c4   : > { %v4244_v44 = vpop.f32.mrb[28].mxu0 }
 0x5c5   : > { %5452 = vst [vmem:[%s8251_s8 + $0xe20] sm:$0xff] %v4244_v44  ;;  %v4945_v45 = vpop.f32.mrb[28].mxu1  ;;  %v4246_v46 = vpop.f32.mrb[29].mxu0 }
 0x5c6   : > { %5454 = vst.msk [vmem:[%s8251_s8 + $0xe30] sm:$0xff] %vm5005_vm1, %v4945_v45  ;;  %5453 = vst [vmem:[%s8251_s8 + $0xe28] sm:$0xff] %v4246_v46  ;;  %v4947_v47 = vpop.f32.mrb[29].mxu1  ;;  %v4248_v48 = vpop.f32.mrb[30].mxu0 }
 0x5c7   : > { %5459 = vst [vmem:[%s8251_s8 + $0xe58] sm:$0xff] %v4248_v48  ;;  %v4948_v49 = vpop.f32.mrb[30].mxu1  ;;  %v4250_v50 = vpop.f32.mrb[31].mxu0 }
 0x5c8   : > { %5461 = vst.msk [vmem:[%s8251_s8 + $0xe68] sm:$0xff] %vm5005_vm1, %v4948_v49  ;;  %5460 = vst [vmem:[%s8251_s8 + $0xe60] sm:$0xff] %v4250_v50  ;;  %v4950_v51 = vpop.f32.mrb[31].mxu1 }
 0x5cc   : > { %v4254_v52 = vpop.f32.mrb[32].mxu0 }
 0x5cd   : > { %5466 = vst [vmem:[%s8251_s8 + $0xe90] sm:$0xff] %v4254_v52  ;;  %v4953_v53 = vpop.f32.mrb[32].mxu1  ;;  %v4256_v54 = vpop.f32.mrb[33].mxu0 }
 0x5ce   : > { %5468 = vst.msk [vmem:[%s8251_s8 + $0xea0] sm:$0xff] %vm5005_vm1, %v4953_v53  ;;  %5467 = vst [vmem:[%s8251_s8 + $0xe98] sm:$0xff] %v4256_v54  ;;  %v4955_v55 = vpop.f32.mrb[33].mxu1  ;;  %v4258_v56 = vpop.f32.mrb[34].mxu0 }
 0x5cf   : > { %5473 = vst [vmem:[%s8251_s8 + $0xec8] sm:$0xff] %v4258_v56  ;;  %v4956_v57 = vpop.f32.mrb[34].mxu1  ;;  %v4260_v58 = vpop.f32.mrb[35].mxu0 }
 0x5d0   : > { %5475 = vst.msk [vmem:[%s8251_s8 + $0xed8] sm:$0xff] %vm5005_vm1, %v4956_v57  ;;  %5474 = vst [vmem:[%s8251_s8 + $0xed0] sm:$0xff] %v4260_v58  ;;  %v4958_v59 = vpop.f32.mrb[35].mxu1 }
 0x5d4   : > { %v4264_v60 = vpop.f32.mrb[36].mxu0 }
 0x5d5   : > { %5480 = vst [vmem:[%s8251_s8 + $0xf00] sm:$0xff] %v4264_v60  ;;  %v4961_v61 = vpop.f32.mrb[36].mxu1  ;;  %v4266_v62 = vpop.f32.mrb[37].mxu0 }
 0x5d6   : > { %5482 = vst.msk [vmem:[%s8251_s8 + $0xf10] sm:$0xff] %vm5005_vm1, %v4961_v61  ;;  %5481 = vst [vmem:[%s8251_s8 + $0xf08] sm:$0xff] %v4266_v62  ;;  %v4963_v63 = vpop.f32.mrb[37].mxu1  ;;  %v4268_v0 = vpop.f32.mrb[38].mxu0 }
 0x5d7   : > { %5487 = vst [vmem:[%s8251_s8 + $0xf38] sm:$0xff] %v4268_v0  ;;  %v4964_v1 = vpop.f32.mrb[38].mxu1  ;;  %v4270_v2 = vpop.f32.mrb[39].mxu0 }
 0x5d8   : > { %5489 = vst.msk [vmem:[%s8251_s8 + $0xf48] sm:$0xff] %vm5005_vm1, %v4964_v1  ;;  %5488 = vst [vmem:[%s8251_s8 + $0xf40] sm:$0xff] %v4270_v2  ;;  %v4966_v3 = vpop.f32.mrb[39].mxu1 }
 0x5dc   : > { %v4274_v5 = vpop.f32.mrb[40].mxu0 }
 0x5dd   : > { %5494 = vst [vmem:[%s8251_s8 + $0xf70] sm:$0xff] %v4274_v5  ;;  %v4969_v6 = vpop.f32.mrb[40].mxu1  ;;  %v4276_v7 = vpop.f32.mrb[41].mxu0 }
 0x5de   : > { %5496 = vst.msk [vmem:[%s8251_s8 + $0xf80] sm:$0xff] %vm5005_vm1, %v4969_v6  ;;  %5495 = vst [vmem:[%s8251_s8 + $0xf78] sm:$0xff] %v4276_v7  ;;  %v4971_v8 = vpop.f32.mrb[41].mxu1  ;;  %v4278_v9 = vpop.f32.mrb[42].mxu0 }
 0x5df   : > { %5501 = vst [vmem:[%s8251_s8 + $0xfa8] sm:$0xff] %v4278_v9  ;;  %v4972_v10 = vpop.f32.mrb[42].mxu1  ;;  %v4280_v11 = vpop.f32.mrb[43].mxu0 }
 0x5e0   : > { %5503 = vst.msk [vmem:[%s8251_s8 + $0xfb8] sm:$0xff] %vm5005_vm1, %v4972_v10  ;;  %5502 = vst [vmem:[%s8251_s8 + $0xfb0] sm:$0xff] %v4280_v11  ;;  %v4974_v36 = vpop.f32.mrb[43].mxu1 }
 0x5e4   : > { %v4284_v12 = vpop.f32.mrb[44].mxu0 }
 0x5e5   : > { %5508 = vst [vmem:[%s8251_s8 + $0xfe0] sm:$0xff] %v4284_v12  ;;  %v4977_v13 = vpop.f32.mrb[44].mxu1  ;;  %v4286_v14 = vpop.f32.mrb[45].mxu0 }
 0x5e6   : > { %5510 = vst.msk [vmem:[%s8251_s8 + $0xff0] sm:$0xff] %vm5005_vm1, %v4977_v13  ;;  %5509 = vst [vmem:[%s8251_s8 + $0xfe8] sm:$0xff] %v4286_v14  ;;  %v4979_v15 = vpop.f32.mrb[45].mxu1  ;;  %v4288_v16 = vpop.f32.mrb[46].mxu0 }
 0x5e7   : > { %5515 = vst [vmem:[%s8251_s8 + $0x1018] sm:$0xff] %v4288_v16  ;;  %v4980_v17 = vpop.f32.mrb[46].mxu1  ;;  %v4290_v18 = vpop.f32.mrb[47].mxu0 }
 0x5e8   : > { %5517 = vst.msk [vmem:[%s8251_s8 + $0x1028] sm:$0xff] %vm5005_vm1, %v4980_v17  ;;  %5516 = vst [vmem:[%s8251_s8 + $0x1020] sm:$0xff] %v4290_v18  ;;  %v4982_v43 = vpop.f32.mrb[47].mxu1 }
 0x5ec   : > { %v4294_v19 = vpop.f32.mrb[48].mxu0 }
 0x5ed   : > { %5522 = vst [vmem:[%s8251_s8 + $0x1050] sm:$0xff] %v4294_v19  ;;  %v4985_v20 = vpop.f32.mrb[48].mxu1  ;;  %v4296_v21 = vpop.f32.mrb[49].mxu0 }
 0x5ee   : > { %5524 = vst.msk [vmem:[%s8251_s8 + $0x1060] sm:$0xff] %vm5005_vm1, %v4985_v20  ;;  %5523 = vst [vmem:[%s8251_s8 + $0x1058] sm:$0xff] %v4296_v21  ;;  %v4987_v22 = vpop.f32.mrb[49].mxu1  ;;  %v4298_v23 = vpop.f32.mrb[50].mxu0 }
 0x5ef   : > { %5529 = vst [vmem:[%s8251_s8 + $0x1088] sm:$0xff] %v4298_v23  ;;  %v4988_v24 = vpop.f32.mrb[50].mxu1  ;;  %v4300_v25 = vpop.f32.mrb[51].mxu0 }
 0x5f0   : > { %5531 = vst.msk [vmem:[%s8251_s8 + $0x1098] sm:$0xff] %vm5005_vm1, %v4988_v24  ;;  %5530 = vst [vmem:[%s8251_s8 + $0x1090] sm:$0xff] %v4300_v25  ;;  %v4990_v26 = vpop.f32.mrb[51].mxu1 }
 0x5f4   : > { %v4304_v27 = vpop.f32.mrb[52].mxu0 }
 0x5f5   : > { %5536 = vst [vmem:[%s8251_s8 + $0x10c0] sm:$0xff] %v4304_v27  ;;  %v4993_v4 = vpop.f32.mrb[52].mxu1  ;;  %v4306_v28 = vpop.f32.mrb[53].mxu0 }
 0x5f6   : > { %5538 = vst.msk [vmem:[%s8251_s8 + $0x10d0] sm:$0xff] %vm5005_vm1, %v4993_v4  ;;  %5537 = vst [vmem:[%s8251_s8 + $0x10c8] sm:$0xff] %v4306_v28  ;;  %v4995_v33 = vpop.f32.mrb[53].mxu1  ;;  %v4308_v34 = vpop.f32.mrb[54].mxu0 }
 0x5f7   : > { %v4996_v29 = vpop.f32.mrb[54].mxu1  ;;  %v4309_v30 = vpop.f32.mrb[55].mxu0 }
 0x5f8   : > { %v4997_v31 = vpop.f32.mrb[55].mxu1 }
 0x5f9 PF: > { %s12_s11 = sadd.s32 1, %s7020_s11   ;;  %s9394_s9 = smov %s7016_s10 }
 0x5fa   : > { %p9_p6 = scmp.ge.s32.totalorder %s12_s11, 4   ;;  %s9395_s10 = smov %s9397_s12 }
 0x5fc   :  { %11 = sbr.rel (!%p9_p6) target bundleno = 2 (0x2), region = 61 }

</bundles_post_ra>
